<compile_context>
chip_gen: v7x
topology: tpu7x:2x2x1
jax: 0.10.0
libtpu: 0.0.40
codegen_flags: <defaults>
</compile_context>

<pallas_src>
import functools

import jax
import jax.numpy as jnp
from jax import lax
from jax.experimental import pallas as pl
from jax.experimental.pallas import tpu as pltpu


def _round_up(a, b):
    return (a + b - 1) // b * b


# ----------------------------- fused Pallas kernel ---------------------------

def _bottleneck_kernel(x_ref, w1_ref, w2_ref, w3_ref,
                       s1_ref, b1_ref, s2_ref, b2_ref, s3_ref, b3_ref,
                       o_ref, h1_ref, acc_ref,
                       *, H, W, dil, slack, cdt):
    """Fused 1x1 -> 3x3(dilated) -> 1x1 + residual + ReLU for one image.

    x_ref  : (1, H*W, Cin)   input (also the residual), f32 in HBM
    w1_ref : (Cin, Cp)       conv1 weight, compute dtype (Cp = lane-padded planes)
    w2_ref : (9, Cp, Cp)     conv2 weight, tap-major (t = kh*3 + kw), HWIO-derived
    w3_ref : (Cp, Cout)      conv3 weight
    s*/b*  : (1, Cp|Cout)    folded BatchNorm scale/bias, f32
    o_ref  : (1, H*W, Cout)  output
    h1_ref : VMEM (H*W + 2*slack, Cp) compute-dtype scratch; stage-1 output is
             stored in the middle H*W rows, the slack rows stay zero so the
             shifted tap loads for the 3x3 never leave the buffer.
    acc_ref: VMEM (H*W, Cp) f32 scratch; stage-2 accumulator.
    """
    HW = H * W
    pad = dil  # module: padding == dilation * multi_grid

    # Zero the halo/slack rows once; they are never written afterwards and the
    # scratch persists across grid steps.
    @pl.when(pl.program_id(0) == 0)
    def _init_slack():
        zeros = jnp.zeros((slack, h1_ref.shape[1]), h1_ref.dtype)
        h1_ref[pl.ds(0, slack), :] = zeros
        h1_ref[pl.ds(slack + HW, slack), :] = zeros

    x_f32 = x_ref[0].astype(jnp.float32)            # (HW, Cin) residual path
    x_c = x_f32.astype(cdt)                         # MXU input dtype

    # ---- stage 1: 1x1 conv + BN + ReLU (f32 accumulate / f32 epilogue) ----
    y1 = jnp.dot(x_c, w1_ref[...], preferred_element_type=jnp.float32)
    y1 = jnp.maximum(y1 * s1_ref[...] + b1_ref[...], 0.0)
    h1_ref[pl.ds(slack, HW), :] = y1.astype(cdt)

    # ---- stage 2: 3x3 dilated conv as 9 shifted flat matmuls ----
    # The (kh, kw) tap needs h1(h + kh*d - pad, w + kw*d - pad).  In the flat
    # (HW, Cp) layout that is a row shift of dh*W + dw; rows that fall outside
    # [0, HW) land in the zeroed slack (correct zeros), and the wrap-around in
    # the W direction is fixed with a per-tap column mask.
    col = lax.broadcasted_iota(jnp.int32, (HW, 1), 0) % W   # output column idx
    first = True
    for kh in range(3):
        for kw in range(3):
            dh = kh * dil - pad
            dw = kw * dil - pad
            shift = dh * W + dw                              # static int
            patch = h1_ref[pl.ds(slack + shift, HW), :]      # (HW, Cp), cdt
            if dw > 0:
                patch = jnp.where(col < (W - dw), patch, jnp.zeros_like(patch))
            elif dw < 0:
                patch = jnp.where(col >= (-dw), patch, jnp.zeros_like(patch))
            contrib = jnp.dot(patch, w2_ref[kh * 3 + kw],
                              preferred_element_type=jnp.float32)
            if first:
                acc_ref[...] = contrib
                first = False
            else:
                acc_ref[...] += contrib

    y2 = jnp.maximum(acc_ref[...] * s2_ref[...] + b2_ref[...], 0.0)  # f32

    # ---- stage 3: 1x1 conv + BN + residual add + ReLU ----
    y3 = jnp.dot(y2.astype(cdt), w3_ref[...],
                 preferred_element_type=jnp.float32)
    y3 = y3 * s3_ref[...] + b3_ref[...]
    out = jnp.maximum(y3 + x_f32, 0.0)
    o_ref[0] = out.astype(o_ref.dtype)


# ----------------------------- params ---------------------------------------

def _fold_bn(gamma, beta, mean, var, eps=1e-5):
    scale = gamma / jnp.sqrt(var + eps)
    bias = beta - mean * scale
    return scale, bias


def init_params(key, inplanes, planes):
    """PyTorch-equivalent Bottleneck params with BN folded (inference mode)."""
    expansion = 4
    ks = jax.random.split(key, 6)

    def conv_w(k, cout, cin, kh, kw):            # PyTorch OIHW weight
        fan_in = cin * kh * kw
        return jax.random.normal(k, (cout, cin, kh, kw), jnp.float32) * (2.0 / fan_in) ** 0.5

    def bn_p(k, c):
        k1, k2, k3, k4 = jax.random.split(k, 4)
        gamma = 1.0 + 0.1 * jax.random.normal(k1, (c,), jnp.float32)
        beta = 0.1 * jax.random.normal(k2, (c,), jnp.float32)
        mean = 0.1 * jax.random.normal(k3, (c,), jnp.float32)
        var = jnp.abs(1.0 + 0.1 * jax.random.normal(k4, (c,), jnp.float32))
        return gamma, beta, mean, var

    w1 = conv_w(ks[0], planes, inplanes, 1, 1)                 # (P, IN, 1, 1)
    w2 = conv_w(ks[1], planes, planes, 3, 3)                   # (P, P, 3, 3)
    w3 = conv_w(ks[2], planes * expansion, planes, 1, 1)       # (4P, P, 1, 1)
    s1, b1 = _fold_bn(*bn_p(ks[3], planes))
    s2, b2 = _fold_bn(*bn_p(ks[4], planes))
    s3, b3 = _fold_bn(*bn_p(ks[5], planes * expansion))

    return dict(
        w1=jnp.transpose(w1[:, :, 0, 0], (1, 0)),              # (IN, P)
        w2=jnp.transpose(w2, (2, 3, 1, 0)),                    # HWIO (3,3,P,P)
        w3=jnp.transpose(w3[:, :, 0, 0], (1, 0)),              # (P, 4P)
        s1=s1, b1=b1, s2=s2, b2=b2, s3=s3, b3=b3,
    )


def _prepare_kernel_params(params, compute_dtype):
    """Lane-pad planes to a multiple of 128 and cast MXU weights."""
    w1, w2, w3 = params['w1'], params['w2'], params['w3']
    p = w1.shape[1]
    cp = max(_round_up(p, 128), 128)
    padc = cp - p

    w1p = jnp.pad(w1, ((0, 0), (0, padc))).astype(compute_dtype)            # (Cin, Cp)
    w2p = jnp.pad(w2, ((0, 0), (0, 0), (0, padc), (0, padc)))
    w2p = w2p.reshape(9, cp, cp).astype(compute_dtype)                      # (9, Cp, Cp)
    w3p = jnp.pad(w3, ((0, padc), (0, 0))).astype(compute_dtype)            # (Cp, Cout)

    def pad_vec(v):   # zero scale/bias on padded channels -> padded h stays 0
        return jnp.pad(v, (0, padc)).astype(jnp.float32)[None, :]

    return dict(
        w1=w1p, w2=w2p, w3=w3p,
        s1=pad_vec(params['s1']), b1=pad_vec(params['b1']),
        s2=pad_vec(params['s2']), b2=pad_vec(params['b2']),
        s3=params['s3'].astype(jnp.float32)[None, :],
        b3=params['b3'].astype(jnp.float32)[None, :],
    )


# ----------------------------- forward ---------------------------------------

@functools.partial(jax.jit, static_argnames=("dilation", "multi_grid", "compute_dtype"))
def bottleneck_forward(x_nchw, params, dilation=1, multi_grid=1,
                       compute_dtype=jnp.bfloat16):
    N, Cin, H, W = x_nchw.shape
    Cout = params['w3'].shape[1]
    if params['w1'].shape[0] != Cin:
        raise ValueError("inplanes of params does not match input channels")
    if Cin != Cout:
        # stride=1 / downsample=None path: residual = x, so IN must equal 4*P.
        raise ValueError("residual add requires inplanes == 4 * planes "
                         "(downsample path not implemented)")

    dil = dilation * multi_grid
    cdt = compute_dtype
    HW = H * W

    x3 = jnp.transpose(x_nchw, (0, 2, 3, 1)).reshape(N, HW, Cin)   # NHWC flat
    kp = _prepare_kernel_params(params, cdt)
    Cp = kp['w1'].shape[1]
    slack = _round_up(dil * (W + 1), 32)          # covers max tap shift, aligned

    # Rough VMEM budget (double-buffered blocks + weights + scratch) -> limit.
    csize = jnp.dtype(cdt).itemsize
    needed = (2 * HW * Cin * 4 + 2 * HW * Cout * 4
              + 2 * (Cin * Cp + 9 * Cp * Cp + Cp * Cout) * csize
              + 2 * 6 * Cp * 4
              + (HW + 2 * slack) * Cp * csize
              + HW * Cp * 4)
    vmem_limit = int(min(max(needed * 3 // 2, 32 * 1024 * 1024),
                         64 * 1024 * 1024))

    kern = functools.partial(_bottleneck_kernel, H=H, W=W, dil=dil,
                             slack=slack, cdt=cdt)

    out = pl.pallas_call(
        kern,
        out_shape=jax.ShapeDtypeStruct((N, HW, Cout), x3.dtype),
        grid_spec=pltpu.PrefetchScalarGridSpec(
            num_scalar_prefetch=0,
            grid=(N,),
            in_specs=[
                pl.BlockSpec((1, HW, Cin), lambda n: (n, 0, 0)),
                pl.BlockSpec((Cin, Cp), lambda n: (0, 0)),
                pl.BlockSpec((9, Cp, Cp), lambda n: (0, 0, 0)),
                pl.BlockSpec((Cp, Cout), lambda n: (0, 0)),
                pl.BlockSpec((1, Cp), lambda n: (0, 0)),
                pl.BlockSpec((1, Cp), lambda n: (0, 0)),
                pl.BlockSpec((1, Cp), lambda n: (0, 0)),
                pl.BlockSpec((1, Cp), lambda n: (0, 0)),
                pl.BlockSpec((1, Cout), lambda n: (0, 0)),
                pl.BlockSpec((1, Cout), lambda n: (0, 0)),
            ],
            out_specs=pl.BlockSpec((1, HW, Cout), lambda n: (n, 0, 0)),
            scratch_shapes=[
                pltpu.VMEM((HW + 2 * slack, Cp), cdt),      # h1 (+halo slack)
                pltpu.VMEM((HW, Cp), jnp.float32),          # 3x3 accumulator
            ],
        ),
        compiler_params=pltpu.CompilerParams(
            dimension_semantics=("parallel",),
            vmem_limit_bytes=vmem_limit),
        input_output_aliases={0: 0},     # output overwrites the residual buffer
    )(x3, kp['w1'], kp['w2'], kp['w3'],
      kp['s1'], kp['b1'], kp['s2'], kp['b2'], kp['s3'], kp['b3'])

    out = out.reshape(N, H, W, Cout)
    return jnp.transpose(out, (0, 3, 1, 2))                    # NHWC -> NCHW


# ----------------------------- pure-JAX reference ---------------------------

def reference_forward(x_nchw, params, dilation=1, multi_grid=1,
                      compute_dtype=jnp.float32):
    """XLA reference; compute_dtype mirrors the kernel's MXU-input rounding."""
    cdt = compute_dtype
    x = jnp.transpose(x_nchw, (0, 2, 3, 1)).astype(jnp.float32)

    def conv(h, w, pad=0, dil=1):
        return lax.conv_general_dilated(
            h.astype(cdt), w.astype(cdt), window_strides=(1, 1),
            padding=((pad, pad), (pad, pad)), rhs_dilation=(dil, dil),
            dimension_numbers=('NHWC', 'HWIO', 'NHWC'),
            preferred_element_type=jnp.float32)

    d = dilation * multi_grid
    h = conv(x, params['w1'][None, None])
    h = jnp.maximum(h * params['s1'] + params['b1'], 0.0)
    h = conv(h, params['w2'], pad=d, dil=d)
    h = jnp.maximum(h * params['s2'] + params['b2'], 0.0)
    h = conv(h, params['w3'][None, None])
    h = h * params['s3'] + params['b3']
    out = jnp.maximum(h + x, 0.0)
    return jnp.transpose(out, (0, 3, 1, 2))


# ----------------------------- main ------------------------------------------

if __name__ == "__main__":
    key = jax.random.PRNGKey(0)
    k_x, k_p = jax.random.split(key)

    N, planes, H, W = 2, 4, 16, 16
    inplanes = planes * 4                       # residual add requires IN == 4*P
    x = jax.random.normal(k_x, (N, inplanes, H, W), jnp.float32)   # NCHW
    params = init_params(k_p, inplanes, planes)

    # f32 compute path: tight check against the plain f32 XLA reference.
    out_f32 = jax.block_until_ready(
        bottleneck_forward(x, params, compute_dtype=jnp.float32))
    ref_f32 = jax.block_until_ready(
        reference_forward(x, params, compute_dtype=jnp.float32))
    assert out_f32.shape == (N, planes * 4, H, W)
    assert jnp.allclose(out_f32, ref_f32, atol=1e-3, rtol=1e-3), "f32 mismatch"

    # bf16 MXU path (perf default): check against a bf16-matched reference.
    out_bf16 = jax.block_until_ready(
        bottleneck_forward(x, params, compute_dtype=jnp.bfloat16))
    ref_bf16 = jax.block_until_ready(
        reference_forward(x, params, compute_dtype=jnp.bfloat16))
    assert out_bf16.shape == (N, planes * 4, H, W)
    assert jnp.allclose(out_bf16, ref_bf16, atol=3e-2, rtol=3e-2), "bf16 mismatch"

    print("KERNEL_OK")
</pallas_src>

<mosaic_0001>
module attributes {stable_mosaic.version = 11 : i64} {
  func.func @_bottleneck_kernel(%arg0: i32, %arg1: memref<1x256x16xf32, #tpu.memory_space<vmem>>, %arg2: memref<16x128xf32, #tpu.memory_space<vmem>>, %arg3: memref<9x128x128xf32, #tpu.memory_space<vmem>>, %arg4: memref<128x16xf32, #tpu.memory_space<vmem>>, %arg5: memref<1x128xf32, #tpu.memory_space<vmem>>, %arg6: memref<1x128xf32, #tpu.memory_space<vmem>>, %arg7: memref<1x128xf32, #tpu.memory_space<vmem>>, %arg8: memref<1x128xf32, #tpu.memory_space<vmem>>, %arg9: memref<1x16xf32, #tpu.memory_space<vmem>>, %arg10: memref<1x16xf32, #tpu.memory_space<vmem>>, %arg11: memref<1x256x16xf32, #tpu.memory_space<vmem>>, %arg12: memref<320x128xf32, #tpu.memory_space<vmem>>, %arg13: memref<256x128xf32, #tpu.memory_space<vmem>>) attributes {dimension_semantics = [#tpu.dimension_semantics<parallel>], iteration_bounds = array<i64: 2>, scalar_prefetch = 0 : i64, scratch_operands = 2 : i64, tpu.core_type = #tpu.core_type<tc>, window_params = [{transform_indices = @transform_0, window_bounds = array<i64: 1, 256, 16>}, {pipeline_mode = #tpu.pipeline_mode<synchronous>, transform_indices = @transform_1, window_bounds = array<i64: 16, 128>}, {pipeline_mode = #tpu.pipeline_mode<synchronous>, transform_indices = @transform_2, window_bounds = array<i64: 9, 128, 128>}, {pipeline_mode = #tpu.pipeline_mode<synchronous>, transform_indices = @transform_3, window_bounds = array<i64: 128, 16>}, {pipeline_mode = #tpu.pipeline_mode<synchronous>, transform_indices = @transform_4, window_bounds = array<i64: 1, 128>}, {pipeline_mode = #tpu.pipeline_mode<synchronous>, transform_indices = @transform_5, window_bounds = array<i64: 1, 128>}, {pipeline_mode = #tpu.pipeline_mode<synchronous>, transform_indices = @transform_6, window_bounds = array<i64: 1, 128>}, {pipeline_mode = #tpu.pipeline_mode<synchronous>, transform_indices = @transform_7, window_bounds = array<i64: 1, 128>}, {pipeline_mode = #tpu.pipeline_mode<synchronous>, transform_indices = @transform_8, window_bounds = array<i64: 1, 16>}, {pipeline_mode = #tpu.pipeline_mode<synchronous>, transform_indices = @transform_9, window_bounds = array<i64: 1, 16>}, {transform_indices = @transform_10, window_bounds = array<i64: 1, 256, 16>}]} {
    %c0_i32 = arith.constant 0 : i32
    %0 = arith.cmpi eq, %arg0, %c0_i32 : i32
    %1 = arith.extui %0 : i1 to i32
    %c0_i32_0 = arith.constant 0 : i32
    %2 = arith.cmpi ne, %1, %c0_i32_0 : i32
    scf.if %2 {
      %cst_116 = arith.constant 0.000000e+00 : f32
      %153 = vector.broadcast %cst_116 : f32 to vector<32x128xf32>
      %c0_117 = arith.constant 0 : index
      %c0_118 = arith.constant 0 : index
      %154 = vector.load %arg12[%c0_117, %c0_118] : memref<320x128xf32, #tpu.memory_space<vmem>>, vector<32x128xf32>
      tpu.vector_store %arg12[%c0_117, %c0_118], %153 {strides = array<i32>} : memref<320x128xf32, #tpu.memory_space<vmem>>, vector<32x128xf32>,
      %c288 = arith.constant 288 : index
      %c0_119 = arith.constant 0 : index
      %155 = vector.load %arg12[%c288, %c0_119] : memref<320x128xf32, #tpu.memory_space<vmem>>, vector<32x128xf32>
      tpu.vector_store %arg12[%c288, %c0_119], %153 {strides = array<i32>} : memref<320x128xf32, #tpu.memory_space<vmem>>, vector<32x128xf32>,
    } else {
    }
    %c0 = arith.constant 0 : index
    %c0_1 = arith.constant 0 : index
    %c0_2 = arith.constant 0 : index
    %3 = vector.load %arg1[%c0, %c0_1, %c0_2] : memref<1x256x16xf32, #tpu.memory_space<vmem>>, vector<1x256x16xf32>
    %4 = vector.shape_cast %3 : vector<1x256x16xf32> to vector<256x16xf32>
    %c0_3 = arith.constant 0 : index
    %c0_4 = arith.constant 0 : index
    %5 = vector.load %arg2[%c0_3, %c0_4] : memref<16x128xf32, #tpu.memory_space<vmem>>, vector<16x128xf32>
    %cst = arith.constant dense<0.000000e+00> : vector<256x128xf32>
    %6 = tpu.matmul %4, %5, %cst {dimension_numbers = #tpu.dot_dimension_numbers<[1], [0], [0], [1], [0, 0, 1, 1], [], []>} : vector<256x16xf32>, vector<16x128xf32>, vector<256x128xf32> -> vector<256x128xf32>
    %c0_5 = arith.constant 0 : index
    %c0_6 = arith.constant 0 : index
    %7 = vector.load %arg5[%c0_5, %c0_6] : memref<1x128xf32, #tpu.memory_space<vmem>>, vector<1x128xf32>
    %8 = vector.broadcast %7 : vector<1x128xf32> to vector<256x128xf32>
    %9 = arith.mulf %6, %8 : vector<256x128xf32>
    %c0_7 = arith.constant 0 : index
    %c0_8 = arith.constant 0 : index
    %10 = vector.load %arg6[%c0_7, %c0_8] : memref<1x128xf32, #tpu.memory_space<vmem>>, vector<1x128xf32>
    %11 = vector.broadcast %10 : vector<1x128xf32> to vector<256x128xf32>
    %12 = arith.addf %9, %11 : vector<256x128xf32>
    %cst_9 = arith.constant 0.000000e+00 : f32
    %13 = vector.broadcast %cst_9 : f32 to vector<256x128xf32>
    %14 = arith.maximumf %12, %13 : vector<256x128xf32>
    %c32 = arith.constant 32 : index
    %c0_10 = arith.constant 0 : index
    %15 = vector.load %arg12[%c32, %c0_10] : memref<320x128xf32, #tpu.memory_space<vmem>>, vector<256x128xf32>
    tpu.vector_store %arg12[%c32, %c0_10], %14 {strides = array<i32>} : memref<320x128xf32, #tpu.memory_space<vmem>>, vector<256x128xf32>,
    %16 = tpu.iota {dimensions = array<i32: 0>} : vector<256x1xi32>
    %c16_i32 = arith.constant 16 : i32
    %c0_i32_11 = arith.constant 0 : i32
    %17 = arith.cmpi eq, %c16_i32, %c0_i32_11 : i32
    %c1_i32 = arith.constant 1 : i32
    %18 = arith.select %17, %c1_i32, %c16_i32 : i32
    %19 = vector.broadcast %18 : i32 to vector<256x1xi32>
    %20 = arith.remsi %16, %19 : vector<256x1xi32>
    %c0_i32_12 = arith.constant 0 : i32
    %21 = vector.broadcast %c0_i32_12 : i32 to vector<256x1xi32>
    %22 = arith.cmpi ne, %20, %21 : vector<256x1xi32>
    %c0_i32_13 = arith.constant 0 : i32
    %23 = vector.broadcast %c0_i32_13 : i32 to vector<256x1xi32>
    %24 = arith.cmpi slt, %20, %23 : vector<256x1xi32>
    %c0_i32_14 = arith.constant 0 : i32
    %25 = arith.cmpi slt, %18, %c0_i32_14 : i32
    %26 = vector.broadcast %25 : i1 to vector<256x1xi1>
    %27 = vector.broadcast %26 : vector<256x1xi1> to vector<256x1xi1>
    %28 = arith.xori %24, %27 : vector<256x1xi1>
    %29 = arith.andi %28, %22 : vector<256x1xi1>
    %30 = vector.broadcast %18 : i32 to vector<256x1xi32>
    %31 = arith.addi %20, %30 : vector<256x1xi32>
    %32 = arith.select %29, %31, %20 : vector<256x1xi1>, vector<256x1xi32>
    %c15 = arith.constant 15 : index
    %c0_15 = arith.constant 0 : index
    %33 = vector.load %arg12[%c15, %c0_15] : memref<320x128xf32, #tpu.memory_space<vmem>>, vector<256x128xf32>
    %c1_i32_16 = arith.constant 1 : i32
    %34 = vector.broadcast %c1_i32_16 : i32 to vector<256x1xi32>
    %35 = arith.cmpi sge, %32, %34 : vector<256x1xi32>
    %cst_17 = arith.constant 0.000000e+00 : f32
    %36 = vector.broadcast %cst_17 : f32 to vector<256x128xf32>
    %37 = vector.shape_cast %35 : vector<256x1xi1> to vector<256x1xi1>
    %38 = vector.broadcast %37 : vector<256x1xi1> to vector<256x128xi1>
    %39 = arith.select %38, %33, %36 : vector<256x128xi1>, vector<256x128xf32>
    %c0_18 = arith.constant 0 : index
    %c0_19 = arith.constant 0 : index
    %c0_20 = arith.constant 0 : index
    %40 = vector.load %arg3[%c0_18, %c0_19, %c0_20] : memref<9x128x128xf32, #tpu.memory_space<vmem>>, vector<1x128x128xf32>
    %41 = vector.shape_cast %40 : vector<1x128x128xf32> to vector<128x128xf32>
    %cst_21 = arith.constant dense<0.000000e+00> : vector<256x128xf32>
    %42 = tpu.matmul %39, %41, %cst_21 {dimension_numbers = #tpu.dot_dimension_numbers<[1], [0], [0], [1], [0, 0, 1, 1], [], []>} : vector<256x128xf32>, vector<128x128xf32>, vector<256x128xf32> -> vector<256x128xf32>
    %c0_22 = arith.constant 0 : index
    %c0_23 = arith.constant 0 : index
    %43 = vector.load %arg13[%c0_22, %c0_23] : memref<256x128xf32, #tpu.memory_space<vmem>>, vector<256x128xf32>
    tpu.vector_store %arg13[%c0_22, %c0_23], %42 {strides = array<i32>} : memref<256x128xf32, #tpu.memory_space<vmem>>, vector<256x128xf32>,
    %c16 = arith.constant 16 : index
    %c0_24 = arith.constant 0 : index
    %44 = vector.load %arg12[%c16, %c0_24] : memref<320x128xf32, #tpu.memory_space<vmem>>, vector<256x128xf32>
    %c1 = arith.constant 1 : index
    %c0_25 = arith.constant 0 : index
    %c0_26 = arith.constant 0 : index
    %45 = vector.load %arg3[%c1, %c0_25, %c0_26] : memref<9x128x128xf32, #tpu.memory_space<vmem>>, vector<1x128x128xf32>
    %46 = vector.shape_cast %45 : vector<1x128x128xf32> to vector<128x128xf32>
    %cst_27 = arith.constant dense<0.000000e+00> : vector<256x128xf32>
    %47 = tpu.matmul %44, %46, %cst_27 {dimension_numbers = #tpu.dot_dimension_numbers<[1], [0], [0], [1], [0, 0, 1, 1], [], []>} : vector<256x128xf32>, vector<128x128xf32>, vector<256x128xf32> -> vector<256x128xf32>
    %c0_28 = arith.constant 0 : index
    %c0_29 = arith.constant 0 : index
    %48 = vector.load %arg13[%c0_28, %c0_29] : memref<256x128xf32, #tpu.memory_space<vmem>>, vector<256x128xf32>
    %49 = arith.addf %48, %47 : vector<256x128xf32>
    %c0_30 = arith.constant 0 : index
    %c0_31 = arith.constant 0 : index
    %50 = vector.load %arg13[%c0_30, %c0_31] : memref<256x128xf32, #tpu.memory_space<vmem>>, vector<256x128xf32>
    tpu.vector_store %arg13[%c0_30, %c0_31], %49 {strides = array<i32>} : memref<256x128xf32, #tpu.memory_space<vmem>>, vector<256x128xf32>,
    %c17 = arith.constant 17 : index
    %c0_32 = arith.constant 0 : index
    %51 = vector.load %arg12[%c17, %c0_32] : memref<320x128xf32, #tpu.memory_space<vmem>>, vector<256x128xf32>
    %c15_i32 = arith.constant 15 : i32
    %52 = vector.broadcast %c15_i32 : i32 to vector<256x1xi32>
    %53 = arith.cmpi slt, %32, %52 : vector<256x1xi32>
    %cst_33 = arith.constant 0.000000e+00 : f32
    %54 = vector.broadcast %cst_33 : f32 to vector<256x128xf32>
    %55 = vector.shape_cast %53 : vector<256x1xi1> to vector<256x1xi1>
    %56 = vector.broadcast %55 : vector<256x1xi1> to vector<256x128xi1>
    %57 = arith.select %56, %51, %54 : vector<256x128xi1>, vector<256x128xf32>
    %c2 = arith.constant 2 : index
    %c0_34 = arith.constant 0 : index
    %c0_35 = arith.constant 0 : index
    %58 = vector.load %arg3[%c2, %c0_34, %c0_35] : memref<9x128x128xf32, #tpu.memory_space<vmem>>, vector<1x128x128xf32>
    %59 = vector.shape_cast %58 : vector<1x128x128xf32> to vector<128x128xf32>
    %cst_36 = arith.constant dense<0.000000e+00> : vector<256x128xf32>
    %60 = tpu.matmul %57, %59, %cst_36 {dimension_numbers = #tpu.dot_dimension_numbers<[1], [0], [0], [1], [0, 0, 1, 1], [], []>} : vector<256x128xf32>, vector<128x128xf32>, vector<256x128xf32> -> vector<256x128xf32>
    %c0_37 = arith.constant 0 : index
    %c0_38 = arith.constant 0 : index
    %61 = vector.load %arg13[%c0_37, %c0_38] : memref<256x128xf32, #tpu.memory_space<vmem>>, vector<256x128xf32>
    %62 = arith.addf %61, %60 : vector<256x128xf32>
    %c0_39 = arith.constant 0 : index
    %c0_40 = arith.constant 0 : index
    %63 = vector.load %arg13[%c0_39, %c0_40] : memref<256x128xf32, #tpu.memory_space<vmem>>, vector<256x128xf32>
    tpu.vector_store %arg13[%c0_39, %c0_40], %62 {strides = array<i32>} : memref<256x128xf32, #tpu.memory_space<vmem>>, vector<256x128xf32>,
    %c31 = arith.constant 31 : index
    %c0_41 = arith.constant 0 : index
    %64 = vector.load %arg12[%c31, %c0_41] : memref<320x128xf32, #tpu.memory_space<vmem>>, vector<256x128xf32>
    %c1_i32_42 = arith.constant 1 : i32
    %65 = vector.broadcast %c1_i32_42 : i32 to vector<256x1xi32>
    %66 = arith.cmpi sge, %32, %65 : vector<256x1xi32>
    %cst_43 = arith.constant 0.000000e+00 : f32
    %67 = vector.broadcast %cst_43 : f32 to vector<256x128xf32>
    %68 = vector.shape_cast %66 : vector<256x1xi1> to vector<256x1xi1>
    %69 = vector.broadcast %68 : vector<256x1xi1> to vector<256x128xi1>
    %70 = arith.select %69, %64, %67 : vector<256x128xi1>, vector<256x128xf32>
    %c3 = arith.constant 3 : index
    %c0_44 = arith.constant 0 : index
    %c0_45 = arith.constant 0 : index
    %71 = vector.load %arg3[%c3, %c0_44, %c0_45] : memref<9x128x128xf32, #tpu.memory_space<vmem>>, vector<1x128x128xf32>
    %72 = vector.shape_cast %71 : vector<1x128x128xf32> to vector<128x128xf32>
    %cst_46 = arith.constant dense<0.000000e+00> : vector<256x128xf32>
    %73 = tpu.matmul %70, %72, %cst_46 {dimension_numbers = #tpu.dot_dimension_numbers<[1], [0], [0], [1], [0, 0, 1, 1], [], []>} : vector<256x128xf32>, vector<128x128xf32>, vector<256x128xf32> -> vector<256x128xf32>
    %c0_47 = arith.constant 0 : index
    %c0_48 = arith.constant 0 : index
    %74 = vector.load %arg13[%c0_47, %c0_48] : memref<256x128xf32, #tpu.memory_space<vmem>>, vector<256x128xf32>
    %75 = arith.addf %74, %73 : vector<256x128xf32>
    %c0_49 = arith.constant 0 : index
    %c0_50 = arith.constant 0 : index
    %76 = vector.load %arg13[%c0_49, %c0_50] : memref<256x128xf32, #tpu.memory_space<vmem>>, vector<256x128xf32>
    tpu.vector_store %arg13[%c0_49, %c0_50], %75 {strides = array<i32>} : memref<256x128xf32, #tpu.memory_space<vmem>>, vector<256x128xf32>,
    %c32_51 = arith.constant 32 : index
    %c0_52 = arith.constant 0 : index
    %77 = vector.load %arg12[%c32_51, %c0_52] : memref<320x128xf32, #tpu.memory_space<vmem>>, vector<256x128xf32>
    %c4 = arith.constant 4 : index
    %c0_53 = arith.constant 0 : index
    %c0_54 = arith.constant 0 : index
    %78 = vector.load %arg3[%c4, %c0_53, %c0_54] : memref<9x128x128xf32, #tpu.memory_space<vmem>>, vector<1x128x128xf32>
    %79 = vector.shape_cast %78 : vector<1x128x128xf32> to vector<128x128xf32>
    %cst_55 = arith.constant dense<0.000000e+00> : vector<256x128xf32>
    %80 = tpu.matmul %77, %79, %cst_55 {dimension_numbers = #tpu.dot_dimension_numbers<[1], [0], [0], [1], [0, 0, 1, 1], [], []>} : vector<256x128xf32>, vector<128x128xf32>, vector<256x128xf32> -> vector<256x128xf32>
    %c0_56 = arith.constant 0 : index
    %c0_57 = arith.constant 0 : index
    %81 = vector.load %arg13[%c0_56, %c0_57] : memref<256x128xf32, #tpu.memory_space<vmem>>, vector<256x128xf32>
    %82 = arith.addf %81, %80 : vector<256x128xf32>
    %c0_58 = arith.constant 0 : index
    %c0_59 = arith.constant 0 : index
    %83 = vector.load %arg13[%c0_58, %c0_59] : memref<256x128xf32, #tpu.memory_space<vmem>>, vector<256x128xf32>
    tpu.vector_store %arg13[%c0_58, %c0_59], %82 {strides = array<i32>} : memref<256x128xf32, #tpu.memory_space<vmem>>, vector<256x128xf32>,
    %c33 = arith.constant 33 : index
    %c0_60 = arith.constant 0 : index
    %84 = vector.load %arg12[%c33, %c0_60] : memref<320x128xf32, #tpu.memory_space<vmem>>, vector<256x128xf32>
    %c15_i32_61 = arith.constant 15 : i32
    %85 = vector.broadcast %c15_i32_61 : i32 to vector<256x1xi32>
    %86 = arith.cmpi slt, %32, %85 : vector<256x1xi32>
    %cst_62 = arith.constant 0.000000e+00 : f32
    %87 = vector.broadcast %cst_62 : f32 to vector<256x128xf32>
    %88 = vector.shape_cast %86 : vector<256x1xi1> to vector<256x1xi1>
    %89 = vector.broadcast %88 : vector<256x1xi1> to vector<256x128xi1>
    %90 = arith.select %89, %84, %87 : vector<256x128xi1>, vector<256x128xf32>
    %c5 = arith.constant 5 : index
    %c0_63 = arith.constant 0 : index
    %c0_64 = arith.constant 0 : index
    %91 = vector.load %arg3[%c5, %c0_63, %c0_64] : memref<9x128x128xf32, #tpu.memory_space<vmem>>, vector<1x128x128xf32>
    %92 = vector.shape_cast %91 : vector<1x128x128xf32> to vector<128x128xf32>
    %cst_65 = arith.constant dense<0.000000e+00> : vector<256x128xf32>
    %93 = tpu.matmul %90, %92, %cst_65 {dimension_numbers = #tpu.dot_dimension_numbers<[1], [0], [0], [1], [0, 0, 1, 1], [], []>} : vector<256x128xf32>, vector<128x128xf32>, vector<256x128xf32> -> vector<256x128xf32>
    %c0_66 = arith.constant 0 : index
    %c0_67 = arith.constant 0 : index
    %94 = vector.load %arg13[%c0_66, %c0_67] : memref<256x128xf32, #tpu.memory_space<vmem>>, vector<256x128xf32>
    %95 = arith.addf %94, %93 : vector<256x128xf32>
    %c0_68 = arith.constant 0 : index
    %c0_69 = arith.constant 0 : index
    %96 = vector.load %arg13[%c0_68, %c0_69] : memref<256x128xf32, #tpu.memory_space<vmem>>, vector<256x128xf32>
    tpu.vector_store %arg13[%c0_68, %c0_69], %95 {strides = array<i32>} : memref<256x128xf32, #tpu.memory_space<vmem>>, vector<256x128xf32>,
    %c47 = arith.constant 47 : index
    %c0_70 = arith.constant 0 : index
    %97 = vector.load %arg12[%c47, %c0_70] : memref<320x128xf32, #tpu.memory_space<vmem>>, vector<256x128xf32>
    %c1_i32_71 = arith.constant 1 : i32
    %98 = vector.broadcast %c1_i32_71 : i32 to vector<256x1xi32>
    %99 = arith.cmpi sge, %32, %98 : vector<256x1xi32>
    %cst_72 = arith.constant 0.000000e+00 : f32
    %100 = vector.broadcast %cst_72 : f32 to vector<256x128xf32>
    %101 = vector.shape_cast %99 : vector<256x1xi1> to vector<256x1xi1>
    %102 = vector.broadcast %101 : vector<256x1xi1> to vector<256x128xi1>
    %103 = arith.select %102, %97, %100 : vector<256x128xi1>, vector<256x128xf32>
    %c6 = arith.constant 6 : index
    %c0_73 = arith.constant 0 : index
    %c0_74 = arith.constant 0 : index
    %104 = vector.load %arg3[%c6, %c0_73, %c0_74] : memref<9x128x128xf32, #tpu.memory_space<vmem>>, vector<1x128x128xf32>
    %105 = vector.shape_cast %104 : vector<1x128x128xf32> to vector<128x128xf32>
    %cst_75 = arith.constant dense<0.000000e+00> : vector<256x128xf32>
    %106 = tpu.matmul %103, %105, %cst_75 {dimension_numbers = #tpu.dot_dimension_numbers<[1], [0], [0], [1], [0, 0, 1, 1], [], []>} : vector<256x128xf32>, vector<128x128xf32>, vector<256x128xf32> -> vector<256x128xf32>
    %c0_76 = arith.constant 0 : index
    %c0_77 = arith.constant 0 : index
    %107 = vector.load %arg13[%c0_76, %c0_77] : memref<256x128xf32, #tpu.memory_space<vmem>>, vector<256x128xf32>
    %108 = arith.addf %107, %106 : vector<256x128xf32>
    %c0_78 = arith.constant 0 : index
    %c0_79 = arith.constant 0 : index
    %109 = vector.load %arg13[%c0_78, %c0_79] : memref<256x128xf32, #tpu.memory_space<vmem>>, vector<256x128xf32>
    tpu.vector_store %arg13[%c0_78, %c0_79], %108 {strides = array<i32>} : memref<256x128xf32, #tpu.memory_space<vmem>>, vector<256x128xf32>,
    %c48 = arith.constant 48 : index
    %c0_80 = arith.constant 0 : index
    %110 = vector.load %arg12[%c48, %c0_80] : memref<320x128xf32, #tpu.memory_space<vmem>>, vector<256x128xf32>
    %c7 = arith.constant 7 : index
    %c0_81 = arith.constant 0 : index
    %c0_82 = arith.constant 0 : index
    %111 = vector.load %arg3[%c7, %c0_81, %c0_82] : memref<9x128x128xf32, #tpu.memory_space<vmem>>, vector<1x128x128xf32>
    %112 = vector.shape_cast %111 : vector<1x128x128xf32> to vector<128x128xf32>
    %cst_83 = arith.constant dense<0.000000e+00> : vector<256x128xf32>
    %113 = tpu.matmul %110, %112, %cst_83 {dimension_numbers = #tpu.dot_dimension_numbers<[1], [0], [0], [1], [0, 0, 1, 1], [], []>} : vector<256x128xf32>, vector<128x128xf32>, vector<256x128xf32> -> vector<256x128xf32>
    %c0_84 = arith.constant 0 : index
    %c0_85 = arith.constant 0 : index
    %114 = vector.load %arg13[%c0_84, %c0_85] : memref<256x128xf32, #tpu.memory_space<vmem>>, vector<256x128xf32>
    %115 = arith.addf %114, %113 : vector<256x128xf32>
    %c0_86 = arith.constant 0 : index
    %c0_87 = arith.constant 0 : index
    %116 = vector.load %arg13[%c0_86, %c0_87] : memref<256x128xf32, #tpu.memory_space<vmem>>, vector<256x128xf32>
    tpu.vector_store %arg13[%c0_86, %c0_87], %115 {strides = array<i32>} : memref<256x128xf32, #tpu.memory_space<vmem>>, vector<256x128xf32>,
    %c49 = arith.constant 49 : index
    %c0_88 = arith.constant 0 : index
    %117 = vector.load %arg12[%c49, %c0_88] : memref<320x128xf32, #tpu.memory_space<vmem>>, vector<256x128xf32>
    %c15_i32_89 = arith.constant 15 : i32
    %118 = vector.broadcast %c15_i32_89 : i32 to vector<256x1xi32>
    %119 = arith.cmpi slt, %32, %118 : vector<256x1xi32>
    %cst_90 = arith.constant 0.000000e+00 : f32
    %120 = vector.broadcast %cst_90 : f32 to vector<256x128xf32>
    %121 = vector.shape_cast %119 : vector<256x1xi1> to vector<256x1xi1>
    %122 = vector.broadcast %121 : vector<256x1xi1> to vector<256x128xi1>
    %123 = arith.select %122, %117, %120 : vector<256x128xi1>, vector<256x128xf32>
    %c8 = arith.constant 8 : index
    %c0_91 = arith.constant 0 : index
    %c0_92 = arith.constant 0 : index
    %124 = vector.load %arg3[%c8, %c0_91, %c0_92] : memref<9x128x128xf32, #tpu.memory_space<vmem>>, vector<1x128x128xf32>
    %125 = vector.shape_cast %124 : vector<1x128x128xf32> to vector<128x128xf32>
    %cst_93 = arith.constant dense<0.000000e+00> : vector<256x128xf32>
    %126 = tpu.matmul %123, %125, %cst_93 {dimension_numbers = #tpu.dot_dimension_numbers<[1], [0], [0], [1], [0, 0, 1, 1], [], []>} : vector<256x128xf32>, vector<128x128xf32>, vector<256x128xf32> -> vector<256x128xf32>
    %c0_94 = arith.constant 0 : index
    %c0_95 = arith.constant 0 : index
    %127 = vector.load %arg13[%c0_94, %c0_95] : memref<256x128xf32, #tpu.memory_space<vmem>>, vector<256x128xf32>
    %128 = arith.addf %127, %126 : vector<256x128xf32>
    %c0_96 = arith.constant 0 : index
    %c0_97 = arith.constant 0 : index
    %129 = vector.load %arg13[%c0_96, %c0_97] : memref<256x128xf32, #tpu.memory_space<vmem>>, vector<256x128xf32>
    tpu.vector_store %arg13[%c0_96, %c0_97], %128 {strides = array<i32>} : memref<256x128xf32, #tpu.memory_space<vmem>>, vector<256x128xf32>,
    %c0_98 = arith.constant 0 : index
    %c0_99 = arith.constant 0 : index
    %130 = vector.load %arg13[%c0_98, %c0_99] : memref<256x128xf32, #tpu.memory_space<vmem>>, vector<256x128xf32>
    %c0_100 = arith.constant 0 : index
    %c0_101 = arith.constant 0 : index
    %131 = vector.load %arg7[%c0_100, %c0_101] : memref<1x128xf32, #tpu.memory_space<vmem>>, vector<1x128xf32>
    %132 = vector.broadcast %131 : vector<1x128xf32> to vector<256x128xf32>
    %133 = arith.mulf %130, %132 : vector<256x128xf32>
    %c0_102 = arith.constant 0 : index
    %c0_103 = arith.constant 0 : index
    %134 = vector.load %arg8[%c0_102, %c0_103] : memref<1x128xf32, #tpu.memory_space<vmem>>, vector<1x128xf32>
    %135 = vector.broadcast %134 : vector<1x128xf32> to vector<256x128xf32>
    %136 = arith.addf %133, %135 : vector<256x128xf32>
    %cst_104 = arith.constant 0.000000e+00 : f32
    %137 = vector.broadcast %cst_104 : f32 to vector<256x128xf32>
    %138 = arith.maximumf %136, %137 : vector<256x128xf32>
    %c0_105 = arith.constant 0 : index
    %c0_106 = arith.constant 0 : index
    %139 = vector.load %arg4[%c0_105, %c0_106] : memref<128x16xf32, #tpu.memory_space<vmem>>, vector<128x16xf32>
    %cst_107 = arith.constant dense<0.000000e+00> : vector<256x16xf32>
    %140 = tpu.matmul %138, %139, %cst_107 {dimension_numbers = #tpu.dot_dimension_numbers<[1], [0], [0], [1], [0, 0, 1, 1], [], []>} : vector<256x128xf32>, vector<128x16xf32>, vector<256x16xf32> -> vector<256x16xf32>
    %c0_108 = arith.constant 0 : index
    %c0_109 = arith.constant 0 : index
    %141 = vector.load %arg9[%c0_108, %c0_109] : memref<1x16xf32, #tpu.memory_space<vmem>>, vector<1x16xf32>
    %142 = vector.broadcast %141 : vector<1x16xf32> to vector<256x16xf32>
    %143 = arith.mulf %140, %142 : vector<256x16xf32>
    %c0_110 = arith.constant 0 : index
    %c0_111 = arith.constant 0 : index
    %144 = vector.load %arg10[%c0_110, %c0_111] : memref<1x16xf32, #tpu.memory_space<vmem>>, vector<1x16xf32>
    %145 = vector.broadcast %144 : vector<1x16xf32> to vector<256x16xf32>
    %146 = arith.addf %143, %145 : vector<256x16xf32>
    %147 = arith.addf %146, %4 : vector<256x16xf32>
    %cst_112 = arith.constant 0.000000e+00 : f32
    %148 = vector.broadcast %cst_112 : f32 to vector<256x16xf32>
    %149 = arith.maximumf %147, %148 : vector<256x16xf32>
    %c0_113 = arith.constant 0 : index
    %c0_114 = arith.constant 0 : index
    %c0_115 = arith.constant 0 : index
    %150 = vector.load %arg11[%c0_113, %c0_114, %c0_115] : memref<1x256x16xf32, #tpu.memory_space<vmem>>, vector<1x256x16xf32>
    %151 = vector.shape_cast %150 : vector<1x256x16xf32> to vector<256x16xf32>
    %152 = vector.shape_cast %149 : vector<256x16xf32> to vector<1x256x16xf32>
    tpu.vector_store %arg11[%c0_113, %c0_114, %c0_115], %152 {strides = array<i32>} : memref<1x256x16xf32, #tpu.memory_space<vmem>>, vector<1x256x16xf32>,
    return
  }
  func.func @transform_0(%arg0: i32) -> (i32, i32, i32) {
    %c0_i32 = arith.constant 0 : i32
    %c0_i32_0 = arith.constant 0 : i32
    %c0_i32_1 = arith.constant 0 : i32
    return %arg0, %c0_i32, %c0_i32_0 : i32, i32, i32
  }
  func.func @transform_1(%arg0: i32) -> (i32, i32) {
    %c0_i32 = arith.constant 0 : i32
    %c0_i32_0 = arith.constant 0 : i32
    %c0_i32_1 = arith.constant 0 : i32
    return %c0_i32, %c0_i32_0 : i32, i32
  }
  func.func @transform_2(%arg0: i32) -> (i32, i32, i32) {
    %c0_i32 = arith.constant 0 : i32
    %c0_i32_0 = arith.constant 0 : i32
    %c0_i32_1 = arith.constant 0 : i32
    %c0_i32_2 = arith.constant 0 : i32
    return %c0_i32, %c0_i32_0, %c0_i32_1 : i32, i32, i32
  }
  func.func @transform_3(%arg0: i32) -> (i32, i32) {
    %c0_i32 = arith.constant 0 : i32
    %c0_i32_0 = arith.constant 0 : i32
    %c0_i32_1 = arith.constant 0 : i32
    return %c0_i32, %c0_i32_0 : i32, i32
  }
  func.func @transform_4(%arg0: i32) -> (i32, i32) {
    %c0_i32 = arith.constant 0 : i32
    %c0_i32_0 = arith.constant 0 : i32
    %c0_i32_1 = arith.constant 0 : i32
    return %c0_i32, %c0_i32_0 : i32, i32
  }
  func.func @transform_5(%arg0: i32) -> (i32, i32) {
    %c0_i32 = arith.constant 0 : i32
    %c0_i32_0 = arith.constant 0 : i32
    %c0_i32_1 = arith.constant 0 : i32
    return %c0_i32, %c0_i32_0 : i32, i32
  }
  func.func @transform_6(%arg0: i32) -> (i32, i32) {
    %c0_i32 = arith.constant 0 : i32
    %c0_i32_0 = arith.constant 0 : i32
    %c0_i32_1 = arith.constant 0 : i32
    return %c0_i32, %c0_i32_0 : i32, i32
  }
  func.func @transform_7(%arg0: i32) -> (i32, i32) {
    %c0_i32 = arith.constant 0 : i32
    %c0_i32_0 = arith.constant 0 : i32
    %c0_i32_1 = arith.constant 0 : i32
    return %c0_i32, %c0_i32_0 : i32, i32
  }
  func.func @transform_8(%arg0: i32) -> (i32, i32) {
    %c0_i32 = arith.constant 0 : i32
    %c0_i32_0 = arith.constant 0 : i32
    %c0_i32_1 = arith.constant 0 : i32
    return %c0_i32, %c0_i32_0 : i32, i32
  }
  func.func @transform_9(%arg0: i32) -> (i32, i32) {
    %c0_i32 = arith.constant 0 : i32
    %c0_i32_0 = arith.constant 0 : i32
    %c0_i32_1 = arith.constant 0 : i32
    return %c0_i32, %c0_i32_0 : i32, i32
  }
  func.func @transform_10(%arg0: i32) -> (i32, i32, i32) {
    %c0_i32 = arith.constant 0 : i32
    %c0_i32_0 = arith.constant 0 : i32
    %c0_i32_1 = arith.constant 0 : i32
    return %arg0, %c0_i32, %c0_i32_0 : i32, i32, i32
  }
}

</mosaic_0001>

<bundles_post_ra>
// kernel: bottleneck_forward.1
= control target key start
LH: loop header
LB: loop body
LE: loop exit
PB: predicated region body
PF: predicated region fallthrough
CT: control target
= control target key end

     0   :  { %s7861_s13 = smov 0   ;;  %s9712_s0 = inlined_call_operand.vmem [shape: f32[2,256,16], index: 0, kind: input, shape index: {}, may-alias: {0,10}]   ;;  %s9713_s1 = inlined_call_operand.vmem [shape: f32[16,128], index: 1, kind: input, shape index: {}]   ;;  %s9714_s2 = inlined_call_operand.vmem [shape: f32[9,128,128], index: 2, kind: input, shape index: {}]   ;;  %s9715_s3 = inlined_call_operand.vmem [shape: f32[128,16], index: 3, kind: input, shape index: {}]   ;;  %s9716_s4 = inlined_call_operand.vmem [shape: f32[1,128], index: 4, kind: input, shape index: {}]   ;;  %s9717_s5 = inlined_call_operand.vmem [shape: f32[1,128], index: 5, kind: input, shape index: {}]   ;;  %s9718_s6 = inlined_call_operand.vmem [shape: f32[1,128], index: 6, kind: input, shape index: {}]   ;;  %s9719_s7 = inlined_call_operand.vmem [shape: f32[1,128], index: 7, kind: input, shape index: {}]   ;;  %s9720_s8 = inlined_call_operand.vmem [shape: f32[1,16], index: 8, kind: input, shape index: {}]   ;;  %s9721_s9 = inlined_call_operand.vmem [shape: f32[1,16], index: 9, kind: input, shape index: {}]   ;;  %s9722_s10 = inlined_call_operand.vmem [shape: f32[2,256,16], index: 10, kind: output, shape index: {}, may-alias: {0,10}]  }
   0x1 LB: > { %s5548_s14 = sadd.s32 4294967295, %s7803_s13   ;;  %p5552_p0 = scmp.ge.s32.totalorder %s7803_s13, 1  ;;  %s7803_s13 = sphi %s7861_s13, %s20_s13  }
   0x2   : > { %p312_p1 = scmp.lt.s32.totalorder %s7803_s13, 3 }
   0x4   : > { %p313_p2 = pnand %p5552_p0, %p312_p1 }
   0x6   : > { %316 = sbr.rel (%p313_p2) target bundleno = 1038 (0x40e), region = 60 }
   0xd   : > { %p350_p3 = scmp.lt.s32.totalorder %s5548_s14, 1  ;;  %p5557_p4 = scmp.ne.s32.totalorder %s5548_s14, 0 }
   0xe   : > { %v7805_v0 = vmov (!%p5557_p4), 0.0  }
   0xf   : > { %s351_s15 = scalar_select %p350_p3, %s5548_s14, 1 }
  0x10   : > { %363 = sbr.rel (%p5557_p4) target bundleno = 23 (0x17), region = 64  ;;  %365 = vst [vmem:[#allocation2 + $0x8] sm:$0xff] (!%p5557_p4), %v7805_v0  ;;  %366 = vst [vmem:[#allocation2 + $0x10] sm:$0xff] (!%p5557_p4), %v7805_v0 }
  0x11   : > { %s5822_s16 = sshll.u32 %s351_s15, 8  ;;  %367 = vst [vmem:[#allocation2 + $0x18] sm:$0xff] (!%p5557_p4), %v7805_v0  ;;  %368 = vst [vmem:[#allocation2 + $0x120] sm:$0xff] (!%p5557_p4), %v7805_v0 }
  0x12   : > { %s7872_s19 = scalar_lea.vmem %s9712_s0, %s5822_s16  ;;  %s7877_s22 = scalar_lea.vmem %s9722_s10, %s5822_s16  ;;  %369 = vst [vmem:[#allocation2 + $0x128] sm:$0xff] (!%p5557_p4), %v7805_v0  ;;  %370 = vst [vmem:[#allocation2 + $0x130] sm:$0xff] (!%p5557_p4), %v7805_v0 }
  0x17 PF: > { %v404_v1 = vld [vmem:[%s9713_s1] sm:$0xff]  ;;  %v405_v2 = vld [vmem:[%s9713_s1 + $0x8] sm:$0xff]  ;;  %vm9750_vm0 = vcmask 130048   ;;  %v7889_v6 = vld [vmem:[%s7872_s19 + $0x10] sm:$0xff] }
  0x18   : > { %v372_v3 = vld [vmem:[%s7872_s19] sm:$0xff]  ;;  %v7190_v4 = vpack.c.bf16 %v405_v2, %v404_v1  ;;  %v373_v5 = vld [vmem:[%s7872_s19 + $0x8] sm:$0xff]  ;;  %9789 = vst [vmem:[#allocation4_spill] sm:$0xff] %v7889_v6  ;;  %v7895_v7 = vld [vmem:[%s7872_s19 + $0x18] sm:$0xff] }
  0x19   : > { %6342 = vmatprep.mubr.msk.f32.mxu0 %vm9750_vm0, %v372_v3  ;;  %9790 = vst [vmem:[#allocation5_spill] sm:$0xff] %v7895_v7  ;;  %v7898_v8 = vld [vmem:[%s7872_s19 + $0x20] sm:$0xff]  ;;  %v7901_v9 = vld [vmem:[%s7872_s19 + $0x28] sm:$0xff]  ;;  %v7906_v10 = vld [vmem:[%s7872_s19 + $0x30] sm:$0xff] }
  0x1a   : > { %7191 = vmatprep.subr.bf16.mxu0 %v7190_v4  ;;  %9791 = vst [vmem:[#allocation6_spill] sm:$0xff] %v7898_v8  ;;  %9792 = vst [vmem:[#allocation7_spill] sm:$0xff] %v7901_v9  ;;  %v1447_v11 = vld [vmem:[%s9714_s2] sm:$0xff]  ;;  %v1448_v12 = vld [vmem:[%s9714_s2 + $0x8] sm:$0xff] }
  0x1b   : > { %7193 = vmatpush3.bf16.msra.mxu0 %v7190_v4  ;;  %9793 = vst [vmem:[#allocation8_spill] sm:$0xff] %v7906_v10  ;;  %v7194_v13 = vpack.c.bf16 %v1448_v12, %v1447_v11  ;;  %v5656_v14 = vld [vmem:[%s9714_s2 + $0x180] sm:$0xff]  ;;  %v5657_v15 = vld [vmem:[%s9714_s2 + $0x188] sm:$0xff]  ;;  %v1449_v16 = vld [vmem:[%s9714_s2 + $0x10] sm:$0xff] }
  0x1c   : > { %v7290_v17 = vpack.c.bf16 %v5657_v15, %v5656_v14  ;;  %v1450_v18 = vld [vmem:[%s9714_s2 + $0x18] sm:$0xff]  ;;  %v5658_v19 = vld [vmem:[%s9714_s2 + $0x190] sm:$0xff]  ;;  %v1451_v23 = vld [vmem:[%s9714_s2 + $0x20] sm:$0xff] }
  0x1d   : > { %v5659_v20 = vld [vmem:[%s9714_s2 + $0x198] sm:$0xff]  ;;  %7195 = vmatprep.subr.bf16.mxu0 %v7194_v13  ;;  %v7198_v21 = vpack.c.bf16 %v1450_v18, %v1449_v16  ;;  %v1452_v24 = vld [vmem:[%s9714_s2 + $0x28] sm:$0xff]  ;;  %v5660_v25 = vld [vmem:[%s9714_s2 + $0x1a0] sm:$0xff]  ;;  %v870_v16 = vlaneseq }
  0x1e   : > { %6343 = vmatmul.mubr.msk.f32.vlgmr.msra.gmra.mrb[0].mxu0 %vm9750_vm0, %v373_v5  ;;  %v7294_v22 = vpack.c.bf16 %v5659_v20, %v5658_v19  ;;  %7291 = vmatprep.subr.bf16.mxu1 %v7290_v17  ;;  %v5661_v26 = vld [vmem:[%s9714_s2 + $0x1a8] sm:$0xff]  ;;  %v7951_v27 = vld [vmem:[%s7872_s19 + $0x38] sm:$0xff]  ;;  %v7954_v28 = vld [vmem:[%s7872_s19 + $0x40] sm:$0xff]  ;;  %v7202_v29 = vpack.c.bf16 %v1452_v24, %v1451_v23 }
  0x1f   : > { %6345 = vmatprep.mubr.msk.f32.mxu0 %vm9750_vm0, %v7889_v6  ;;  %9794 = vst [vmem:[#allocation9_spill] sm:$0xff] %v7951_v27  ;;  %7197 = vmatpush3.bf16.msra.mxu0 %v7194_v13  ;;  %9795 = vst [vmem:[#allocation10_spill] sm:$0xff] %v7954_v28  ;;  %v7298_v30 = vpack.c.bf16 %v5661_v26, %v5660_v25  ;;  %v1453_v31 = vld [vmem:[%s9714_s2 + $0x30] sm:$0xff]  ;;  %v1454_v32 = vld [vmem:[%s9714_s2 + $0x38] sm:$0xff] }
  0x20   : > { %7199 = vmatprep.subr.bf16.mxu0 %v7198_v21  ;;  %7293 = vmatpush3.bf16.msra.mxu1 %v7290_v17  ;;  %v5662_v33 = vld [vmem:[%s9714_s2 + $0x1b0] sm:$0xff]  ;;  %v5663_v34 = vld [vmem:[%s9714_s2 + $0x1b8] sm:$0xff]  ;;  %v7973_v35 = vld [vmem:[%s7872_s19 + $0x48] sm:$0xff]  ;;  %v7206_v37 = vpack.c.bf16 %v1454_v32, %v1453_v31 }
  0x21   : > { %7295 = vmatprep.subr.bf16.mxu1 %v7294_v22  ;;  %9796 = vst [vmem:[#allocation11_spill] sm:$0xff] %v7973_v35  ;;  %v7976_v36 = vld [vmem:[%s7872_s19 + $0x50] sm:$0xff]  ;;  %v7302_v38 = vpack.c.bf16 %v5663_v34, %v5662_v33  ;;  %v1455_v39 = vld [vmem:[%s9714_s2 + $0x40] sm:$0xff]  ;;  %v1456_v40 = vld [vmem:[%s9714_s2 + $0x48] sm:$0xff] }
  0x22   : > { %6346 = vmatmul.mubr.msk.f32.gmra.mrb[2].mxu0 %vm9750_vm0, %v7895_v7  ;;  %9797 = vst [vmem:[#allocation12_spill] sm:$0xff] %v7976_v36  ;;  %v7989_v41 = vld [vmem:[%s7872_s19 + $0x58] sm:$0xff]  ;;  %v7992_v42 = vld [vmem:[%s7872_s19 + $0x60] sm:$0xff]  ;;  %v7210_v43 = vpack.c.bf16 %v1456_v40, %v1455_v39  ;;  %v7999_v44 = vld [vmem:[%s7872_s19 + $0x68] sm:$0xff] }
  0x23   : > { %6348 = vmatprep.mubr.msk.f32.mxu0 %vm9750_vm0, %v7898_v8  ;;  %7201 = vmatpush3.bf16.msra.mxu0 %v7198_v21  ;;  %9798 = vst [vmem:[#allocation13_spill] sm:$0xff] %v7989_v41  ;;  %9799 = vst [vmem:[#allocation14_spill] sm:$0xff] %v7992_v42  ;;  %v8002_v45 = vld [vmem:[%s7872_s19 + $0x70] sm:$0xff]  ;;  %v8009_v46 = vld [vmem:[%s7872_s19 + $0x78] sm:$0xff] }
  0x24   : > { %7203 = vmatprep.subr.bf16.mxu0 %v7202_v29  ;;  %7297 = vmatpush3.bf16.msra.mxu1 %v7294_v22  ;;  %9800 = vst [vmem:[#allocation15_spill] sm:$0xff] %v7999_v44  ;;  %9801 = vst [vmem:[#allocation16_spill] sm:$0xff] %v8002_v45  ;;  %v8012_v47 = vld [vmem:[%s7872_s19 + $0x80] sm:$0xff]  ;;  %v8019_v48 = vld [vmem:[%s7872_s19 + $0x88] sm:$0xff]  ;;  %v8129_v22 = vshrl.u32 %v870_v16, 7 }
  0x25   : > { %7299 = vmatprep.subr.bf16.mxu1 %v7298_v30  ;;  %9802 = vst [vmem:[#allocation17_spill] sm:$0xff] %v8009_v46  ;;  %9803 = vst [vmem:[#allocation18_spill] sm:$0xff] %v8012_v47  ;;  %v8022_v49 = vld [vmem:[%s7872_s19 + $0x90] sm:$0xff]  ;;  %v8029_v50 = vld [vmem:[%s7872_s19 + $0x98] sm:$0xff] }
  0x26   : > { %6349 = vmatmul.mubr.msk.f32.gmra.mrb[4].mxu0 %vm9750_vm0, %v7901_v9  ;;  %9804 = vst [vmem:[#allocation19_spill] sm:$0xff] %v8019_v48  ;;  %9805 = vst [vmem:[#allocation20_spill] sm:$0xff] %v8022_v49  ;;  %v8032_v51 = vld [vmem:[%s7872_s19 + $0xa0] sm:$0xff]  ;;  %v8039_v52 = vld [vmem:[%s7872_s19 + $0xa8] sm:$0xff]  ;;  %v907_v24 = vand.u32 15, %v8129_v22  ;;  %v900_v7 = vadd.s32 232, %v8129_v22 }
  0x27   : > { %6351 = vmatprep.mubr.msk.f32.mxu0 %vm9750_vm0, %v7906_v10  ;;  %7205 = vmatpush3.bf16.msra.mxu0 %v7202_v29  ;;  %9806 = vst [vmem:[#allocation21_spill] sm:$0xff] %v8029_v50  ;;  %9807 = vst [vmem:[#allocation22_spill] sm:$0xff] %v8032_v51  ;;  %v8042_v53 = vld [vmem:[%s7872_s19 + $0xb0] sm:$0xff]  ;;  %v8049_v54 = vld [vmem:[%s7872_s19 + $0xb8] sm:$0xff] }
  0x28   : > { %7207 = vmatprep.subr.bf16.mxu0 %v7206_v37  ;;  %7301 = vmatpush3.bf16.msra.mxu1 %v7298_v30  ;;  %9808 = vst [vmem:[#allocation23_spill] sm:$0xff] %v8039_v52  ;;  %9809 = vst [vmem:[#allocation24_spill] sm:$0xff] %v8042_v53  ;;  %v8052_v55 = vld [vmem:[%s7872_s19 + $0xc0] sm:$0xff]  ;;  %v8059_v56 = vld [vmem:[%s7872_s19 + $0xc8] sm:$0xff]  ;;  %vm8138_vm1 = vcmp.ge.s32.totalorder %v907_v24, 1 }
  0x29   : > { %7303 = vmatprep.subr.bf16.mxu1 %v7302_v38  ;;  %9810 = vst [vmem:[#allocation25_spill] sm:$0xff] %v8049_v54  ;;  %9811 = vst [vmem:[#allocation26_spill] sm:$0xff] %v8052_v55  ;;  %v8062_v57 = vld [vmem:[%s7872_s19 + $0xd0] sm:$0xff]  ;;  %v8069_v58 = vld [vmem:[%s7872_s19 + $0xd8] sm:$0xff] }
  0x2a   : > { %6352 = vmatmul.mubr.msk.f32.gmra.mrb[6].mxu0 %vm9750_vm0, %v7951_v27  ;;  %9812 = vst [vmem:[#allocation27_spill] sm:$0xff] %v8059_v56  ;;  %9813 = vst [vmem:[#allocation28_spill] sm:$0xff] %v8062_v57  ;;  %v8072_v59 = vld [vmem:[%s7872_s19 + $0xe0] sm:$0xff]  ;;  %v8079_v60 = vld [vmem:[%s7872_s19 + $0xe8] sm:$0xff] }
  0x2b   : > { %6354 = vmatprep.mubr.msk.f32.mxu0 %vm9750_vm0, %v7954_v28  ;;  %7209 = vmatpush3.bf16.msra.mxu0 %v7206_v37  ;;  %9814 = vst [vmem:[#allocation29_spill] sm:$0xff] %v8069_v58  ;;  %9815 = vst [vmem:[#allocation30_spill] sm:$0xff] %v8072_v59  ;;  %v8082_v61 = vld [vmem:[%s7872_s19 + $0xf0] sm:$0xff]  ;;  %v8089_v62 = vld [vmem:[%s7872_s19 + $0xf8] sm:$0xff] }
  0x2c   : > { %7211 = vmatprep.subr.bf16.mxu0 %v7210_v43  ;;  %7305 = vmatpush3.bf16.msra.mxu1 %v7302_v38  ;;  %9816 = vst [vmem:[#allocation31_spill] sm:$0xff] %v8079_v60  ;;  %9817 = vst [vmem:[#allocation32_spill] sm:$0xff] %v8082_v61  ;;  %v5664_v63 = vld [vmem:[%s9714_s2 + $0x1c0] sm:$0xff]  ;;  %v5665_v0 = vld [vmem:[%s9714_s2 + $0x1c8] sm:$0xff] }
  0x2d   : > { %9818 = vst [vmem:[#allocation33_spill] sm:$0xff] %v8089_v62  ;;  %v1457_v1 = vld [vmem:[%s9714_s2 + $0x50] sm:$0xff]  ;;  %v7306_v2 = vpack.c.bf16 %v5665_v0, %v5664_v63  ;;  %v1458_v3 = vld [vmem:[%s9714_s2 + $0x58] sm:$0xff]  ;;  %v1459_v12 = vld [vmem:[%s9714_s2 + $0x60] sm:$0xff] }
  0x2e   : > { %6355 = vmatmul.mubr.msk.f32.gmra.mrb[8].mxu0 %vm9750_vm0, %v7973_v35  ;;  %v7214_v4 = vpack.c.bf16 %v1458_v3, %v1457_v1  ;;  %v5666_v5 = vld [vmem:[%s9714_s2 + $0x1d0] sm:$0xff]  ;;  %v5667_v11 = vld [vmem:[%s9714_s2 + $0x1d8] sm:$0xff]  ;;  %v1460_v14 = vld [vmem:[%s9714_s2 + $0x68] sm:$0xff] }
  0x2f   : > { %6357 = vmatprep.mubr.msk.f32.mxu0 %vm9750_vm0, %v7976_v36  ;;  %7213 = vmatpush3.bf16.msra.mxu0 %v7210_v43  ;;  %v7310_v13 = vpack.c.bf16 %v5667_v11, %v5666_v5  ;;  %v7218_v15 = vpack.c.bf16 %v1460_v14, %v1459_v12  ;;  %v5668_v17 = vld [vmem:[%s9714_s2 + $0x1e0] sm:$0xff]  ;;  %v5669_v18 = vld [vmem:[%s9714_s2 + $0x1e8] sm:$0xff]  ;;  %v1461_v19 = vld [vmem:[%s9714_s2 + $0x70] sm:$0xff] }
  0x30   : > { %7307 = vmatprep.subr.bf16.mxu1 %v7306_v2  ;;  %7215 = vmatprep.subr.bf16.mxu0 %v7214_v4  ;;  %v7314_v20 = vpack.c.bf16 %v5669_v18, %v5668_v17  ;;  %v1462_v21 = vld [vmem:[%s9714_s2 + $0x78] sm:$0xff]  ;;  %v5670_v25 = vld [vmem:[%s9714_s2 + $0x1f0] sm:$0xff]  ;;  %v5688_v33 = vld [vmem:[%s9714_s2 + $0x200] sm:$0xff] }
  0x31   : > { %7309 = vmatpush3.bf16.msra.mxu1 %v7306_v2  ;;  %v7222_v23 = vpack.c.bf16 %v1462_v21, %v1461_v19  ;;  %v5671_v26 = vld [vmem:[%s9714_s2 + $0x1f8] sm:$0xff]  ;;  %v1287_v29 = vld [vmem:[#allocation2 + $0xf] sm:$0xff]  ;;  %v5608_v38 = vld [vmem:[%s9714_s2 + $0x80] sm:$0xff] }
  0x32   : > { %6358 = vmatmul.mubr.msk.f32.gmra.mrb[10].mxu0 %vm9750_vm0, %v7989_v41  ;;  %7311 = vmatprep.subr.bf16.mxu1 %v7310_v13  ;;  %v7318_v31 = vpack.c.bf16 %v5671_v26, %v5670_v25  ;;  %v1288_v32 = vld [vmem:[#allocation2 + $0x17] sm:$0xff]  ;;  %v5689_v34 = vld [vmem:[%s9714_s2 + $0x208] sm:$0xff]  ;;  %v5612_v1 = vld [vmem:[%s9714_s2 + $0xa0] sm:$0xff] }
  0x33   : > { %6360 = vmatprep.mubr.msk.f32.mxu0 %vm9750_vm0, %v7992_v42  ;;  %7217 = vmatpush3.bf16.msra.mxu0 %v7214_v4  ;;  %v8150_v37 = vpack.c.bf16 %v5689_v34, %v5688_v33  ;;  %v5609_v39 = vld [vmem:[%s9714_s2 + $0x88] sm:$0xff]  ;;  %v5610_v43 = vld [vmem:[%s9714_s2 + $0x90] sm:$0xff]  ;;  %v5611_v63 = vld [vmem:[%s9714_s2 + $0x98] sm:$0xff] }
  0x34   : > { %7219 = vmatprep.subr.bf16.mxu0 %v7218_v15  ;;  %v7226_v40 = vpack.c.bf16 %v5609_v39, %v5608_v38  ;;  %v7230_v0 = vpack.c.bf16 %v5611_v63, %v5610_v43  ;;  %v5613_v2 = vld [vmem:[%s9714_s2 + $0xa8] sm:$0xff]  ;;  %v5614_v4 = vld [vmem:[%s9714_s2 + $0xb0] sm:$0xff]  ;;  %v5615_v5 = vld [vmem:[%s9714_s2 + $0xb8] sm:$0xff] }
  0x35   : > { %7313 = vmatpush3.bf16.msra.mxu1 %v7310_v13  ;;  %v7234_v3 = vpack.c.bf16 %v5613_v2, %v5612_v1  ;;  %v7238_v11 = vpack.c.bf16 %v5615_v5, %v5614_v4  ;;  %v5616_v12 = vld [vmem:[%s9714_s2 + $0xc0] sm:$0xff]  ;;  %v5617_v13 = vld [vmem:[%s9714_s2 + $0xc8] sm:$0xff]  ;;  %v5619_v16 = vld [vmem:[%s9714_s2 + $0xd8] sm:$0xff] }
  0x36   : > { %6361 = vmatmul.mubr.msk.f32.gmra.mrb[12].mxu0 %vm9750_vm0, %v7999_v44  ;;  %7315 = vmatprep.subr.bf16.mxu1 %v7314_v20  ;;  %v7242_v14 = vpack.c.bf16 %v5617_v13, %v5616_v12  ;;  %v5620_v18 = vld [vmem:[%s9714_s2 + $0xe0] sm:$0xff]  ;;  %v5621_v19 = vld [vmem:[%s9714_s2 + $0xe8] sm:$0xff]  ;;  %v5622_v21 = vld [vmem:[%s9714_s2 + $0xf0] sm:$0xff] }
  0x37   : > { %6363 = vmatprep.mubr.msk.f32.mxu0 %vm9750_vm0, %v8002_v45  ;;  %7221 = vmatpush3.bf16.msra.mxu0 %v7218_v15  ;;  %v5618_v15 = vld [vmem:[%s9714_s2 + $0xd0] sm:$0xff]  ;;  %v5624_v25 = vld [vmem:[%s9714_s2 + $0x100] sm:$0xff]  ;;  %v5625_v26 = vld [vmem:[%s9714_s2 + $0x108] sm:$0xff] }
  0x38   : > { %7223 = vmatprep.subr.bf16.mxu0 %v7222_v23  ;;  %v7246_v17 = vpack.c.bf16 %v5619_v16, %v5618_v15  ;;  %v8218_v33 = vld [vmem:[%s9717_s5] ss:$0 sm:$0xff] }
  0x39   : > { %7317 = vmatpush3.bf16.msra.mxu1 %v7314_v20  ;;  %v7250_v20 = vpack.c.bf16 %v5621_v19, %v5620_v18  ;;  %v875_v18 = vadd.s32 32, %v8129_v22 }
  0x3a   : > { %6364 = vmatmul.mubr.msk.f32.gmra.mrb[14].mxu0 %vm9750_vm0, %v8009_v46  ;;  %7319 = vmatprep.subr.bf16.mxu1 %v7318_v31 }
  0x3b   : > { %6366 = vmatprep.mubr.msk.f32.mxu0 %vm9750_vm0, %v8012_v47  ;;  %7225 = vmatpush3.bf16.msra.mxu0 %v7222_v23  ;;  %v5623_v23 = vld [vmem:[%s9714_s2 + $0xf8] sm:$0xff] }
  0x3c   : > { %7227 = vmatprep.subr.bf16.mxu0 %v7226_v40  ;;  %v7254_v24 = vpack.c.bf16 %v5623_v23, %v5622_v21 }
  0x3d   : > { %7321 = vmatpush3.bf16.msra.mxu1 %v7318_v31  ;;  %v8213_v31 = vld [vmem:[%s9716_s4] ss:$0 sm:$0xff] }
  0x3e   : > { %6367 = vmatmul.mubr.msk.f32.gmra.mrb[16].mxu0 %vm9750_vm0, %v8019_v48  ;;  %7323 = vmatprep.subr.bf16.mxu1 %v8150_v37 }
  0x3f   : > { %6369 = vmatprep.mubr.msk.f32.mxu0 %vm9750_vm0, %v8022_v49 }
  0x42   : > { %6370 = vmatmul.mubr.msk.f32.gmra.mrb[18].mxu0 %vm9750_vm0, %v8029_v50 }
  0x43   : > { %6372 = vmatprep.mubr.msk.f32.mxu0 %vm9750_vm0, %v8032_v51 }
  0x46   : > { %6373 = vmatmul.mubr.msk.f32.gmra.mrb[20].mxu0 %vm9750_vm0, %v8039_v52 }
  0x47   : > { %6375 = vmatprep.mubr.msk.f32.mxu0 %vm9750_vm0, %v8042_v53 }
  0x4a   : > { %6376 = vmatmul.mubr.msk.f32.gmra.mrb[22].mxu0 %vm9750_vm0, %v8049_v54 }
  0x4b   : > { %6378 = vmatprep.mubr.msk.f32.mxu0 %vm9750_vm0, %v8052_v55 }
  0x4e   : > { %6379 = vmatmul.mubr.msk.f32.gmra.mrb[24].mxu0 %vm9750_vm0, %v8059_v56 }
  0x4f   : > { %6381 = vmatprep.mubr.msk.f32.mxu0 %vm9750_vm0, %v8062_v57 }
  0x52   : > { %6382 = vmatmul.mubr.msk.f32.gmra.mrb[26].mxu0 %vm9750_vm0, %v8069_v58 }
  0x53   : > { %6384 = vmatprep.mubr.msk.f32.mxu0 %vm9750_vm0, %v8072_v59 }
  0x56   : > { %6385 = vmatmul.mubr.msk.f32.gmra.mrb[28].mxu0 %vm9750_vm0, %v8079_v60 }
  0x57   : > { %6387 = vmatprep.mubr.msk.f32.mxu0 %vm9750_vm0, %v8082_v61 }
  0x5a   : > { %6388 = vmatmul.mubr.msk.f32.gmra.mrb[30].mxu0 %vm9750_vm0, %v8089_v62 }
  0x5b   : > { %6422 = vmatprep.mubr.msk.f32.mxu0 %vm8138_vm1, %v1287_v29  ;;  %v8207_v29 = vpack.c.bf16 %v5625_v26, %v5624_v25  ;;  %v5690_v26 = vld [vmem:[%s9714_s2 + $0x210] sm:$0xff]  ;;  %v5775_v25 = vld [vmem:[%s9714_s2 + $0x3b8] sm:$0xff] }
  0x5e   : > { %6423 = vmatmul.mubr.f32.vlgmr.msra.gmra.mrb[32].mxu0 %v1288_v32 }
  0x5f   : > { %7229 = vmatpush3.bf16.msra.mxu0 %v7226_v40 }
  0x60   : > { %7231 = vmatprep.subr.bf16.mxu0 %v7230_v0 }
  0x63   : > { %7233 = vmatpush3.bf16.msra.mxu0 %v7230_v0  ;;  %v873_v0 = vadd.s32 16, %v8129_v22 }
  0x64   : > { %7235 = vmatprep.subr.bf16.mxu0 %v7234_v3 }
  0x67   : > { %7237 = vmatpush3.bf16.msra.mxu0 %v7234_v3 }
  0x68   : > { %7239 = vmatprep.subr.bf16.mxu0 %v7238_v11 }
  0x6b   : > { %7241 = vmatpush3.bf16.msra.mxu0 %v7238_v11 }
  0x6c   : > { %7243 = vmatprep.subr.bf16.mxu0 %v7242_v14 }
  0x6f   : > { %7245 = vmatpush3.bf16.msra.mxu0 %v7242_v14  ;;  %v921_v14 = vand.u32 15, %v873_v0 }
  0x70   : > { %7247 = vmatprep.subr.bf16.mxu0 %v7246_v17 }
  0x71   : > { %vm8246_vm2 = vcmp.ge.s32.totalorder %v921_v14, 1  ;;  %v879_v14 = vadd.s32 64, %v8129_v22 }
  0x73   : > { %7249 = vmatpush3.bf16.msra.mxu0 %v7246_v17 }
  0x74   : > { %7251 = vmatprep.subr.bf16.mxu0 %v7250_v20 }
  0x77   : > { %7253 = vmatpush3.bf16.msra.mxu0 %v7250_v20 }
  0x78   : > { %7255 = vmatprep.subr.bf16.mxu0 %v7254_v24 }
  0x7b   : > { %7257 = vmatpush3.bf16.msra.mxu0 %v7254_v24 }
  0x7c   : > { %7259 = vmatprep.subr.bf16.mxu0 %v8207_v29 }
  0xf1   : > { %v6344_v32 = vpop.f32.mrb[0].mxu0 }
  0xf2   : > { %v736_v34 = vmul.f32 %v6344_v32, %v8213_v31  ;;  %v569_v38 = vpop.f32.mrb[1].mxu0  ;;  %v5691_v32 = vld [vmem:[%s9714_s2 + $0x218] sm:$0xff] }
  0xf3   : > { %v735_v39 = vmul.f32 %v8213_v31, %v569_v38 }
  0xf4   : > { %v775_v40 = vadd.f32 %v8218_v33, %v736_v34 }
  0xf5   : > { %v774_v43 = vadd.f32 %v8218_v33, %v735_v39  ;;  %v6347_v63 = vpop.f32.mrb[2].mxu0 }
  0xf6   : > { %v8225_v1 = vmax.f32 %v775_v40, 0.0  ;;  %v738_v2 = vmul.f32 %v6347_v63, %v8213_v31  ;;  %v579_v3 = vpop.f32.mrb[3].mxu0  ;;  %v935_v40 = vand.u32 15, %v875_v18 }
  0xf7   : > { %v8228_v4 = vmax.f32 %v774_v43, 0.0  ;;  %v737_v5 = vmul.f32 %v8213_v31, %v579_v3  ;;  %v877_v43 = vadd.s32 48, %v8129_v22 }
  0xf8   : > { %839 = vst [vmem:[#allocation2 + $0x28] sm:$0xff] %v8225_v1  ;;  %v777_v11 = vadd.f32 %v8218_v33, %v738_v2  ;;  %vm8281_vm3 = vcmp.ge.s32.totalorder %v935_v40, 1 }
  0xf9   : > { %838 = vst [vmem:[#allocation2 + $0x20] sm:$0xff] %v8228_v4  ;;  %v776_v12 = vadd.f32 %v8218_v33, %v737_v5  ;;  %v6350_v13 = vpop.f32.mrb[4].mxu0 }
  0xfa   : > { %v8235_v15 = vmax.f32 %v777_v11, 0.0  ;;  %v740_v16 = vmul.f32 %v6350_v13, %v8213_v31  ;;  %v589_v17 = vpop.f32.mrb[5].mxu0  ;;  %v7326_v11 = vpack.c.bf16 %v5691_v32, %v5690_v26 }
  0xfb   : > { %v8239_v19 = vmax.f32 %v776_v12, 0.0  ;;  %v739_v20 = vmul.f32 %v8213_v31, %v589_v17  ;;  %v5693_v17 = vld [vmem:[%s9714_s2 + $0x228] sm:$0xff] }
  0xfc   : > { %841 = vst [vmem:[#allocation2 + $0x38] sm:$0xff] %v8235_v15  ;;  %v779_v21 = vadd.f32 %v8218_v33, %v740_v16  ;;  %v5692_v16 = vld [vmem:[%s9714_s2 + $0x220] sm:$0xff] }
  0xfd   : > { %840 = vst [vmem:[#allocation2 + $0x30] sm:$0xff] %v8239_v19  ;;  %v778_v23 = vadd.f32 %v8218_v33, %v739_v20  ;;  %v6353_v24 = vpop.f32.mrb[6].mxu0 }
  0xfe   : > { %v8256_v34 = vmax.f32 %v779_v21, 0.0  ;;  %v742_v38 = vmul.f32 %v6353_v24, %v8213_v31  ;;  %v599_v39 = vpop.f32.mrb[7].mxu0  ;;  %v949_v24 = vand.u32 15, %v877_v43  ;;  %v5694_v43 = vld [vmem:[%s9714_s2 + $0x230] sm:$0xff] }
  0xff   : > { %v8260_v63 = vmax.f32 %v778_v23, 0.0  ;;  %v741_v0 = vmul.f32 %v8213_v31, %v599_v39  ;;  %v5777_v23 = vld [vmem:[%s9714_s2 + $0x3c8] sm:$0xff] }
 0x100   : > { %843 = vst [vmem:[#allocation2 + $0x48] sm:$0xff] %v8256_v34  ;;  %v781_v2 = vadd.f32 %v8218_v33, %v742_v38  ;;  %v1289_v3 = vld [vmem:[#allocation2 + $0x1f] sm:$0xff]  ;;  %v1290_v5 = vld [vmem:[#allocation2 + $0x27] sm:$0xff]  ;;  %vm8306_vm4 = vcmp.ge.s32.totalorder %v949_v24, 1 }
 0x101   : > { %842 = vst [vmem:[#allocation2 + $0x40] sm:$0xff] %v8260_v63  ;;  %v780_v12 = vadd.f32 %v8218_v33, %v741_v0  ;;  %v6356_v13 = vpop.f32.mrb[8].mxu0  ;;  %6425 = vmatprep.mubr.msk.f32.mxu0 %vm8246_vm2, %v1289_v3  ;;  %6662 = vmatprep.mubr.msk.f32.mxu1 %vm8138_vm1, %v1289_v3 }
 0x102   : > { %v8278_v18 = vmax.f32 %v781_v2, 0.0  ;;  %v744_v20 = vmul.f32 %v6356_v13, %v8213_v31  ;;  %v609_v21 = vpop.f32.mrb[9].mxu0  ;;  %6426 = vmatmul.mubr.f32.gmra.mrb[34].mxu0 %v1290_v5  ;;  %6663 = vmatmul.mubr.f32.vlgmr.msra.gmra.mrb[0].mxu1 %v1290_v5  ;;  %v7330_v2 = vpack.c.bf16 %v5693_v17, %v5692_v16  ;;  %v5695_v5 = vld [vmem:[%s9714_s2 + $0x238] sm:$0xff] }
 0x103   : > { %v8285_v26 = vmax.f32 %v780_v12, 0.0  ;;  %v743_v32 = vmul.f32 %v8213_v31, %v609_v21  ;;  %7325 = vmatpush3.bf16.msra.mxu1 %v8150_v37  ;;  %v963_v37 = vand.u32 15, %v879_v14  ;;  %v881_v14 = vadd.s32 80, %v8129_v22  ;;  %v5779_v17 = vld [vmem:[%s9714_s2 + $0x3d8] sm:$0xff] }
 0x104   : > { %845 = vst [vmem:[#allocation2 + $0x58] sm:$0xff] %v8278_v18  ;;  %v783_v38 = vadd.f32 %v8218_v33, %v744_v20  ;;  %v1291_v39 = vld [vmem:[#allocation2 + $0x2f] sm:$0xff]  ;;  %v1292_v0 = vld [vmem:[#allocation2 + $0x37] sm:$0xff]  ;;  %7327 = vmatprep.subr.bf16.mxu1 %v7326_v11 }
 0x105   : > { %844 = vst [vmem:[#allocation2 + $0x50] sm:$0xff] %v8285_v26  ;;  %v782_v40 = vadd.f32 %v8218_v33, %v743_v32  ;;  %v6359_v3 = vpop.f32.mrb[10].mxu0  ;;  %6428 = vmatprep.mubr.msk.f32.mxu0 %vm8281_vm3, %v1291_v39  ;;  %6665 = vmatprep.mubr.msk.f32.mxu1 %vm8246_vm2, %v1291_v39  ;;  %vm8322_vm5 = vcmp.ge.s32.totalorder %v963_v37, 1  ;;  %v883_v37 = vadd.s32 96, %v8129_v22 }
 0x106   : > { %v8303_v12 = vmax.f32 %v783_v38, 0.0  ;;  %v746_v13 = vmul.f32 %v6359_v3, %v8213_v31  ;;  %v619_v16 = vpop.f32.mrb[11].mxu0  ;;  %6429 = vmatmul.mubr.f32.gmra.mrb[36].mxu0 %v1292_v0  ;;  %6666 = vmatmul.mubr.f32.gmra.mrb[2].mxu1 %v1292_v0  ;;  %v7334_v3 = vpack.c.bf16 %v5695_v5, %v5694_v43  ;;  %v5697_v43 = vld [vmem:[%s9714_s2 + $0x248] sm:$0xff] }
 0x107   : > { %v8311_v20 = vmax.f32 %v782_v40, 0.0  ;;  %v745_v21 = vmul.f32 %v8213_v31, %v619_v16  ;;  %7329 = vmatpush3.bf16.msra.mxu1 %v7326_v11  ;;  %v5696_v40 = vld [vmem:[%s9714_s2 + $0x240] sm:$0xff]  ;;  %v5781_v11 = vld [vmem:[%s9714_s2 + $0x3e8] sm:$0xff] }
 0x108   : > { %847 = vst [vmem:[#allocation2 + $0x68] sm:$0xff] %v8303_v12  ;;  %v785_v32 = vadd.f32 %v8218_v33, %v746_v13  ;;  %v1293_v38 = vld [vmem:[#allocation2 + $0x3f] sm:$0xff]  ;;  %v1294_v39 = vld [vmem:[#allocation2 + $0x47] sm:$0xff]  ;;  %7331 = vmatprep.subr.bf16.mxu1 %v7330_v2  ;;  %v7338_v60 = vpack.c.bf16 %v5697_v43, %v5696_v40 }
 0x109   : > { %846 = vst [vmem:[#allocation2 + $0x60] sm:$0xff] %v8311_v20  ;;  %v784_v24 = vadd.f32 %v8218_v33, %v745_v21  ;;  %v6362_v0 = vpop.f32.mrb[12].mxu0  ;;  %6431 = vmatprep.mubr.msk.f32.mxu0 %vm8306_vm4, %v1293_v38  ;;  %6668 = vmatprep.mubr.msk.f32.mxu1 %vm8281_vm3, %v1293_v38  ;;  %v977_v21 = vand.u32 15, %v881_v14  ;;  %v3765_v30 = vld [vmem:[#allocation2 + $0x47] sm:$0xff] }
 0x10a   : > { %v8332_v5 = vmax.f32 %v785_v32, 0.0  ;;  %v748_v13 = vmul.f32 %v6362_v0, %v8213_v31  ;;  %v629_v16 = vpop.f32.mrb[13].mxu0  ;;  %6432 = vmatmul.mubr.f32.gmra.mrb[38].mxu0 %v1294_v39  ;;  %6669 = vmatmul.mubr.f32.gmra.mrb[4].mxu1 %v1294_v39  ;;  %v5699_v0 = vld [vmem:[%s9714_s2 + $0x258] sm:$0xff] }
 0x10b   : > { %v8336_v38 = vmax.f32 %v784_v24, 0.0  ;;  %v747_v61 = vmul.f32 %v8213_v31, %v629_v16  ;;  %7333 = vmatpush3.bf16.msra.mxu1 %v7330_v2  ;;  %v885_v2 = vadd.s32 112, %v8129_v22  ;;  %v5698_v24 = vld [vmem:[%s9714_s2 + $0x250] sm:$0xff]  ;;  %vm8357_vm6 = vcmp.ge.s32.totalorder %v977_v21, 1 }
 0x10c   : > { %849 = vst [vmem:[#allocation2 + $0x78] sm:$0xff] %v8332_v5  ;;  %v787_v62 = vadd.f32 %v8218_v33, %v748_v13  ;;  %v1295_v59 = vld [vmem:[#allocation2 + $0x4f] sm:$0xff]  ;;  %v1296_v32 = vld [vmem:[#allocation2 + $0x57] sm:$0xff]  ;;  %7335 = vmatprep.subr.bf16.mxu1 %v7334_v3 }
 0x10d   : > { %848 = vst [vmem:[#allocation2 + $0x70] sm:$0xff] %v8336_v38  ;;  %v786_v39 = vadd.f32 %v8218_v33, %v747_v61  ;;  %v6365_v14 = vpop.f32.mrb[14].mxu0  ;;  %6434 = vmatprep.mubr.msk.f32.mxu0 %vm8322_vm5, %v1295_v59  ;;  %6671 = vmatprep.mubr.msk.f32.mxu1 %vm8306_vm4, %v1295_v59  ;;  %v991_v59 = vand.u32 15, %v883_v37  ;;  %v5700_v37 = vld [vmem:[%s9714_s2 + $0x260] sm:$0xff]  ;;  %v5783_v13 = vld [vmem:[%s9714_s2 + $0x3f8] sm:$0xff] }
 0x10e   : > { %v8354_v40 = vmax.f32 %v787_v62, 0.0  ;;  %v750_v61 = vmul.f32 %v6365_v14, %v8213_v31  ;;  %v639_v43 = vpop.f32.mrb[15].mxu0  ;;  %6435 = vmatmul.mubr.f32.gmra.mrb[40].mxu0 %v1296_v32  ;;  %6672 = vmatmul.mubr.f32.gmra.mrb[6].mxu1 %v1296_v32  ;;  %v7342_v14 = vpack.c.bf16 %v5699_v0, %v5698_v24 }
 0x10f   : > { %v8361_v16 = vmax.f32 %v786_v39, 0.0  ;;  %v749_v57 = vmul.f32 %v8213_v31, %v639_v43  ;;  %7337 = vmatpush3.bf16.msra.mxu1 %v7334_v3  ;;  %v1005_v3 = vand.u32 15, %v885_v2  ;;  %v5701_v39 = vld [vmem:[%s9714_s2 + $0x268] sm:$0xff]  ;;  %vm8381_vm7 = vcmp.ge.s32.totalorder %v991_v59, 1 }
 0x110   : > { %851 = vst [vmem:[#allocation2 + $0x88] sm:$0xff] %v8354_v40  ;;  %v789_v62 = vadd.f32 %v8218_v33, %v750_v61  ;;  %v1297_v58 = vld [vmem:[#allocation2 + $0x5f] sm:$0xff]  ;;  %v1298_v55 = vld [vmem:[#allocation2 + $0x67] sm:$0xff]  ;;  %7339 = vmatprep.subr.bf16.mxu1 %v7338_v60  ;;  %v9831_v61 = vmov 0  ;;  %v7346_v53 = vpack.c.bf16 %v5701_v39, %v5700_v37 }
 0x111   : > { %850 = vst [vmem:[#allocation2 + $0x80] sm:$0xff] %v8361_v16  ;;  %v788_v21 = vadd.f32 %v8218_v33, %v749_v57  ;;  %v6368_v32 = vpop.f32.mrb[16].mxu0  ;;  %6437 = vmatprep.mubr.msk.f32.mxu0 %vm8357_vm6, %v1297_v58  ;;  %6674 = vmatprep.mubr.msk.f32.mxu1 %vm8322_vm5, %v1297_v58  ;;  %v9832_v61 = vsel %vm8381_vm7, 4294967295, %v9831_v61  ;;  %v887_v58 = vadd.s32 128, %v8129_v22  ;;  %vm8397_vm8 = vcmp.ge.s32.totalorder %v1005_v3, 1  ;;  %v5703_v37 = vld [vmem:[%s9714_s2 + $0x278] sm:$0xff] }
 0x112   : > { %v8378_v24 = vmax.f32 %v789_v62, 0.0  ;;  %v752_v57 = vmul.f32 %v6368_v32, %v8213_v31  ;;  %v649_v0 = vpop.f32.mrb[17].mxu0  ;;  %6438 = vmatmul.mubr.f32.gmra.mrb[42].mxu0 %v1298_v55  ;;  %6675 = vmatmul.mubr.f32.gmra.mrb[8].mxu1 %v1298_v55  ;;  %v889_v3 = vadd.s32 144, %v8129_v22 }
 0x113   : > { %v8386_v2 = vmax.f32 %v788_v21, 0.0  ;;  %v751_v43 = vmul.f32 %v8213_v31, %v649_v0  ;;  %7341 = vmatpush3.bf16.msra.mxu1 %v7338_v60  ;;  %v9833_v60 = vmov 0  ;;  %v5702_v21 = vld [vmem:[%s9714_s2 + $0x270] sm:$0xff] }
 0x114   : > { %853 = vst [vmem:[#allocation2 + $0x98] sm:$0xff] %v8378_v24  ;;  %v791_v62 = vadd.f32 %v8218_v33, %v752_v57  ;;  %v1299_v56 = vld [vmem:[#allocation2 + $0x6f] sm:$0xff]  ;;  %v1300_v32 = vld [vmem:[#allocation2 + $0x77] sm:$0xff]  ;;  %7343 = vmatprep.subr.bf16.mxu1 %v7342_v14  ;;  %v9834_v60 = vsel %vm8397_vm8, 4294967295, %v9833_v60  ;;  %v7350_v49 = vpack.c.bf16 %v5703_v37, %v5702_v21 }
 0x115   : > { %852 = vst [vmem:[#allocation2 + $0x90] sm:$0xff] %v8386_v2  ;;  %v790_v55 = vadd.f32 %v8218_v33, %v751_v43  ;;  %v6371_v59 = vpop.f32.mrb[18].mxu0  ;;  %6440 = vmatprep.mubr.msk.f32.mxu0 %vm8381_vm7, %v1299_v56  ;;  %6677 = vmatprep.mubr.msk.f32.mxu1 %vm8357_vm6, %v1299_v56  ;;  %v1019_v56 = vand.u32 15, %v887_v58 }
 0x116   : > { %v8407_v39 = vmax.f32 %v791_v62, 0.0  ;;  %v754_v57 = vmul.f32 %v6371_v59, %v8213_v31  ;;  %v659_v0 = vpop.f32.mrb[19].mxu0  ;;  %6441 = vmatmul.mubr.f32.gmra.mrb[44].mxu0 %v1300_v32  ;;  %6678 = vmatmul.mubr.f32.gmra.mrb[10].mxu1 %v1300_v32  ;;  %v5705_v59 = vld [vmem:[%s9714_s2 + $0x288] sm:$0xff] }
 0x117   : > { %v8411_v43 = vmax.f32 %v790_v55, 0.0  ;;  %v753_v54 = vmul.f32 %v8213_v31, %v659_v0  ;;  %7345 = vmatpush3.bf16.msra.mxu1 %v7342_v14  ;;  %v891_v14 = vadd.s32 160, %v8129_v22  ;;  %v5704_v55 = vld [vmem:[%s9714_s2 + $0x280] sm:$0xff]  ;;  %vm8432_vm9 = vcmp.ge.s32.totalorder %v1019_v56, 1 }
 0x118   : > { %855 = vst [vmem:[#allocation2 + $0xa8] sm:$0xff] %v8407_v39  ;;  %v793_v51 = vadd.f32 %v8218_v33, %v754_v57  ;;  %v1301_v52 = vld [vmem:[#allocation2 + $0x7f] sm:$0xff]  ;;  %v1302_v62 = vld [vmem:[#allocation2 + $0x87] sm:$0xff]  ;;  %7347 = vmatprep.subr.bf16.mxu1 %v7346_v53  ;;  %v9835_v57 = vmov 0 }
 0x119   : > { %854 = vst [vmem:[#allocation2 + $0xa0] sm:$0xff] %v8411_v43  ;;  %v792_v32 = vadd.f32 %v8218_v33, %v753_v54  ;;  %v6374_v58 = vpop.f32.mrb[20].mxu0  ;;  %6443 = vmatprep.mubr.msk.f32.mxu0 %vm8397_vm8, %v1301_v52  ;;  %6680 = vmatprep.mubr.msk.f32.mxu1 %vm8381_vm7, %v1301_v52  ;;  %v9836_v57 = vsel %vm8432_vm9, 4294967295, %v9835_v57  ;;  %v1033_v52 = vand.u32 15, %v889_v3 }
 0x11a   : > { %v8429_v21 = vmax.f32 %v793_v51, 0.0  ;;  %v756_v54 = vmul.f32 %v6374_v58, %v8213_v31  ;;  %v669_v37 = vpop.f32.mrb[21].mxu0  ;;  %6444 = vmatmul.mubr.f32.gmra.mrb[46].mxu0 %v1302_v62  ;;  %6681 = vmatmul.mubr.f32.gmra.mrb[12].mxu1 %v1302_v62  ;;  %v8441_v58 = vpack.c.bf16 %v5705_v59, %v5704_v55  ;;  %v9837_v55 = vmov 0 }
 0x11b   : > { %v8436_v0 = vmax.f32 %v792_v32, 0.0  ;;  %v755_v50 = vmul.f32 %v8213_v31, %v669_v37  ;;  %7349 = vmatpush3.bf16.msra.mxu1 %v7346_v53  ;;  %v1047_v53 = vand.u32 15, %v891_v14  ;;  %vm8452_vm10 = vcmp.ge.s32.totalorder %v1033_v52, 1 }
 0x11c   : > { %857 = vst [vmem:[#allocation2 + $0xb8] sm:$0xff] %v8429_v21  ;;  %v795_v51 = vadd.f32 %v8218_v33, %v756_v54  ;;  %v1303_v47 = vld [vmem:[#allocation2 + $0x8f] sm:$0xff]  ;;  %v1304_v48 = vld [vmem:[#allocation2 + $0x97] sm:$0xff]  ;;  %7351 = vmatprep.subr.bf16.mxu1 %v7350_v49  ;;  %v9838_v55 = vsel %vm8452_vm10, 4294967295, %v9837_v55 }
 0x11d   : > { %856 = vst [vmem:[#allocation2 + $0xb0] sm:$0xff] %v8436_v0  ;;  %v794_v56 = vadd.f32 %v8218_v33, %v755_v50  ;;  %v6377_v62 = vpop.f32.mrb[22].mxu0  ;;  %6446 = vmatprep.mubr.msk.f32.mxu0 %vm8432_vm9, %v1303_v47  ;;  %6683 = vmatprep.mubr.msk.f32.mxu1 %vm8397_vm8, %v1303_v47  ;;  %v893_v50 = vadd.s32 176, %v8129_v22  ;;  %vm8469_vm11 = vcmp.ge.s32.totalorder %v1047_v53, 1 }
 0x11e   : > { %v8449_v3 = vmax.f32 %v795_v51, 0.0  ;;  %v758_v32 = vmul.f32 %v6377_v62, %v8213_v31  ;;  %v679_v54 = vpop.f32.mrb[23].mxu0  ;;  %6447 = vmatmul.mubr.f32.gmra.mrb[48].mxu0 %v1304_v48  ;;  %6684 = vmatmul.mubr.f32.gmra.mrb[14].mxu1 %v1304_v48 }
 0x11f   : > { %v8457_v59 = vmax.f32 %v794_v56, 0.0  ;;  %v757_v37 = vmul.f32 %v8213_v31, %v679_v54  ;;  %7353 = vmatpush3.bf16.msra.mxu1 %v7350_v49  ;;  %v9839_v49 = vmov 0  ;;  %v1061_v54 = vand.u32 15, %v893_v50 }
 0x120   : > { %859 = vst [vmem:[#allocation2 + $0xc8] sm:$0xff] %v8449_v3  ;;  %v797_v47 = vadd.f32 %v8218_v33, %v758_v32  ;;  %v1305_v14 = vld [vmem:[#allocation2 + $0x9f] sm:$0xff]  ;;  %v1306_v51 = vld [vmem:[#allocation2 + $0xa7] sm:$0xff]  ;;  %7355 = vmatprep.subr.bf16.mxu1 %v8441_v58  ;;  %v9840_v49 = vsel %vm8469_vm11, 4294967295, %v9839_v49  ;;  %v897_v50 = vadd.s32 208, %v8129_v22 }
 0x121   : > { %858 = vst [vmem:[#allocation2 + $0xc0] sm:$0xff] %v8457_v59  ;;  %v796_v48 = vadd.f32 %v8218_v33, %v757_v37  ;;  %v6380_v52 = vpop.f32.mrb[24].mxu0  ;;  %6449 = vmatprep.mubr.msk.f32.mxu0 %vm8452_vm10, %v1305_v14  ;;  %6686 = vmatprep.mubr.msk.f32.mxu1 %vm8432_vm9, %v1305_v14  ;;  %v895_v37 = vadd.s32 192, %v8129_v22  ;;  %vm8492_vm12 = vcmp.ge.s32.totalorder %v1061_v54, 1 }
 0x122   : > { %v8473_v56 = vmax.f32 %v797_v47, 0.0  ;;  %v760_v62 = vmul.f32 %v6380_v52, %v8213_v31  ;;  %v689_v32 = vpop.f32.mrb[25].mxu0  ;;  %6450 = vmatmul.mubr.f32.gmra.mrb[50].mxu0 %v1306_v51  ;;  %6687 = vmatmul.mubr.f32.gmra.mrb[16].mxu1 %v1306_v51  ;;  %v1089_v54 = vand.u32 15, %v897_v50 }
 0x123   : > { %v8477_v45 = vmax.f32 %v796_v48, 0.0  ;;  %v759_v46 = vmul.f32 %v8213_v31, %v689_v32  ;;  %v9841_v32 = vmov 0 }
 0x124   : > { %861 = vst [vmem:[#allocation2 + $0xd8] sm:$0xff] %v8473_v56  ;;  %v799_v53 = vadd.f32 %v8218_v33, %v760_v62  ;;  %v1307_v14 = vld [vmem:[#allocation2 + $0xaf] sm:$0xff]  ;;  %v1308_v42 = vld [vmem:[#allocation2 + $0xb7] sm:$0xff]  ;;  %v9842_v32 = vsel %vm8492_vm12, 4294967295, %v9841_v32  ;;  %vm8526_vm14 = vcmp.ge.s32.totalorder %v1089_v54, 1 }
 0x125   : > { %860 = vst [vmem:[#allocation2 + $0xd0] sm:$0xff] %v8477_v45  ;;  %v798_v47 = vadd.f32 %v8218_v33, %v759_v46  ;;  %v6383_v52 = vpop.f32.mrb[26].mxu0  ;;  %6452 = vmatprep.mubr.msk.f32.mxu0 %vm8469_vm11, %v1307_v14  ;;  %6689 = vmatprep.mubr.msk.f32.mxu1 %vm8452_vm10, %v1307_v14  ;;  %v1075_v46 = vand.u32 15, %v895_v37 }
 0x126   : > { %v8489_v51 = vmax.f32 %v799_v53, 0.0  ;;  %v762_v48 = vmul.f32 %v6383_v52, %v8213_v31  ;;  %v699_v62 = vpop.f32.mrb[27].mxu0  ;;  %6453 = vmatmul.mubr.f32.gmra.mrb[52].mxu0 %v1308_v42  ;;  %6690 = vmatmul.mubr.f32.gmra.mrb[18].mxu1 %v1308_v42 }
 0x127   : > { %v8496_v44 = vmax.f32 %v798_v47, 0.0  ;;  %v761_v36 = vmul.f32 %v8213_v31, %v699_v62  ;;  %vm8510_vm13 = vcmp.ge.s32.totalorder %v1075_v46, 1 }
 0x128   : > { %863 = vst [vmem:[#allocation2 + $0xe8] sm:$0xff] %v8489_v51  ;;  %v801_v14 = vadd.f32 %v8218_v33, %v762_v48  ;;  %v1309_v53 = vld [vmem:[#allocation2 + $0xbf] sm:$0xff]  ;;  %v1310_v41 = vld [vmem:[#allocation2 + $0xc7] sm:$0xff]  ;;  %v9843_v48 = vmov 0 }
 0x129   : > { %862 = vst [vmem:[#allocation2 + $0xe0] sm:$0xff] %v8496_v44  ;;  %v800_v52 = vadd.f32 %v8218_v33, %v761_v36  ;;  %v6386_v42 = vpop.f32.mrb[28].mxu0  ;;  %6455 = vmatprep.mubr.msk.f32.mxu0 %vm8492_vm12, %v1309_v53  ;;  %6692 = vmatprep.mubr.msk.f32.mxu1 %vm8469_vm11, %v1309_v53  ;;  %v9844_v48 = vsel %vm8510_vm13, 4294967295, %v9843_v48  ;;  %v899_v36 = vadd.s32 224, %v8129_v22 }
 0x12a   : > { %v8507_v37 = vmax.f32 %v801_v14, 0.0  ;;  %v764_v47 = vmul.f32 %v6386_v42, %v8213_v31  ;;  %v709_v62 = vpop.f32.mrb[29].mxu0  ;;  %6456 = vmatmul.mubr.f32.gmra.mrb[54].mxu0 %v1310_v41  ;;  %6693 = vmatmul.mubr.f32.gmra.mrb[20].mxu1 %v1310_v41 }
 0x12b   : > { %v8515_v28 = vmax.f32 %v800_v52, 0.0  ;;  %v763_v35 = vmul.f32 %v8213_v31, %v709_v62  ;;  %v9845_v52 = vmov 0  ;;  %v1103_v10 = vand.u32 15, %v899_v36 }
 0x12c   : > { %865 = vst [vmem:[#allocation2 + $0xf8] sm:$0xff] %v8507_v37  ;;  %v803_v50 = vadd.f32 %v8218_v33, %v764_v47  ;;  %v1311_v14 = vld [vmem:[#allocation2 + $0xcf] sm:$0xff]  ;;  %v1312_v53 = vld [vmem:[#allocation2 + $0xd7] sm:$0xff]  ;;  %v9846_v52 = vsel %vm8526_vm14, 4294967295, %v9845_v52  ;;  %v9847_v36 = vmov 0 }
 0x12d   : > { %864 = vst [vmem:[#allocation2 + $0xf0] sm:$0xff] %v8515_v28  ;;  %v802_v41 = vadd.f32 %v8218_v33, %v763_v35  ;;  %v6389_v46 = vpop.f32.mrb[30].mxu0  ;;  %6458 = vmatprep.mubr.msk.f32.mxu0 %vm8510_vm13, %v1311_v14  ;;  %6695 = vmatprep.mubr.msk.f32.mxu1 %vm8492_vm12, %v1311_v14  ;;  %v901_v35 = vadd.s32 240, %v8129_v22  ;;  %vm8550_vm15 = vcmp.ge.s32.totalorder %v1103_v10, 1  ;;  %v9849_v10 = vmov 0  ;;  %v9044_v9 = vld [vmem:[#allocation2 + $0xc9] sm:$0xff] }
 0x12e   : > { %v8530_v42 = vmax.f32 %v803_v50, 0.0  ;;  %v766_v47 = vmul.f32 %v6389_v46, %v8213_v31  ;;  %v719_v62 = vpop.f32.mrb[31].mxu0  ;;  %6459 = vmatmul.mubr.f32.gmra.mrb[56].mxu0 %v1312_v53  ;;  %6696 = vmatmul.mubr.f32.gmra.mrb[22].mxu1 %v1312_v53  ;;  %v9848_v36 = vsel %vm8550_vm15, 4294967295, %v9847_v36  ;;  %v9052_v6 = vld [vmem:[#allocation2 + $0xd1] sm:$0xff] }
 0x12f   : > { %v8534_v27 = vmax.f32 %v802_v41, 0.0  ;;  %v765_v8 = vmul.f32 %v8213_v31, %v719_v62  ;;  %v1117_v53 = vand.u32 15, %v901_v35  ;;  %v1720_v35 = vld [vmem:[#allocation2 + $0x10] sm:$0xff] }
 0x130   : > { %867 = vst [vmem:[#allocation2 + $0x108] sm:$0xff] %v8530_v42  ;;  %v8539_v54 = vadd.f32 %v8218_v33, %v766_v47  ;;  %v1313_v14 = vld [vmem:[#allocation2 + $0xdf] sm:$0xff]  ;;  %v1314_v50 = vld [vmem:[#allocation2 + $0xe7] sm:$0xff] }
 0x131   : > { %866 = vst [vmem:[#allocation2 + $0x100] sm:$0xff] %v8534_v27  ;;  %v8543_v46 = vadd.f32 %v8218_v33, %v765_v8  ;;  %6461 = vmatprep.mubr.msk.f32.mxu0 %vm8526_vm14, %v1313_v14  ;;  %6698 = vmatprep.mubr.msk.f32.mxu1 %vm8510_vm13, %v1313_v14  ;;  %vm8563_vm0 = vcmp.ge.s32.totalorder %v1117_v53, 1  ;;  %v5626_v14 = vld [vmem:[%s9714_s2 + $0x110] sm:$0xff]  ;;  %v1721_v53 = vld [vmem:[#allocation2 + $0x18] sm:$0xff] }
 0x132   : > { %v9751_v31 = vmax.f32 %v8539_v54, 0.0  ;;  %6462 = vmatmul.mubr.f32.gmra.mrb[58].mxu0 %v1314_v50  ;;  %6699 = vmatmul.mubr.f32.gmra.mrb[24].mxu1 %v1314_v50  ;;  %v9850_v10 = vsel %vm8563_vm0, 4294967295, %v9849_v10  ;;  %v5627_v50 = vld [vmem:[%s9714_s2 + $0x118] sm:$0xff] }
 0x133   : > { %v9752_v41 = vmax.f32 %v8543_v46, 0.0 }
 0x134   : > { %869 = vst [vmem:[#allocation2 + $0x118] sm:$0xff] %v9751_v31  ;;  %v1315_v8 = vld [vmem:[#allocation2 + $0xef] sm:$0xff]  ;;  %v1316_v33 = vld [vmem:[#allocation2 + $0xf7] sm:$0xff]  ;;  %v7262_v31 = vpack.c.bf16 %v5627_v50, %v5626_v14 }
 0x135   : > { %868 = vst [vmem:[#allocation2 + $0x110] sm:$0xff] %v9752_v41  ;;  %6464 = vmatprep.mubr.msk.f32.mxu0 %vm8550_vm15, %v1315_v8  ;;  %6701 = vmatprep.mubr.msk.f32.mxu1 %vm8526_vm14, %v1315_v8  ;;  %v5629_v41 = vld [vmem:[%s9714_s2 + $0x128] sm:$0xff] }
 0x136   : > { %6465 = vmatmul.mubr.f32.gmra.mrb[60].mxu0 %v1316_v33  ;;  %6702 = vmatmul.mubr.f32.gmra.mrb[26].mxu1 %v1316_v33 }
 0x138   : > { %v1317_v47 = vld [vmem:[#allocation2 + $0xff] sm:$0xff]  ;;  %v1318_v62 = vld [vmem:[#allocation2 + $0x107] sm:$0xff] }
 0x139   : > { %6467 = vmatprep.mubr.msk.f32.mxu0 %vm8563_vm0, %v1317_v47  ;;  %6704 = vmatprep.mubr.msk.f32.mxu1 %vm8550_vm15, %v1317_v47  ;;  %v5706_v47 = vld [vmem:[%s9714_s2 + $0x290] sm:$0xff] }
 0x13a   : > { %6468 = vmatmul.mubr.f32.gmra.mrb[62].mxu0 %v1318_v62  ;;  %6705 = vmatmul.mubr.f32.gmra.mrb[28].mxu1 %v1318_v62  ;;  %v5707_v62 = vld [vmem:[%s9714_s2 + $0x298] sm:$0xff] }
 0x13b   : > { %6502 = vmatprep.mubr.f32.mxu0 %v1720_v35  ;;  %v7358_v35 = vpack.c.bf16 %v5707_v62, %v5706_v47  ;;  %v5713_v47 = vld [vmem:[%s9714_s2 + $0x2c8] sm:$0xff] }
 0x13c   : > { %v2618_v8 = vld [vmem:[#allocation2 + $0x10f] sm:$0xff]  ;;  %v2619_v33 = vld [vmem:[#allocation2 + $0x117] sm:$0xff] }
 0x13d   : > { %6707 = vmatprep.mubr.msk.f32.mxu1 %vm8563_vm0, %v2618_v8  ;;  %v5628_v8 = vld [vmem:[%s9714_s2 + $0x120] sm:$0xff] }
 0x13e   : > { %6503 = vmatmul.mubr.f32.vlgmr.msra.gmra.mrb[32].mxu0 %v1721_v53  ;;  %6708 = vmatmul.mubr.f32.gmra.mrb[30].mxu1 %v2619_v33  ;;  %v7266_v14 = vpack.c.bf16 %v5629_v41, %v5628_v8  ;;  %v5631_v53 = vld [vmem:[%s9714_s2 + $0x138] sm:$0xff]  ;;  %v5633_v33 = vld [vmem:[%s9714_s2 + $0x148] sm:$0xff] }
 0x13f   : > { %6505 = vmatprep.mubr.f32.mxu0 %v8228_v4  ;;  %6742 = vmatprep.mubr.f32.mxu1 %v8228_v4  ;;  %v5708_v4 = vld [vmem:[%s9714_s2 + $0x2a0] sm:$0xff]  ;;  %v5635_v8 = vld [vmem:[%s9714_s2 + $0x158] sm:$0xff] }
 0x140   : > { %7261 = vmatpush3.bf16.msra.mxu0 %v8207_v29  ;;  %v5709_v29 = vld [vmem:[%s9714_s2 + $0x2a8] sm:$0xff] }
 0x141   : > { %7263 = vmatprep.subr.bf16.mxu0 %v7262_v31  ;;  %v7362_v50 = vpack.c.bf16 %v5709_v29, %v5708_v4  ;;  %v5715_v4 = vld [vmem:[%s9714_s2 + $0x2d8] sm:$0xff] }
 0x142   : > { %6506 = vmatmul.mubr.f32.gmra.mrb[34].mxu0 %v8225_v1  ;;  %6743 = vmatmul.mubr.f32.vlgmr.msra.gmra.mrb[0].mxu1 %v8225_v1  ;;  %v5630_v1 = vld [vmem:[%s9714_s2 + $0x130] sm:$0xff] }
 0x143   : > { %7357 = vmatpush3.bf16.msra.mxu1 %v8441_v58  ;;  %6508 = vmatprep.mubr.f32.mxu0 %v8239_v19  ;;  %v5711_v58 = vld [vmem:[%s9714_s2 + $0x2b8] sm:$0xff] }
 0x144   : > { %6745 = vmatprep.mubr.f32.mxu1 %v8239_v19  ;;  %7359 = vmatprep.subr.bf16.mxu1 %v7358_v35  ;;  %v5710_v19 = vld [vmem:[%s9714_s2 + $0x2b0] sm:$0xff] }
 0x145   : > { %7265 = vmatpush3.bf16.msra.mxu0 %v7262_v31  ;;  %v7270_v31 = vpack.c.bf16 %v5631_v53, %v5630_v1  ;;  %v7366_v41 = vpack.c.bf16 %v5711_v58, %v5710_v19  ;;  %v5717_v1 = vld [vmem:[%s9714_s2 + $0x2e8] sm:$0xff]  ;;  %v5639_v58 = vld [vmem:[%s9714_s2 + $0x178] sm:$0xff] }
 0x146   : > { %6509 = vmatmul.mubr.f32.gmra.mrb[36].mxu0 %v8235_v15  ;;  %6746 = vmatmul.mubr.f32.gmra.mrb[2].mxu1 %v8235_v15  ;;  %v5632_v15 = vld [vmem:[%s9714_s2 + $0x140] sm:$0xff] }
 0x147   : > { %6511 = vmatprep.mubr.f32.mxu0 %v8260_v63  ;;  %6748 = vmatprep.mubr.f32.mxu1 %v8260_v63  ;;  %v5712_v63 = vld [vmem:[%s9714_s2 + $0x2c0] sm:$0xff]  ;;  %v7274_v62 = vpack.c.bf16 %v5633_v33, %v5632_v15  ;;  %v5785_v33 = vld [vmem:[%s9714_s2 + $0x408] sm:$0xff] }
 0x148   : > { %7361 = vmatpush3.bf16.msra.mxu1 %v7358_v35  ;;  %7267 = vmatprep.subr.bf16.mxu0 %v7266_v14  ;;  %v7370_v35 = vpack.c.bf16 %v5713_v47, %v5712_v63  ;;  %v5737_v63 = vld [vmem:[%s9714_s2 + $0x308] sm:$0xff] }
 0x149   : > { %7363 = vmatprep.subr.bf16.mxu1 %v7362_v50  ;;  %7269 = vmatpush3.bf16.msra.mxu0 %v7266_v14 }
 0x14a   : > { %6512 = vmatmul.mubr.f32.gmra.mrb[38].mxu0 %v8256_v34  ;;  %6749 = vmatmul.mubr.f32.gmra.mrb[4].mxu1 %v8256_v34  ;;  %v5634_v34 = vld [vmem:[%s9714_s2 + $0x150] sm:$0xff] }
 0x14b   : > { %6514 = vmatprep.mubr.f32.mxu0 %v8285_v26  ;;  %6751 = vmatprep.mubr.f32.mxu1 %v8285_v26  ;;  %v5714_v26 = vld [vmem:[%s9714_s2 + $0x2d0] sm:$0xff]  ;;  %v7278_v29 = vpack.c.bf16 %v5635_v8, %v5634_v34 }
 0x14c   : > { %7365 = vmatpush3.bf16.msra.mxu1 %v7362_v50  ;;  %7271 = vmatprep.subr.bf16.mxu0 %v7270_v31  ;;  %v7374_v14 = vpack.c.bf16 %v5715_v4, %v5714_v26  ;;  %v5637_v50 = vld [vmem:[%s9714_s2 + $0x168] sm:$0xff]  ;;  %v8781_v4 = vld [vmem:[#allocation2 + $0x31] sm:$0xff] }
 0x14d   : > { %7367 = vmatprep.subr.bf16.mxu1 %v7366_v41  ;;  %7273 = vmatpush3.bf16.msra.mxu0 %v7270_v31  ;;  %v5719_v31 = vld [vmem:[%s9714_s2 + $0x2f8] sm:$0xff]  ;;  %v2093_v8 = vld [vmem:[#allocation2 + $0x29] sm:$0xff] }
 0x14e   : > { %6515 = vmatmul.mubr.f32.gmra.mrb[40].mxu0 %v8278_v18  ;;  %6752 = vmatmul.mubr.f32.gmra.mrb[6].mxu1 %v8278_v18  ;;  %v5636_v18 = vld [vmem:[%s9714_s2 + $0x160] sm:$0xff]  ;;  %v5789_v26 = vld [vmem:[%s9714_s2 + $0x428] sm:$0xff] }
 0x14f   : > { %6517 = vmatprep.mubr.f32.mxu0 %v8311_v20  ;;  %6754 = vmatprep.mubr.f32.mxu1 %v8311_v20  ;;  %v5716_v20 = vld [vmem:[%s9714_s2 + $0x2e0] sm:$0xff]  ;;  %v7282_v53 = vpack.c.bf16 %v5637_v50, %v5636_v18 }
 0x150   : > { %7369 = vmatpush3.bf16.msra.mxu1 %v7366_v41  ;;  %7275 = vmatprep.subr.bf16.mxu0 %v7274_v62  ;;  %v7378_v19 = vpack.c.bf16 %v5717_v1, %v5716_v20  ;;  %v880_v20 = vadd.s32 72, %v8129_v22  ;;  %v3768_v18 = vld [vmem:[#allocation2 + $0x5f] sm:$0xff] }
 0x151   : > { %7371 = vmatprep.subr.bf16.mxu1 %v7370_v35  ;;  %7277 = vmatpush3.bf16.msra.mxu0 %v7274_v62 }
 0x152   : > { %6518 = vmatmul.mubr.f32.gmra.mrb[42].mxu0 %v8303_v12  ;;  %6755 = vmatmul.mubr.f32.gmra.mrb[8].mxu1 %v8303_v12  ;;  %v5638_v12 = vld [vmem:[%s9714_s2 + $0x170] sm:$0xff] }
 0x153   : > { %6520 = vmatprep.mubr.f32.mxu0 %v8336_v38  ;;  %6757 = vmatprep.mubr.f32.mxu1 %v8336_v38  ;;  %v5718_v38 = vld [vmem:[%s9714_s2 + $0x2f0] sm:$0xff]  ;;  %v7286_v41 = vpack.c.bf16 %v5639_v58, %v5638_v12  ;;  %v5791_v58 = vld [vmem:[%s9714_s2 + $0x438] sm:$0xff] }
 0x154   : > { %7373 = vmatpush3.bf16.msra.mxu1 %v7370_v35  ;;  %7279 = vmatprep.subr.bf16.mxu0 %v7278_v29  ;;  %v7382_v15 = vpack.c.bf16 %v5719_v31, %v5718_v38  ;;  %v878_v35 = vadd.s32 56, %v8129_v22  ;;  %v5790_v12 = vld [vmem:[%s9714_s2 + $0x430] sm:$0xff]  ;;  %v8814_v38 = vld [vmem:[#allocation2 + $0x41] sm:$0xff] }
 0x155   : > { %7375 = vmatprep.subr.bf16.mxu1 %v7374_v14  ;;  %7281 = vmatpush3.bf16.msra.mxu0 %v7278_v29  ;;  %v5740_v29 = vld [vmem:[%s9714_s2 + $0x320] sm:$0xff]  ;;  %v5742_v31 = vld [vmem:[%s9714_s2 + $0x330] sm:$0xff] }
 0x156   : > { %6521 = vmatmul.mubr.f32.gmra.mrb[44].mxu0 %v8332_v5  ;;  %6758 = vmatmul.mubr.f32.gmra.mrb[10].mxu1 %v8332_v5  ;;  %v5784_v5 = vld [vmem:[%s9714_s2 + $0x400] sm:$0xff]  ;;  %v956_v50 = vand.u32 15, %v878_v35  ;;  %v5747_v35 = vld [vmem:[%s9714_s2 + $0x358] sm:$0xff] }
 0x157   : > { %6523 = vmatprep.mubr.f32.mxu0 %v8361_v16  ;;  %6760 = vmatprep.mubr.f32.mxu1 %v8361_v16  ;;  %v5736_v16 = vld [vmem:[%s9714_s2 + $0x300] sm:$0xff]  ;;  %v8701_v47 = vpack.c.bf16 %v5785_v33, %v5784_v5  ;;  %v970_v5 = vand.u32 15, %v880_v20  ;;  %v882_v33 = vadd.s32 88, %v8129_v22  ;;  %v5797_v20 = vld [vmem:[%s9714_s2 + $0x468] sm:$0xff] }
 0x158   : > { %7377 = vmatpush3.bf16.msra.mxu1 %v7374_v14  ;;  %7283 = vmatprep.subr.bf16.mxu0 %v7282_v53  ;;  %v8703_v62 = vpack.c.bf16 %v5737_v63, %v5736_v16  ;;  %v5741_v14 = vld [vmem:[%s9714_s2 + $0x328] sm:$0xff]  ;;  %vm8824_vm13 = vcmp.lt.s32.totalorder %v956_v50, 15  ;;  %v8830_v16 = vpack.c.bf16 %v5791_v58, %v5790_v12  ;;  %v5796_v50 = vld [vmem:[%s9714_s2 + $0x460] sm:$0xff] }
 0x159   : > { %7379 = vmatprep.subr.bf16.mxu1 %v7378_v19  ;;  %7285 = vmatpush3.bf16.msra.mxu0 %v7282_v53  ;;  %v8799_v53 = vld [vmem:[#allocation2 + $0x39] sm:$0xff]  ;;  %v8832_v63 = vld [vmem:[#allocation2 + $0x49] sm:$0xff]  ;;  %vm8857_vm12 = vcmp.lt.s32.totalorder %v970_v5, 15  ;;  %v888_v5 = vadd.s32 136, %v8129_v22 }
 0x15a   : > { %6524 = vmatmul.mubr.f32.gmra.mrb[46].mxu0 %v8354_v40  ;;  %6761 = vmatmul.mubr.f32.gmra.mrb[12].mxu1 %v8354_v40  ;;  %v872_v40 = vadd.s32 8, %v8129_v22  ;;  %v5748_v12 = vld [vmem:[%s9714_s2 + $0x360] sm:$0xff]  ;;  %v5749_v58 = vld [vmem:[%s9714_s2 + $0x368] sm:$0xff] }
 0x15b   : > { %6526 = vmatprep.mubr.f32.mxu0 %v8386_v2  ;;  %6763 = vmatprep.mubr.f32.mxu1 %v8386_v2  ;;  %v5787_v2 = vld [vmem:[%s9714_s2 + $0x418] sm:$0xff] }
 0x15c   : > { %7381 = vmatpush3.bf16.msra.mxu1 %v7378_v19  ;;  %7287 = vmatprep.subr.bf16.mxu0 %v7286_v41  ;;  %v7394_v19 = vpack.c.bf16 %v5741_v14, %v5740_v29  ;;  %v8898_v29 = vld [vmem:[#allocation2 + $0x69] sm:$0xff] }
 0x15d   : > { %7383 = vmatprep.subr.bf16.mxu1 %v7382_v15  ;;  %7289 = vmatpush3.bf16.msra.mxu0 %v7286_v41  ;;  %v5743_v41 = vld [vmem:[%s9714_s2 + $0x338] sm:$0xff] }
 0x15e   : > { %6527 = vmatmul.mubr.f32.gmra.mrb[48].mxu0 %v8378_v24  ;;  %6764 = vmatmul.mubr.f32.gmra.mrb[14].mxu1 %v8378_v24  ;;  %v2090_v24 = vld [vmem:[#allocation2 + $0x11] sm:$0xff] }
 0x15f   : > { %6529 = vmatprep.mubr.f32.mxu0 %v8411_v43  ;;  %6766 = vmatprep.mubr.f32.mxu1 %v8411_v43 }
 0x160   : > { %7385 = vmatpush3.bf16.msra.mxu1 %v7382_v15  ;;  %7451 = vmatprep.subr.bf16.mxu0 %v8701_v47  ;;  %v3770_v15 = vld [vmem:[#allocation2 + $0x6f] sm:$0xff] }
 0x161   : > { %7387 = vmatprep.subr.bf16.mxu1 %v8703_v62 }
 0x162   : > { %6530 = vmatmul.mubr.f32.gmra.mrb[50].mxu0 %v8407_v39  ;;  %6767 = vmatmul.mubr.f32.gmra.mrb[16].mxu1 %v8407_v39  ;;  %v9851_v39 = vmax.f32 %v8543_v46, 0.0 }
 0x163   : > { %6532 = vmatprep.mubr.f32.mxu0 %v8436_v0  ;;  %6769 = vmatprep.mubr.f32.mxu1 %v8436_v0  ;;  %v2091_v0 = vld [vmem:[#allocation2 + $0x19] sm:$0xff] }
 0x166   : > { %6533 = vmatmul.mubr.f32.gmra.mrb[52].mxu0 %v8429_v21  ;;  %6770 = vmatmul.mubr.f32.gmra.mrb[18].mxu1 %v8429_v21  ;;  %v876_v21 = vadd.s32 40, %v8129_v22 }
 0x167   : > { %6535 = vmatprep.mubr.f32.mxu0 %v8457_v59  ;;  %6772 = vmatprep.mubr.f32.mxu1 %v8457_v59  ;;  %v5739_v59 = vld [vmem:[%s9714_s2 + $0x318] sm:$0xff] }
 0x168   : > { %v942_v46 = vand.u32 15, %v876_v21 }
 0x16a   : > { %6536 = vmatmul.mubr.f32.gmra.mrb[54].mxu0 %v8449_v3  ;;  %6773 = vmatmul.mubr.f32.gmra.mrb[20].mxu1 %v8449_v3  ;;  %v5738_v3 = vld [vmem:[%s9714_s2 + $0x310] sm:$0xff]  ;;  %vm8791_vm14 = vcmp.lt.s32.totalorder %v942_v46, 15 }
 0x16b   : > { %6538 = vmatprep.mubr.f32.mxu0 %v8477_v45  ;;  %6775 = vmatprep.mubr.f32.mxu1 %v8477_v45  ;;  %v914_v45 = vand.u32 15, %v872_v40  ;;  %v7390_v34 = vpack.c.bf16 %v5739_v59, %v5738_v3  ;;  %v5792_v40 = vld [vmem:[%s9714_s2 + $0x440] sm:$0xff]  ;;  %v5794_v59 = vld [vmem:[%s9714_s2 + $0x450] sm:$0xff] }
 0x16c   : > { %v5746_v46 = vld [vmem:[%s9714_s2 + $0x350] sm:$0xff] }
 0x16d   : > { %vm8747_vm0 = vcmp.lt.s32.totalorder %v914_v45, 15  ;;  %v5793_v45 = vld [vmem:[%s9714_s2 + $0x448] sm:$0xff]  ;;  %v7406_v14 = vpack.c.bf16 %v5747_v35, %v5746_v46 }
 0x16e   : > { %6539 = vmatmul.mubr.f32.gmra.mrb[56].mxu0 %v8473_v56  ;;  %6776 = vmatmul.mubr.f32.gmra.mrb[22].mxu1 %v8473_v56  ;;  %v8863_v21 = vpack.c.bf16 %v5793_v45, %v5792_v40  ;;  %v7410_v40 = vpack.c.bf16 %v5749_v58, %v5748_v12  ;;  %v5798_v45 = vld [vmem:[%s9714_s2 + $0x470] sm:$0xff]  ;;  %v892_v58 = vadd.s32 168, %v8129_v22 }
 0x16f   : > { %6541 = vmatprep.mubr.f32.mxu0 %v8496_v44  ;;  %6778 = vmatprep.mubr.f32.mxu1 %v8496_v44  ;;  %v874_v44 = vadd.s32 24, %v8129_v22  ;;  %v8964_v35 = vld [vmem:[#allocation2 + $0x89] sm:$0xff] }
 0x170   : > { %9863 = vst [vmem:[#allocation34_spill] sm:$0xff] %v8863_v21 }
 0x171   : > { %v928_v43 = vand.u32 15, %v874_v44  ;;  %v8847_v44 = vld [vmem:[#allocation2 + $0x51] sm:$0xff] }
 0x172   : > { %6542 = vmatmul.mubr.f32.gmra.mrb[58].mxu0 %v8489_v51  ;;  %6779 = vmatmul.mubr.f32.gmra.mrb[24].mxu1 %v8489_v51  ;;  %v9854_v51 = vmax.f32 %v8539_v54, 0.0  ;;  %v5788_v54 = vld [vmem:[%s9714_s2 + $0x420] sm:$0xff] }
 0x173   : > { %6544 = vmatprep.mubr.f32.mxu0 %v8515_v28  ;;  %6781 = vmatprep.mubr.f32.mxu1 %v8515_v28  ;;  %v5786_v28 = vld [vmem:[%s9714_s2 + $0x410] sm:$0xff]  ;;  %vm8764_vm15 = vcmp.lt.s32.totalorder %v928_v43, 15  ;;  %v8797_v1 = vpack.c.bf16 %v5789_v26, %v5788_v54  ;;  %v884_v43 = vadd.s32 104, %v8129_v22  ;;  %v886_v54 = vadd.s32 120, %v8129_v22 }
 0x174   : > { %v8758_v56 = vpack.c.bf16 %v5787_v2, %v5786_v28  ;;  %v5745_v28 = vld [vmem:[%s9714_s2 + $0x348] sm:$0xff]  ;;  %v3772_v2 = vld [vmem:[#allocation2 + $0x7f] sm:$0xff] }
 0x176   : > { %6545 = vmatmul.mubr.f32.gmra.mrb[60].mxu0 %v8507_v37  ;;  %6782 = vmatmul.mubr.f32.gmra.mrb[26].mxu1 %v8507_v37  ;;  %v2092_v37 = vld [vmem:[#allocation2 + $0x21] sm:$0xff] }
 0x177   : > { %6547 = vmatprep.mubr.f32.mxu0 %v8534_v27  ;;  %6784 = vmatprep.mubr.f32.mxu1 %v8534_v27  ;;  %v5773_v27 = vld [vmem:[%s9714_s2 + $0x3a8] sm:$0xff] }
 0x17a   : > { %6548 = vmatmul.mubr.f32.gmra.mrb[62].mxu0 %v8530_v42  ;;  %6785 = vmatmul.mubr.f32.gmra.mrb[28].mxu1 %v8530_v42 }
 0x17b   : > { %6787 = vmatprep.mubr.f32.mxu1 %v9851_v39  ;;  %6582 = vmatprep.mubr.f32.mxu0 %v2090_v24  ;;  %v5744_v24 = vld [vmem:[%s9714_s2 + $0x340] sm:$0xff]  ;;  %v984_v39 = vand.u32 15, %v882_v33  ;;  %v8929_v33 = vpack.c.bf16 %v5797_v20, %v5796_v50  ;;  %v5769_v50 = vld [vmem:[%s9714_s2 + $0x388] sm:$0xff]  ;;  %v9873_v20 = vmov 0 }
 0x17c   : > { %v7402_v3 = vpack.c.bf16 %v5745_v28, %v5744_v24  ;;  %v5799_v24 = vld [vmem:[%s9714_s2 + $0x478] sm:$0xff]  ;;  %v8946_v28 = vld [vmem:[#allocation2 + $0x81] sm:$0xff] }
 0x17d   : > { %vm8890_vm11 = vcmp.lt.s32.totalorder %v984_v39, 15  ;;  %9869 = vst [vmem:[#allocation36_spill] sm:$0xff] %v8929_v33  ;;  %v5750_v39 = vld [vmem:[%s9714_s2 + $0x370] sm:$0xff]  ;;  %v8962_v46 = vpack.c.bf16 %v5799_v24, %v5798_v45  ;;  %v9000_v45 = vld [vmem:[#allocation2 + $0xa1] sm:$0xff]  ;;  %v1054_v24 = vand.u32 15, %v892_v58  ;;  %v9879_v58 = vmov 0 }
 0x17e   : > { %6583 = vmatmul.mubr.msk.f32.vlgmr.msra.gmra.mrb[32].mxu0 %vm8747_vm0, %v2091_v0  ;;  %6788 = vmatmul.mubr.f32.gmra.mrb[30].mxu1 %v9854_v51  ;;  %v8865_v0 = vld [vmem:[#allocation2 + $0x59] sm:$0xff] }
 0x17f   : > { %6585 = vmatprep.mubr.f32.mxu0 %v2092_v37  ;;  %6822 = vmatprep.mubr.f32.mxu1 %v2092_v37  ;;  %v5795_v51 = vld [vmem:[%s9714_s2 + $0x458] sm:$0xff]  ;;  %v8880_v37 = vld [vmem:[#allocation2 + $0x61] sm:$0xff]  ;;  %9872 = vst [vmem:[#allocation37_spill] sm:$0xff] %v8962_v46 }
 0x180   : > { %7453 = vmatpush3.bf16.msra.mxu0 %v8701_v47  ;;  %v8896_v26 = vpack.c.bf16 %v5795_v51, %v5794_v59  ;;  %v1026_v59 = vand.u32 15, %v888_v5  ;;  %v890_v51 = vadd.s32 152, %v8129_v22 }
 0x181   : > { %7455 = vmatprep.subr.bf16.mxu0 %v8758_v56 }
 0x182   : > { %6586 = vmatmul.mubr.msk.f32.gmra.mrb[34].mxu0 %vm8764_vm15, %v2093_v8  ;;  %6823 = vmatmul.mubr.msk.f32.vlgmr.msra.gmra.mrb[0].mxu1 %vm8747_vm0, %v2093_v8  ;;  %v998_v8 = vand.u32 15, %v884_v43  ;;  %9866 = vst [vmem:[#allocation35_spill] sm:$0xff] %v8896_v26  ;;  %v5751_v43 = vld [vmem:[%s9714_s2 + $0x378] sm:$0xff]  ;;  %vm8983_vm8 = vcmp.lt.s32.totalorder %v1026_v59, 15  ;;  %v1040_v12 = vand.u32 15, %v890_v51  ;;  %v9877_v51 = vmov 0 }
 0x183   : > { %7389 = vmatpush3.bf16.msra.mxu1 %v8703_v62  ;;  %6588 = vmatprep.mubr.f32.mxu0 %v8781_v4  ;;  %v7398_v62 = vpack.c.bf16 %v5743_v41, %v5742_v31  ;;  %v1012_v41 = vand.u32 15, %v886_v54  ;;  %v8973_v54 = vld [vmem:[#allocation2 + $0x91] sm:$0xff]  ;;  %v9874_v20 = vsel %vm8983_vm8, 4294967295, %v9873_v20  ;;  %v3776_v31 = vld [vmem:[#allocation2 + $0x9f] sm:$0xff] }
 0x184   : > { %6825 = vmatprep.mubr.f32.mxu1 %v8781_v4  ;;  %7391 = vmatprep.subr.bf16.mxu1 %v7390_v34  ;;  %vm8923_vm10 = vcmp.lt.s32.totalorder %v998_v8, 15  ;;  %v7414_v8 = vpack.c.bf16 %v5751_v43, %v5750_v39  ;;  %vm9004_vm7 = vcmp.lt.s32.totalorder %v1040_v12, 15  ;;  %v894_v39 = vadd.s32 184, %v8129_v22  ;;  %v9009_v43 = vld [vmem:[#allocation2 + $0xa9] sm:$0xff]  ;;  %v9018_v59 = vld [vmem:[#allocation2 + $0xb1] sm:$0xff]  ;;  %v9035_v12 = vld [vmem:[#allocation2 + $0xc1] sm:$0xff] }
 0x185   : > { %7457 = vmatpush3.bf16.msra.mxu0 %v8758_v56  ;;  %vm8956_vm9 = vcmp.lt.s32.totalorder %v1012_v41, 15  ;;  %v8989_v41 = vld [vmem:[#allocation2 + $0x99] sm:$0xff] }
 0x186   : > { %6589 = vmatmul.mubr.msk.f32.gmra.mrb[36].mxu0 %vm8791_vm14, %v8799_v53  ;;  %6826 = vmatmul.mubr.msk.f32.gmra.mrb[2].mxu1 %vm8764_vm15, %v8799_v53 }
 0x187   : > { %6591 = vmatprep.mubr.f32.mxu0 %v8814_v38  ;;  %6828 = vmatprep.mubr.f32.mxu1 %v8814_v38 }
 0x188   : > { %7393 = vmatpush3.bf16.msra.mxu1 %v7390_v34  ;;  %7459 = vmatprep.subr.bf16.mxu0 %v8797_v1  ;;  %v3774_v34 = vld [vmem:[#allocation2 + $0x8f] sm:$0xff] }
 0x189   : > { %7395 = vmatprep.subr.bf16.mxu1 %v7394_v19  ;;  %7461 = vmatpush3.bf16.msra.mxu0 %v8797_v1 }
 0x18a   : > { %6592 = vmatmul.mubr.msk.f32.gmra.mrb[38].mxu0 %vm8824_vm13, %v8832_v63  ;;  %6829 = vmatmul.mubr.msk.f32.gmra.mrb[4].mxu1 %vm8791_vm14, %v8832_v63 }
 0x18b   : > { %6594 = vmatprep.mubr.f32.mxu0 %v8847_v44  ;;  %6831 = vmatprep.mubr.f32.mxu1 %v8847_v44 }
 0x18c   : > { %7397 = vmatpush3.bf16.msra.mxu1 %v7394_v19  ;;  %7463 = vmatprep.subr.bf16.mxu0 %v8830_v16  ;;  %v8913_v19 = vld [vmem:[#allocation2 + $0x71] sm:$0xff] }
 0x18d   : > { %7399 = vmatprep.subr.bf16.mxu1 %v7398_v62  ;;  %7465 = vmatpush3.bf16.msra.mxu0 %v8830_v16 }
 0x18e   : > { %6595 = vmatmul.mubr.msk.f32.gmra.mrb[40].mxu0 %vm8857_vm12, %v8865_v0  ;;  %6832 = vmatmul.mubr.msk.f32.gmra.mrb[6].mxu1 %vm8824_vm13, %v8865_v0 }
 0x18f   : > { %6597 = vmatprep.mubr.f32.mxu0 %v8880_v37  ;;  %6834 = vmatprep.mubr.f32.mxu1 %v8880_v37 }
 0x190   : > { %7401 = vmatpush3.bf16.msra.mxu1 %v7398_v62  ;;  %7467 = vmatprep.subr.bf16.mxu0 %v8863_v21  ;;  %v8931_v62 = vld [vmem:[#allocation2 + $0x79] sm:$0xff] }
 0x191   : > { %7403 = vmatprep.subr.bf16.mxu1 %v7402_v3  ;;  %7469 = vmatpush3.bf16.msra.mxu0 %v8863_v21  ;;  %v9078_v21 = vld [vmem:[#allocation2 + $0xe9] sm:$0xff] }
 0x192   : > { %6598 = vmatmul.mubr.msk.f32.gmra.mrb[42].mxu0 %vm8890_vm11, %v8898_v29  ;;  %6835 = vmatmul.mubr.msk.f32.gmra.mrb[8].mxu1 %vm8857_vm12, %v8898_v29 }
 0x193   : > { %6600 = vmatprep.mubr.f32.mxu0 %v8913_v19  ;;  %6837 = vmatprep.mubr.f32.mxu1 %v8913_v19 }
 0x194   : > { %7405 = vmatpush3.bf16.msra.mxu1 %v7402_v3  ;;  %7471 = vmatprep.subr.bf16.mxu0 %v8896_v26  ;;  %v9870_v3 = vmov 0 }
 0x195   : > { %7407 = vmatprep.subr.bf16.mxu1 %v7406_v14  ;;  %7473 = vmatpush3.bf16.msra.mxu0 %v8896_v26  ;;  %v9871_v3 = vsel %vm8956_vm9, 4294967295, %v9870_v3  ;;  %v902_v26 = vadd.s32 248, %v8129_v22 }
 0x196   : > { %6601 = vmatmul.mubr.msk.f32.gmra.mrb[44].mxu0 %vm8923_vm10, %v8931_v62  ;;  %6838 = vmatmul.mubr.msk.f32.gmra.mrb[10].mxu1 %vm8890_vm11, %v8931_v62 }
 0x197   : > { %6603 = vmatprep.mubr.f32.mxu0 %v8946_v28  ;;  %6840 = vmatprep.mubr.f32.mxu1 %v8946_v28 }
 0x198   : > { %7409 = vmatpush3.bf16.msra.mxu1 %v7406_v14  ;;  %7475 = vmatprep.subr.bf16.mxu0 %v8929_v33  ;;  %v5768_v14 = vld [vmem:[%s9714_s2 + $0x380] sm:$0xff] }
 0x199   : > { %7411 = vmatprep.subr.bf16.mxu1 %v7410_v40  ;;  %7477 = vmatpush3.bf16.msra.mxu0 %v8929_v33  ;;  %v8992_v5 = vpack.c.bf16 %v5769_v50, %v5768_v14  ;;  %v896_v14 = vadd.s32 200, %v8129_v22  ;;  %v9027_v50 = vld [vmem:[#allocation2 + $0xb9] sm:$0xff]  ;;  %v9069_v33 = vld [vmem:[#allocation2 + $0xe1] sm:$0xff] }
 0x19a   : > { %6604 = vmatmul.mubr.msk.f32.gmra.mrb[46].mxu0 %vm8956_vm9, %v8964_v35  ;;  %6841 = vmatmul.mubr.msk.f32.gmra.mrb[12].mxu1 %vm8923_vm10, %v8964_v35 }
 0x19b   : > { %6606 = vmatprep.mubr.f32.mxu0 %v8973_v54  ;;  %6843 = vmatprep.mubr.f32.mxu1 %v8973_v54 }
 0x19c   : > { %7413 = vmatpush3.bf16.msra.mxu1 %v7410_v40  ;;  %7479 = vmatprep.subr.bf16.mxu0 %v8962_v46  ;;  %v9875_v40 = vmov 0 }
 0x19d   : > { %7415 = vmatprep.subr.bf16.mxu1 %v7414_v8  ;;  %7481 = vmatpush3.bf16.msra.mxu0 %v8962_v46  ;;  %v9876_v40 = vsel %vm9004_vm7, 4294967295, %v9875_v40  ;;  %v9061_v46 = vld [vmem:[#allocation2 + $0xd9] sm:$0xff] }
 0x19e   : > { %6607 = vmatmul.mubr.msk.f32.gmra.mrb[48].mxu0 %vm8983_vm8, %v8989_v41  ;;  %6844 = vmatmul.mubr.msk.f32.gmra.mrb[14].mxu1 %vm8956_vm9, %v8989_v41  ;;  %vm9022_vm9 = vcmp.lt.s32.totalorder %v1054_v24, 15  ;;  %v1082_v24 = vand.u32 15, %v896_v14 }
 0x19f   : > { %6609 = vmatprep.mubr.f32.mxu0 %v9000_v45  ;;  %6846 = vmatprep.mubr.f32.mxu1 %v9000_v45  ;;  %v9878_v51 = vsel %vm9022_vm9, 4294967295, %v9877_v51 }
 0x1a0   : > { %7417 = vmatpush3.bf16.msra.mxu1 %v7414_v8  ;;  %v1068_v8 = vand.u32 15, %v894_v39  ;;  %v898_v39 = vadd.s32 216, %v8129_v22  ;;  %v1124_v22 = vand.u32 15, %v902_v26  ;;  %v9110_v26 = vld [vmem:[#allocation2 + $0x109] sm:$0xff] }
 0x1a1   : > { %7419 = vmatprep.subr.bf16.mxu1 %v8992_v5  ;;  %9896 = vst [vmem:[#allocation45_spill] sm:$0xff] %v9110_v26 }
 0x1a2   : > { %6610 = vmatmul.mubr.msk.f32.gmra.mrb[50].mxu0 %vm9004_vm7, %v9009_v43  ;;  %6847 = vmatmul.mubr.msk.f32.gmra.mrb[16].mxu1 %vm8983_vm8, %v9009_v43  ;;  %vm9039_vm8 = vcmp.lt.s32.totalorder %v1068_v8, 15  ;;  %v9882_v8 = vmov 0  ;;  %v1096_v14 = vand.u32 15, %v898_v39  ;;  %v1110_v39 = vand.u32 15, %v900_v7 }
 0x1a3   : > { %6612 = vmatprep.mubr.f32.mxu0 %v9018_v59  ;;  %6849 = vmatprep.mubr.f32.mxu1 %v9018_v59  ;;  %v9880_v58 = vsel %vm9039_vm8, 4294967295, %v9879_v58  ;;  %v9888_v7 = vmov 0 }
 0x1a4   : > { %9881 = vst [vmem:[#allocation38_spill] sm:$0xff] %v9880_v58  ;;  %v9086_v58 = vld [vmem:[#allocation2 + $0xf1] sm:$0xff] }
 0x1a6   : > { %6613 = vmatmul.mubr.msk.f32.gmra.mrb[52].mxu0 %vm9022_vm9, %v9027_v50  ;;  %6850 = vmatmul.mubr.msk.f32.gmra.mrb[18].mxu1 %vm9004_vm7, %v9027_v50  ;;  %vm9056_vm7 = vcmp.lt.s32.totalorder %v1082_v24, 15  ;;  %v9885_v24 = vmov 0 }
 0x1a7   : > { %6615 = vmatprep.mubr.f32.mxu0 %v9035_v12  ;;  %6852 = vmatprep.mubr.f32.mxu1 %v9035_v12  ;;  %v9883_v8 = vsel %vm9056_vm7, 4294967295, %v9882_v8 }
 0x1a8   : > { %9884 = vst [vmem:[#allocation39_spill] sm:$0xff] %v9883_v8  ;;  %v9102_v8 = vld [vmem:[#allocation2 + $0x101] sm:$0xff] }
 0x1a9   : > { %9892 = vst [vmem:[#allocation43_spill] sm:$0xff] %v9102_v8 }
 0x1aa   : > { %6616 = vmatmul.mubr.msk.f32.gmra.mrb[54].mxu0 %vm9039_vm8, %v9044_v9  ;;  %6853 = vmatmul.mubr.msk.f32.gmra.mrb[20].mxu1 %vm9022_vm9, %v9044_v9  ;;  %vm9073_vm9 = vcmp.lt.s32.totalorder %v1096_v14, 15  ;;  %v9094_v14 = vld [vmem:[#allocation2 + $0xf9] sm:$0xff] }
 0x1ab   : > { %6618 = vmatprep.mubr.f32.mxu0 %v9052_v6  ;;  %6855 = vmatprep.mubr.f32.mxu1 %v9052_v6  ;;  %v9886_v24 = vsel %vm9073_vm9, 4294967295, %v9885_v24  ;;  %9891 = vst [vmem:[#allocation42_spill] sm:$0xff] %v9094_v14 }
 0x1ac   : > { %9887 = vst [vmem:[#allocation40_spill] sm:$0xff] %v9886_v24  ;;  %v9118_v24 = vld [vmem:[#allocation2 + $0x111] sm:$0xff] }
 0x1ad   : > { %9897 = vst [vmem:[#allocation46_spill] sm:$0xff] %v9118_v24 }
 0x1ae   : > { %6619 = vmatmul.mubr.msk.f32.gmra.mrb[56].mxu0 %vm9056_vm7, %v9061_v46  ;;  %6856 = vmatmul.mubr.msk.f32.gmra.mrb[22].mxu1 %vm9039_vm8, %v9061_v46  ;;  %vm9090_vm8 = vcmp.lt.s32.totalorder %v1110_v39, 15  ;;  %v9893_v39 = vmov 0 }
 0x1af   : > { %6621 = vmatprep.mubr.f32.mxu0 %v9069_v33  ;;  %6858 = vmatprep.mubr.f32.mxu1 %v9069_v33  ;;  %v9889_v7 = vsel %vm9090_vm8, 4294967295, %v9888_v7 }
 0x1b0   : > { %9890 = vst [vmem:[#allocation41_spill] sm:$0xff] %v9889_v7  ;;  %v3762_v7 = vld [vmem:[#allocation2 + $0x2f] sm:$0xff] }
 0x1b2   : > { %6622 = vmatmul.mubr.msk.f32.gmra.mrb[58].mxu0 %vm9073_vm9, %v9078_v21  ;;  %6859 = vmatmul.mubr.msk.f32.gmra.mrb[24].mxu1 %vm9056_vm7, %v9078_v21  ;;  %vm9106_vm7 = vcmp.lt.s32.totalorder %v1124_v22, 15  ;;  %v9122_v22 = vld [vmem:[#allocation2 + $0x119] sm:$0xff] }
 0x1b3   : > { %6624 = vmatprep.mubr.f32.mxu0 %v9086_v58  ;;  %6861 = vmatprep.mubr.f32.mxu1 %v9086_v58  ;;  %v9894_v39 = vsel %vm9106_vm7, 4294967295, %v9893_v39 }
 0x1b4   : > { %9895 = vst [vmem:[#allocation44_spill] sm:$0xff] %v9894_v39  ;;  %v5772_v39 = vld [vmem:[%s9714_s2 + $0x3a0] sm:$0xff] }
 0x1b5   : > { %v7426_v42 = vpack.c.bf16 %v5773_v27, %v5772_v39  ;;  %v4172_v39 = vld [vmem:[#allocation2 + $0x70] sm:$0xff]  ;;  %v9913_v27 = vld [vmem:[#allocation35_spill] sm:$0xff] }
 0x1b6   : > { %6625 = vmatmul.mubr.msk.f32.gmra.mrb[60].mxu0 %vm9090_vm8, %v9094_v14  ;;  %6862 = vmatmul.mubr.msk.f32.gmra.mrb[26].mxu1 %vm9073_vm9, %v9094_v14  ;;  %v5771_v14 = vld [vmem:[%s9714_s2 + $0x398] sm:$0xff] }
 0x1b7   : > { %6627 = vmatprep.mubr.f32.mxu0 %v9102_v8  ;;  %6864 = vmatprep.mubr.f32.mxu1 %v9102_v8  ;;  %v5770_v8 = vld [vmem:[%s9714_s2 + $0x390] sm:$0xff] }
 0x1ba   : > { %6628 = vmatmul.mubr.msk.f32.gmra.mrb[62].mxu0 %vm9106_vm7, %v9110_v26  ;;  %6865 = vmatmul.mubr.msk.f32.gmra.mrb[28].mxu1 %vm9090_vm8, %v9110_v26  ;;  %v3764_v26 = vld [vmem:[#allocation2 + $0x3f] sm:$0xff] }
 0x1bb   : > { %6867 = vmatprep.mubr.f32.mxu1 %v9118_v24  ;;  %7062 = vmatprep.mubr.f32.mxu0 %v8781_v4  ;;  %v7422_v4 = vpack.c.bf16 %v5771_v14, %v5770_v8  ;;  %v3763_v24 = vld [vmem:[#allocation2 + $0x37] sm:$0xff]  ;;  %v4170_v14 = vld [vmem:[#allocation2 + $0x60] sm:$0xff] }
 0x1be   : > { %6868 = vmatmul.mubr.msk.f32.gmra.mrb[30].mxu1 %vm9106_vm7, %v9122_v22  ;;  %7063 = vmatmul.mubr.msk.f32.vlgmr.msra.gmra.mrb[64].mxu0 %vm8747_vm0, %v8799_v53  ;;  %v3766_v53 = vld [vmem:[#allocation2 + $0x4f] sm:$0xff]  ;;  %vm9898_vm0 = vnez %v9832_v61  ;;  %v3777_v61 = vld [vmem:[#allocation2 + $0xa7] sm:$0xff] }
 0x1bf   : > { %6902 = vmatprep.mubr.msk.f32.mxu1 %vm8138_vm1, %v3762_v7  ;;  %7065 = vmatprep.mubr.f32.mxu0 %v8814_v38  ;;  %v5774_v38 = vld [vmem:[%s9714_s2 + $0x3b0] sm:$0xff]  ;;  %vm9899_vm1 = vnez %v9871_v3 }
 0x1c0   : > { %v3779_v3 = vld [vmem:[#allocation2 + $0xb7] sm:$0xff] }
 0x1c2   : > { %6903 = vmatmul.mubr.f32.vlgmr.msra.gmra.mrb[0].mxu1 %v3763_v24  ;;  %7066 = vmatmul.mubr.msk.f32.gmra.mrb[66].mxu0 %vm8764_vm15, %v8832_v63  ;;  %v3767_v63 = vld [vmem:[#allocation2 + $0x57] sm:$0xff]  ;;  %vm9910_vm15 = vnez %v9848_v36  ;;  %v4167_v36 = vld [vmem:[#allocation2 + $0x48] sm:$0xff] }
 0x1c3   : > { %7421 = vmatpush3.bf16.msra.mxu1 %v8992_v5  ;;  %6905 = vmatprep.mubr.msk.f32.mxu1 %vm8246_vm2, %v3764_v26  ;;  %vm9900_vm2 = vnez %v9834_v60  ;;  %v3780_v60 = vld [vmem:[#allocation2 + $0xbf] sm:$0xff]  ;;  %v9912_v26 = vld [vmem:[#allocation34_spill] sm:$0xff] }
 0x1c4   : > { %7068 = vmatprep.mubr.f32.mxu0 %v8847_v44  ;;  %7423 = vmatprep.subr.bf16.mxu1 %v7422_v4  ;;  %v7430_v44 = vpack.c.bf16 %v5775_v25, %v5774_v38  ;;  %v9915_v38 = vld [vmem:[#allocation37_spill] sm:$0xff] }
 0x1c5   : > { %v4179_v25 = vld [vmem:[#allocation2 + $0xa8] sm:$0xff] }
 0x1c6   : > { %6906 = vmatmul.mubr.f32.gmra.mrb[2].mxu1 %v3765_v30  ;;  %7069 = vmatmul.mubr.msk.f32.gmra.mrb[68].mxu0 %vm8791_vm14, %v8865_v0  ;;  %v5776_v0 = vld [vmem:[%s9714_s2 + $0x3c0] sm:$0xff]  ;;  %vm9909_vm14 = vnez %v9846_v52  ;;  %v4175_v30 = vld [vmem:[#allocation2 + $0x88] sm:$0xff] }
 0x1c7   : > { %6908 = vmatprep.mubr.msk.f32.mxu1 %vm8281_vm3, %v3766_v53  ;;  %7071 = vmatprep.mubr.f32.mxu0 %v8880_v37  ;;  %v3769_v37 = vld [vmem:[#allocation2 + $0x67] sm:$0xff]  ;;  %v7434_v5 = vpack.c.bf16 %v5777_v23, %v5776_v0  ;;  %vm9901_vm3 = vnez %v9874_v20  ;;  %v4177_v53 = vld [vmem:[#allocation2 + $0x98] sm:$0xff]  ;;  %v4184_v23 = vld [vmem:[#allocation2 + $0xd0] sm:$0xff] }
 0x1c8   : > { %7425 = vmatpush3.bf16.msra.mxu1 %v7422_v4  ;;  %v3781_v20 = vld [vmem:[#allocation2 + $0xc7] sm:$0xff]  ;;  %v4173_v4 = vld [vmem:[#allocation2 + $0x78] sm:$0xff] }
 0x1c9   : > { %7427 = vmatprep.subr.bf16.mxu1 %v7426_v42  ;;  %v4166_v52 = vld [vmem:[#allocation2 + $0x40] sm:$0xff]  ;;  %v4183_v0 = vld [vmem:[#allocation2 + $0xc8] sm:$0xff] }
 0x1ca   : > { %6909 = vmatmul.mubr.f32.gmra.mrb[4].mxu1 %v3767_v63  ;;  %7072 = vmatmul.mubr.msk.f32.gmra.mrb[70].mxu0 %vm8824_vm13, %v8898_v29  ;;  %v5778_v29 = vld [vmem:[%s9714_s2 + $0x3d0] sm:$0xff]  ;;  %vm9908_vm13 = vnez %v9844_v48  ;;  %v3793_v48 = vld [vmem:[#allocation2 + $0x127] sm:$0xff] }
 0x1cb   : > { %6911 = vmatprep.mubr.msk.f32.mxu1 %vm8306_vm4, %v3768_v18  ;;  %7074 = vmatprep.mubr.f32.mxu0 %v8913_v19  ;;  %v3771_v19 = vld [vmem:[#allocation2 + $0x77] sm:$0xff]  ;;  %v7438_v8 = vpack.c.bf16 %v5779_v17, %v5778_v29  ;;  %vm9902_vm4 = vnez %v9836_v57  ;;  %v3782_v57 = vld [vmem:[#allocation2 + $0xcf] sm:$0xff]  ;;  %v4182_v18 = vld [vmem:[#allocation2 + $0xc0] sm:$0xff] }
 0x1cc   : > { %7429 = vmatpush3.bf16.msra.mxu1 %v7426_v42  ;;  %v9914_v42 = vld [vmem:[#allocation36_spill] sm:$0xff]  ;;  %v4180_v63 = vld [vmem:[#allocation2 + $0xb0] sm:$0xff]  ;;  %v4189_v17 = vld [vmem:[#allocation2 + $0xf8] sm:$0xff] }
 0x1cd   : > { %7431 = vmatprep.subr.bf16.mxu1 %v7430_v44  ;;  %v4188_v29 = vld [vmem:[#allocation2 + $0xf0] sm:$0xff] }
 0x1ce   : > { %6912 = vmatmul.mubr.f32.gmra.mrb[6].mxu1 %v3769_v37  ;;  %7075 = vmatmul.mubr.msk.f32.gmra.mrb[72].mxu0 %vm8857_vm12, %v8931_v62  ;;  %v5780_v62 = vld [vmem:[%s9714_s2 + $0x3e0] sm:$0xff]  ;;  %vm9907_vm12 = vnez %v9842_v32  ;;  %v3791_v32 = vld [vmem:[#allocation2 + $0x117] sm:$0xff] }
 0x1cf   : > { %6914 = vmatprep.mubr.msk.f32.mxu1 %vm8322_vm5, %v3770_v15  ;;  %7077 = vmatprep.mubr.f32.mxu0 %v8946_v28  ;;  %v3773_v28 = vld [vmem:[#allocation2 + $0x87] sm:$0xff]  ;;  %v7442_v24 = vpack.c.bf16 %v5781_v11, %v5780_v62  ;;  %vm9903_vm5 = vnez %v9876_v40  ;;  %v3784_v40 = vld [vmem:[#allocation2 + $0xdf] sm:$0xff] }
 0x1d0   : > { %7433 = vmatpush3.bf16.msra.mxu1 %v7430_v44  ;;  %v4181_v44 = vld [vmem:[#allocation2 + $0xb8] sm:$0xff]  ;;  %v4187_v15 = vld [vmem:[#allocation2 + $0xe8] sm:$0xff]  ;;  %v4194_v62 = vld [vmem:[#allocation2 + $0x120] sm:$0xff] }
 0x1d1   : > { %7435 = vmatprep.subr.bf16.mxu1 %v7434_v5  ;;  %v4185_v37 = vld [vmem:[#allocation2 + $0xd8] sm:$0xff] }
 0x1d2   : > { %6915 = vmatmul.mubr.f32.gmra.mrb[8].mxu1 %v3771_v19  ;;  %7078 = vmatmul.mubr.msk.f32.gmra.mrb[74].mxu0 %vm8890_vm11, %v8964_v35  ;;  %v5782_v35 = vld [vmem:[%s9714_s2 + $0x3f0] sm:$0xff]  ;;  %vm9906_vm11 = vnez %v9840_v49  ;;  %v3789_v49 = vld [vmem:[#allocation2 + $0x107] sm:$0xff]  ;;  %v4193_v11 = vld [vmem:[#allocation2 + $0x118] sm:$0xff] }
 0x1d3   : > { %6917 = vmatprep.mubr.msk.f32.mxu1 %vm8357_vm6, %v3772_v2  ;;  %7080 = vmatprep.mubr.f32.mxu0 %v8973_v54  ;;  %v3775_v54 = vld [vmem:[#allocation2 + $0x97] sm:$0xff]  ;;  %v7446_v7 = vpack.c.bf16 %v5783_v13, %v5782_v35  ;;  %vm9904_vm6 = vnez %v9838_v55  ;;  %v3786_v55 = vld [vmem:[#allocation2 + $0xef] sm:$0xff]  ;;  %v4190_v19 = vld [vmem:[#allocation2 + $0x100] sm:$0xff] }
 0x1d4   : > { %7437 = vmatpush3.bf16.msra.mxu1 %v7434_v5  ;;  %v4186_v5 = vld [vmem:[#allocation2 + $0xe0] sm:$0xff]  ;;  %v4192_v2 = vld [vmem:[#allocation2 + $0x110] sm:$0xff]  ;;  %v4195_v35 = vld [vmem:[#allocation2 + $0x128] sm:$0xff] }
 0x1d5   : > { %7439 = vmatprep.subr.bf16.mxu1 %v7438_v8 }
 0x1d6   : > { %6918 = vmatmul.mubr.f32.gmra.mrb[10].mxu1 %v3773_v28  ;;  %7081 = vmatmul.mubr.msk.f32.gmra.mrb[76].mxu0 %vm8923_vm10, %v8989_v41  ;;  %v3778_v41 = vld [vmem:[#allocation2 + $0xaf] sm:$0xff]  ;;  %vm9905_vm10 = vnez %v9878_v51  ;;  %v5078_v28 = vld [vmem:[%s9715_s3] sm:$0xff] }
 0x1d7   : > { %6920 = vmatprep.mubr.msk.f32.mxu1 %vm9898_vm0, %v3774_v34  ;;  %7083 = vmatprep.mubr.f32.mxu0 %v9000_v45  ;;  %v3783_v45 = vld [vmem:[#allocation2 + $0xd7] sm:$0xff]  ;;  %vm9911_vm0 = vnez %v9850_v10 }
 0x1d8   : > { %7441 = vmatpush3.bf16.msra.mxu1 %v7438_v8  ;;  %v4164_v51 = vld [vmem:[#allocation2 + $0x30] sm:$0xff]  ;;  %v4169_v10 = vld [vmem:[#allocation2 + $0x58] sm:$0xff]  ;;  %v4191_v8 = vld [vmem:[#allocation2 + $0x108] sm:$0xff] }
 0x1d9   : > { %7443 = vmatprep.subr.bf16.mxu1 %v7442_v24  ;;  %v5080_v34 = vld [vmem:[%s9715_s3 + $0x10] sm:$0xff] }
 0x1da   : > { %6921 = vmatmul.mubr.f32.gmra.mrb[12].mxu1 %v3775_v54  ;;  %7084 = vmatmul.mubr.msk.f32.gmra.mrb[78].mxu0 %vm9899_vm1, %v9009_v43  ;;  %v3788_v43 = vld [vmem:[#allocation2 + $0xff] sm:$0xff] }
 0x1db   : > { %6923 = vmatprep.mubr.msk.f32.mxu1 %vm9900_vm2, %v3776_v31  ;;  %7086 = vmatprep.mubr.f32.mxu0 %v9018_v59  ;;  %v3792_v59 = vld [vmem:[#allocation2 + $0x11f] sm:$0xff] }
 0x1dc   : > { %7445 = vmatpush3.bf16.msra.mxu1 %v7442_v24  ;;  %v5079_v24 = vld [vmem:[%s9715_s3 + $0x8] sm:$0xff]  ;;  %v5081_v54 = vld [vmem:[%s9715_s3 + $0x18] sm:$0xff]  ;;  %v5082_v31 = vld [vmem:[%s9715_s3 + $0x20] sm:$0xff] }
 0x1dd   : > { %7447 = vmatprep.subr.bf16.mxu1 %v7446_v7  ;;  %v7482_v13 = vpack.c.bf16 %v5079_v24, %v5078_v28 }
 0x1de   : > { %6924 = vmatmul.mubr.f32.gmra.mrb[14].mxu1 %v3777_v61  ;;  %7087 = vmatmul.mubr.msk.f32.gmra.mrb[80].mxu0 %vm9901_vm3, %v9027_v50  ;;  %v4165_v50 = vld [vmem:[#allocation2 + $0x38] sm:$0xff]  ;;  %v5083_v61 = vld [vmem:[%s9715_s3 + $0x28] sm:$0xff] }
 0x1df   : > { %6926 = vmatprep.mubr.msk.f32.mxu1 %vm9902_vm4, %v3778_v41  ;;  %7089 = vmatprep.mubr.f32.mxu0 %v9035_v12  ;;  %v4168_v12 = vld [vmem:[#allocation2 + $0x50] sm:$0xff]  ;;  %v7490_v41 = vpack.c.bf16 %v5083_v61, %v5082_v31 }
 0x1e0   : > { %7449 = vmatpush3.bf16.msra.mxu1 %v7446_v7  ;;  %v7486_v7 = vpack.c.bf16 %v5081_v54, %v5080_v34  ;;  %7483 = vmatprep.subr.bf16.mxu0 %v7482_v13 }
 0x1e1   : > { %7514 = vmatprep.subr.bf16.mxu1 %v8701_v47  ;;  %7485 = vmatpush3.bf16.msra.mxu0 %v7482_v13 }
 0x1e2   : > { %6927 = vmatmul.mubr.f32.gmra.mrb[16].mxu1 %v3779_v3  ;;  %7090 = vmatmul.mubr.msk.f32.gmra.mrb[82].mxu0 %vm9903_vm5, %v9044_v9  ;;  %v3785_v9 = vld [vmem:[#allocation2 + $0xe7] sm:$0xff]  ;;  %v5084_v3 = vld [vmem:[%s9715_s3 + $0x30] sm:$0xff] }
 0x1e3   : > { %6929 = vmatprep.mubr.msk.f32.mxu1 %vm9904_vm6, %v3780_v60  ;;  %7092 = vmatprep.mubr.f32.mxu0 %v9052_v6  ;;  %v3787_v6 = vld [vmem:[#allocation2 + $0xf7] sm:$0xff] }
 0x1e4   : > { %7487 = vmatprep.subr.bf16.mxu0 %v7486_v7  ;;  %v5085_v60 = vld [vmem:[%s9715_s3 + $0x38] sm:$0xff] }
 0x1e5   : > { %7489 = vmatpush3.bf16.msra.mxu0 %v7486_v7 }
 0x1e6   : > { %6930 = vmatmul.mubr.f32.gmra.mrb[18].mxu1 %v3781_v20  ;;  %7093 = vmatmul.mubr.msk.f32.gmra.mrb[84].mxu0 %vm9905_vm10, %v9061_v46  ;;  %v3790_v46 = vld [vmem:[#allocation2 + $0x10f] sm:$0xff] }
 0x1e7   : > { %6932 = vmatprep.mubr.msk.f32.mxu1 %vm9906_vm11, %v3782_v57  ;;  %v9916_v20 = vld [vmem:[#allocation38_spill] sm:$0xff]  ;;  %7491 = vmatprep.subr.bf16.mxu0 %v7490_v41  ;;  %v7494_v57 = vpack.c.bf16 %v5085_v60, %v5084_v3 }
 0x1e8   : > { %vm9917_vm1 = vnez %v9916_v20 }
 0x1e9   : > { %7493 = vmatpush3.bf16.msra.mxu0 %v7490_v41 }
 0x1ea   : > { %6933 = vmatmul.mubr.f32.gmra.mrb[20].mxu1 %v3783_v45  ;;  %v5087_v45 = vld [vmem:[%s9715_s3 + $0x48] sm:$0xff]  ;;  %7495 = vmatprep.subr.bf16.mxu0 %v7494_v57 }
 0x1eb   : > { %6935 = vmatprep.mubr.msk.f32.mxu1 %vm9907_vm12, %v3784_v40  ;;  %v9918_v40 = vld [vmem:[#allocation42_spill] sm:$0xff] }
 0x1ed   : > { %7497 = vmatpush3.bf16.msra.mxu0 %v7494_v57 }
 0x1ee   : > { %6936 = vmatmul.mubr.f32.gmra.mrb[22].mxu1 %v3785_v9  ;;  %v9919_v9 = vld [vmem:[#allocation39_spill] sm:$0xff] }
 0x1ef   : > { %6938 = vmatprep.mubr.msk.f32.mxu1 %vm9908_vm13, %v3786_v55  ;;  %vm9920_vm2 = vnez %v9919_v9  ;;  %v9921_v55 = vld [vmem:[#allocation43_spill] sm:$0xff] }
 0x1f2   : > { %6939 = vmatmul.mubr.f32.gmra.mrb[24].mxu1 %v3787_v6 }
 0x1f3   : > { %6941 = vmatprep.mubr.msk.f32.mxu1 %vm9909_vm14, %v3788_v43  ;;  %v9924_v43 = vld [vmem:[#allocation46_spill] sm:$0xff] }
 0x1f6   : > { %6942 = vmatmul.mubr.f32.gmra.mrb[26].mxu1 %v3789_v49  ;;  %v4564_v49 = vld [vmem:[#allocation2 + $0x121] sm:$0xff] }
 0x1f7   : > { %6944 = vmatprep.mubr.msk.f32.mxu1 %vm9910_vm15, %v3790_v46 }
 0x1fa   : > { %6945 = vmatmul.mubr.f32.gmra.mrb[28].mxu1 %v3791_v32  ;;  %v4565_v32 = vld [vmem:[#allocation2 + $0x129] sm:$0xff] }
 0x1fb   : > { %6947 = vmatprep.mubr.msk.f32.mxu1 %vm9911_vm0, %v3792_v59 }
 0x1fe   : > { %6948 = vmatmul.mubr.f32.gmra.mrb[30].mxu1 %v3793_v48 }
 0x1ff   : > { %6982 = vmatprep.mubr.f32.mxu1 %v4164_v51 }
 0x202   : > { %6983 = vmatmul.mubr.f32.vlgmr.msra.gmra.mrb[0].mxu1 %v4165_v50 }
 0x203   : > { %7522 = vmatpush3.bf16.msra.mxu1 %v8701_v47  ;;  %6985 = vmatprep.mubr.f32.mxu1 %v4166_v52  ;;  %v4171_v47 = vld [vmem:[#allocation2 + $0x68] sm:$0xff]  ;;  %v5088_v52 = vld [vmem:[%s9715_s3 + $0x50] sm:$0xff] }
 0x204   : > { %7515 = vmatprep.subr.bf16.mxu1 %v8758_v56 }
 0x206   : > { %6986 = vmatmul.mubr.f32.gmra.mrb[2].mxu1 %v4167_v36 }
 0x207   : > { %6988 = vmatprep.mubr.f32.mxu1 %v4168_v12  ;;  %7523 = vmatpush3.bf16.msra.mxu1 %v8758_v56  ;;  %v4174_v56 = vld [vmem:[#allocation2 + $0x80] sm:$0xff] }
 0x208   : > { %7516 = vmatprep.subr.bf16.mxu1 %v8797_v1 }
 0x20a   : > { %6989 = vmatmul.mubr.f32.gmra.mrb[4].mxu1 %v4169_v10 }
 0x20b   : > { %6991 = vmatprep.mubr.f32.mxu1 %v4170_v14  ;;  %7524 = vmatpush3.bf16.msra.mxu1 %v8797_v1  ;;  %v4176_v1 = vld [vmem:[#allocation2 + $0x90] sm:$0xff]  ;;  %v5090_v14 = vld [vmem:[%s9715_s3 + $0x60] sm:$0xff] }
 0x20c   : > { %7517 = vmatprep.subr.bf16.mxu1 %v8830_v16 }
 0x20e   : > { %6992 = vmatmul.mubr.f32.gmra.mrb[6].mxu1 %v4171_v47  ;;  %v5091_v47 = vld [vmem:[%s9715_s3 + $0x68] sm:$0xff] }
 0x20f   : > { %6994 = vmatprep.mubr.f32.mxu1 %v4172_v39  ;;  %7525 = vmatpush3.bf16.msra.mxu1 %v8830_v16  ;;  %v4178_v16 = vld [vmem:[#allocation2 + $0xa0] sm:$0xff] }
 0x210   : > { %7518 = vmatprep.subr.bf16.mxu1 %v9912_v26 }
 0x212   : > { %6995 = vmatmul.mubr.f32.gmra.mrb[8].mxu1 %v4173_v4 }
 0x213   : > { %6997 = vmatprep.mubr.f32.mxu1 %v4174_v56  ;;  %7526 = vmatpush3.bf16.msra.mxu1 %v9912_v26  ;;  %v7506_v26 = vpack.c.bf16 %v5091_v47, %v5090_v14  ;;  %v5092_v56 = vld [vmem:[%s9715_s3 + $0x70] sm:$0xff] }
 0x214   : > { %7519 = vmatprep.subr.bf16.mxu1 %v9913_v27 }
 0x216   : > { %6998 = vmatmul.mubr.f32.gmra.mrb[10].mxu1 %v4175_v30 }
 0x217   : > { %7000 = vmatprep.mubr.f32.mxu1 %v4176_v1  ;;  %7527 = vmatpush3.bf16.msra.mxu1 %v9913_v27  ;;  %v5093_v27 = vld [vmem:[%s9715_s3 + $0x78] sm:$0xff] }
 0x218   : > { %7520 = vmatprep.subr.bf16.mxu1 %v9914_v42  ;;  %v7510_v1 = vpack.c.bf16 %v5093_v27, %v5092_v56 }
 0x21a   : > { %7001 = vmatmul.mubr.f32.gmra.mrb[12].mxu1 %v4177_v53 }
 0x21b   : > { %7003 = vmatprep.mubr.f32.mxu1 %v4178_v16  ;;  %7528 = vmatpush3.bf16.msra.mxu1 %v9914_v42 }
 0x21c   : > { %7521 = vmatprep.subr.bf16.mxu1 %v9915_v38 }
 0x21e   : > { %7004 = vmatmul.mubr.f32.gmra.mrb[14].mxu1 %v4179_v25 }
 0x21f   : > { %7006 = vmatprep.mubr.f32.mxu1 %v4180_v63  ;;  %7529 = vmatpush3.bf16.msra.mxu1 %v9915_v38 }
 0x222   : > { %7007 = vmatmul.mubr.f32.gmra.mrb[16].mxu1 %v4181_v44 }
 0x223   : > { %7009 = vmatprep.mubr.f32.mxu1 %v4182_v18 }
 0x226   : > { %7010 = vmatmul.mubr.f32.gmra.mrb[18].mxu1 %v4183_v0 }
 0x227   : > { %7012 = vmatprep.mubr.f32.mxu1 %v4184_v23 }
 0x22a   : > { %7013 = vmatmul.mubr.f32.gmra.mrb[20].mxu1 %v4185_v37 }
 0x22b   : > { %7015 = vmatprep.mubr.f32.mxu1 %v4186_v5 }
 0x22e   : > { %7016 = vmatmul.mubr.f32.gmra.mrb[22].mxu1 %v4187_v15 }
 0x22f   : > { %7018 = vmatprep.mubr.f32.mxu1 %v4188_v29 }
 0x232   : > { %7019 = vmatmul.mubr.f32.gmra.mrb[24].mxu1 %v4189_v17 }
 0x233   : > { %7021 = vmatprep.mubr.f32.mxu1 %v4190_v19 }
 0x236   : > { %7022 = vmatmul.mubr.f32.gmra.mrb[26].mxu1 %v4191_v8 }
 0x237   : > { %7024 = vmatprep.mubr.f32.mxu1 %v4192_v2 }
 0x23a   : > { %7025 = vmatmul.mubr.f32.gmra.mrb[28].mxu1 %v4193_v11 }
 0x23b   : > { %7027 = vmatprep.mubr.f32.mxu1 %v4194_v62 }
 0x23e   : > { %7028 = vmatmul.mubr.f32.gmra.mrb[30].mxu1 %v4195_v35 }
 0x23f   : > { %7095 = vmatprep.mubr.f32.mxu1 %v9069_v33  ;;  %v5086_v33 = vld [vmem:[%s9715_s3 + $0x40] sm:$0xff] }
 0x242   : > { %7096 = vmatmul.mubr.msk.f32.vlgmr.msra.gmra.mrb[22].mxu1 %vm9917_vm1, %v9078_v21  ;;  %v7498_v21 = vpack.c.bf16 %v5087_v45, %v5086_v33 }
 0x243   : > { %7098 = vmatprep.mubr.f32.mxu1 %v9086_v58  ;;  %v9922_v58 = vld [vmem:[#allocation45_spill] sm:$0xff] }
 0x244   : > { %7499 = vmatprep.subr.bf16.mxu0 %v7498_v21 }
 0x245   : > { %7501 = vmatpush3.bf16.msra.mxu0 %v7498_v21 }
 0x246   : > { %7099 = vmatmul.mubr.msk.f32.gmra.mrb[24].mxu1 %vm9920_vm2, %v9918_v40 }
 0x247   : > { %7101 = vmatprep.mubr.f32.mxu1 %v9921_v55 }
 0x24a   : > { %7102 = vmatmul.mubr.msk.f32.gmra.mrb[26].mxu1 %vm9073_vm9, %v9922_v58 }
 0x24b   : > { %7104 = vmatprep.mubr.f32.mxu1 %v9924_v43 }
 0x24e   : > { %7105 = vmatmul.mubr.msk.f32.gmra.mrb[28].mxu1 %vm9090_vm8, %v9122_v22  ;;  %v5089_v22 = vld [vmem:[%s9715_s3 + $0x58] sm:$0xff] }
 0x24f   : > { %7107 = vmatprep.mubr.f32.mxu1 %v4564_v49  ;;  %v7502_v12 = vpack.c.bf16 %v5089_v22, %v5088_v52 }
 0x251   : > { %v9307_v59 = vpop.f32.mrb[32].mxu0  ;;  %7503 = vmatprep.subr.bf16.mxu0 %v7502_v12 }
 0x252   : > { %v9309_v48 = vpop.f32.mrb[33].mxu0  ;;  %7108 = vmatmul.mubr.msk.f32.gmra.mrb[30].mxu1 %vm9106_vm7, %v4565_v32  ;;  %7505 = vmatpush3.bf16.msra.mxu0 %v7502_v12  ;;  %v9423_v12 = vld [vmem:[%s9718_s6] ss:$0 sm:$0xff]  ;;  %vm9937_vm7 = vcmask 130048  }
 0x253   : > { %7507 = vmatprep.subr.bf16.mxu0 %v7506_v26  ;;  %vm9939_vm8 = vmmov %vm9937_vm7 }
 0x254   : > { %vm9941_vm9 = vmmov %vm9937_vm7 }
 0x255   : > { %v9313_v50 = vpop.f32.mrb[34].mxu0  ;;  %vm9943_vm3 = vmmov %vm9937_vm7 }
 0x256   : > { %v9321_v36 = vpop.f32.mrb[35].mxu0  ;;  %7509 = vmatpush3.bf16.msra.mxu0 %v7506_v26  ;;  %v9429_v26 = vld [vmem:[%s9719_s7] ss:$0 sm:$0xff]  ;;  %vm9945_vm4 = vmmov %vm9943_vm3 }
 0x257   : > { %7511 = vmatprep.subr.bf16.mxu0 %v7510_v1  ;;  %vm9947_vm5 = vmmov %vm9943_vm3 }
 0x258   : > { %vm9949_vm6 = vmmov %vm9943_vm3 }
 0x259   : > { %v9323_v10 = vpop.f32.mrb[36].mxu0  ;;  %vm9951_vm10 = vmmov %vm9943_vm3 }
 0x25a   : > { %v9331_v39 = vpop.f32.mrb[37].mxu0  ;;  %7513 = vmatpush3.bf16.msra.mxu0 %v7510_v1  ;;  %vm9953_vm11 = vmmov %vm9943_vm3 }
 0x25b   : > { %vm9955_vm12 = vmmov %vm9943_vm3 }
 0x25c   : > { %vm9957_vm13 = vmmov %vm9943_vm3 }
 0x25d   : > { %v9333_v4 = vpop.f32.mrb[38].mxu0  ;;  %vm9959_vm14 = vmmov %vm9943_vm3 }
 0x25e   : > { %v9341_v30 = vpop.f32.mrb[39].mxu0  ;;  %vm9961_vm15 = vmmov %vm9943_vm3 }
 0x25f   : > { %vm9963_vm0 = vmmov %vm9943_vm3 }
 0x260   : > { %vm9965_vm1 = vmmov %vm9963_vm0 }
 0x261   : > { %v9343_v42 = vpop.f32.mrb[40].mxu0  ;;  %vm9967_vm2 = vmmov %vm9963_vm0 }
 0x262   : > { %v9345_v53 = vpop.f32.mrb[41].mxu0 }
 0x265   : > { %v9347_v16 = vpop.f32.mrb[42].mxu0 }
 0x266   : > { %v9349_v38 = vpop.f32.mrb[43].mxu0 }
 0x269   : > { %v9351_v25 = vpop.f32.mrb[44].mxu0 }
 0x26a   : > { %v9353_v63 = vpop.f32.mrb[45].mxu0 }
 0x26d   : > { %v9355_v44 = vpop.f32.mrb[46].mxu0 }
 0x26e   : > { %v9357_v18 = vpop.f32.mrb[47].mxu0 }
 0x271   : > { %v9359_v0 = vpop.f32.mrb[48].mxu0 }
 0x272   : > { %v9361_v23 = vpop.f32.mrb[49].mxu0 }
 0x275   : > { %v9363_v37 = vpop.f32.mrb[50].mxu0 }
 0x276   : > { %v9365_v5 = vpop.f32.mrb[51].mxu0 }
 0x279   : > { %v9367_v15 = vpop.f32.mrb[52].mxu0 }
 0x27a   : > { %v9369_v29 = vpop.f32.mrb[53].mxu0 }
 0x27d   : > { %v9371_v17 = vpop.f32.mrb[54].mxu0 }
 0x27e   : > { %v9373_v19 = vpop.f32.mrb[55].mxu0 }
 0x281   : > { %v9375_v8 = vpop.f32.mrb[56].mxu0 }
 0x282   : > { %v9377_v2 = vpop.f32.mrb[57].mxu0 }
 0x285   : > { %v9379_v62 = vpop.f32.mrb[58].mxu0 }
 0x286   : > { %v9381_v11 = vpop.f32.mrb[59].mxu0 }
 0x287   : > { %9927 = vst [vmem:[#allocation34_spill] sm:$0xff] %v9381_v11 }
 0x289   : > { %v9383_v28 = vpop.f32.mrb[60].mxu0 }
 0x28a   : > { %9928 = vst [vmem:[#allocation35_spill] sm:$0xff] %v9383_v28  ;;  %v9385_v24 = vpop.f32.mrb[61].mxu0 }
 0x28b   : > { %9929 = vst [vmem:[#allocation36_spill] sm:$0xff] %v9385_v24 }
 0x28d   : > { %v9387_v34 = vpop.f32.mrb[62].mxu0 }
 0x28e   : > { %9930 = vst [vmem:[#allocation37_spill] sm:$0xff] %v9387_v34  ;;  %v9389_v35 = vpop.f32.mrb[63].mxu0 }
 0x28f   : > { %9931 = vst [vmem:[#allocation38_spill] sm:$0xff] %v9389_v35 }
 0x291   : > { %v7064_v13 = vpop.f32.mrb[64].mxu0 }
 0x292   : > { %v4681_v54 = vpop.f32.mrb[65].mxu0 }
 0x295   : > { %v7067_v7 = vpop.f32.mrb[66].mxu0 }
 0x296   : > { %v4691_v31 = vpop.f32.mrb[67].mxu0 }
 0x299   : > { %v7070_v61 = vpop.f32.mrb[68].mxu0 }
 0x29a   : > { %v4701_v41 = vpop.f32.mrb[69].mxu0 }
 0x29d   : > { %v7073_v3 = vpop.f32.mrb[70].mxu0 }
 0x29e   : > { %v4711_v60 = vpop.f32.mrb[71].mxu0 }
 0x2a1   : > { %v9391_v20 = vpop.f32.mrb[72].mxu0 }
 0x2a2   : > { %v9393_v57 = vpop.f32.mrb[73].mxu0 }
 0x2a5   : > { %v9395_v33 = vpop.f32.mrb[74].mxu0 }
 0x2a6   : > { %v9397_v45 = vpop.f32.mrb[75].mxu0 }
 0x2a9   : > { %v9399_v40 = vpop.f32.mrb[76].mxu0 }
 0x2aa   : > { %v9401_v9 = vpop.f32.mrb[77].mxu0 }
 0x2ad   : > { %v9403_v55 = vpop.f32.mrb[78].mxu0 }
 0x2ae   : > { %v9405_v21 = vpop.f32.mrb[79].mxu0 }
 0x2b1   : > { %v9407_v58 = vpop.f32.mrb[80].mxu0 }
 0x2b2   : > { %v9409_v6 = vpop.f32.mrb[81].mxu0 }
 0x2b5   : > { %v9411_v43 = vpop.f32.mrb[82].mxu0 }
 0x2b6   : > { %v9413_v49 = vpop.f32.mrb[83].mxu0 }
 0x2b9   : > { %v9415_v46 = vpop.f32.mrb[84].mxu0 }
 0x2ba   : > { %v9417_v32 = vpop.f32.mrb[85].mxu0 }
 0x2d5   : > { %v6984_v51 = vpop.f32.mrb[0].mxu1 }
 0x2d6   : > { %v7530_v52 = vadd.f32 %v6984_v51, %v9307_v59  ;;  %v4279_v22 = vpop.f32.mrb[1].mxu1 }
 0x2d7   : > { %v7532_v14 = vadd.f32 %v4279_v22, %v9309_v48 }
 0x2d8   : > { %v7531_v47 = vadd.f32 %v7530_v52, %v7064_v13 }
 0x2d9   : > { %v7533_v56 = vadd.f32 %v7532_v14, %v4681_v54  ;;  %v6987_v27 = vpop.f32.mrb[2].mxu1 }
 0x2da   : > { %v4976_v1 = vmul.f32 %v7531_v47, %v9423_v12  ;;  %v7534_v59 = vadd.f32 %v6987_v27, %v9313_v50  ;;  %v4289_v51 = vpop.f32.mrb[3].mxu1 }
 0x2db   : > { %v4975_v35 = vmul.f32 %v7533_v56, %v9423_v12  ;;  %v7536_v34 = vadd.f32 %v4289_v51, %v9321_v36 }
 0x2dc   : > { %v5015_v24 = vadd.f32 %v9429_v26, %v4976_v1  ;;  %v7535_v48 = vadd.f32 %v7534_v59, %v7067_v7 }
 0x2dd   : > { %v7537_v13 = vadd.f32 %v7536_v34, %v4691_v31  ;;  %v6990_v52 = vpop.f32.mrb[4].mxu1  ;;  %v5014_v22 = vadd.f32 %v9429_v26, %v4975_v35 }
 0x2de   : > { %v4978_v28 = vmul.f32 %v7535_v48, %v9423_v12  ;;  %v7538_v54 = vadd.f32 %v6990_v52, %v9323_v10  ;;  %v4299_v14 = vpop.f32.mrb[5].mxu1  ;;  %v5047_v56 = vmax.f32 %v5015_v24, 0.0 }
 0x2df   : > { %v4977_v47 = vmul.f32 %v7537_v13, %v9423_v12  ;;  %v7540_v50 = vadd.f32 %v4299_v14, %v9331_v39  ;;  %v5046_v27 = vmax.f32 %v5014_v22, 0.0 }
 0x2e0   : > { %v7539_v11 = vadd.f32 %v7538_v54, %v7070_v61  ;;  %v5017_v36 = vadd.f32 %v9429_v26, %v4978_v28 }
 0x2e1   : > { %v7541_v1 = vadd.f32 %v7540_v50, %v4701_v41  ;;  %v6993_v7 = vpop.f32.mrb[6].mxu1  ;;  %7142 = vmatprep.mubr.f32.mxu0 %v5046_v27  ;;  %v5016_v34 = vadd.f32 %v9429_v26, %v4977_v47 }
 0x2e2   : > { %v4980_v35 = vmul.f32 %v7539_v11, %v9423_v12  ;;  %v7542_v31 = vadd.f32 %v6993_v7, %v9333_v4  ;;  %v4309_v10 = vpop.f32.mrb[7].mxu1  ;;  %7143 = vmatmul.mubr.f32.vlgmr.msra.gmra.mrb[86].mxu0 %v5047_v56  ;;  %v5049_v61 = vmax.f32 %v5017_v36, 0.0 }
 0x2e3   : > { %v4979_v59 = vmul.f32 %v7541_v1, %v9423_v12  ;;  %v7544_v39 = vadd.f32 %v4309_v10, %v9341_v30  ;;  %v5048_v51 = vmax.f32 %v5016_v34, 0.0 }
 0x2e4   : > { %v7543_v24 = vadd.f32 %v7542_v31, %v7073_v3  ;;  %v5019_v28 = vadd.f32 %v9429_v26, %v4980_v35 }
 0x2e5   : > { %v7545_v41 = vadd.f32 %v7544_v39, %v4711_v60  ;;  %v6996_v48 = vpop.f32.mrb[8].mxu1  ;;  %7145 = vmatprep.mubr.f32.mxu0 %v5048_v51  ;;  %v5018_v13 = vadd.f32 %v9429_v26, %v4979_v59 }
 0x2e6   : > { %v4982_v11 = vmul.f32 %v7543_v24, %v9423_v12  ;;  %v7546_v4 = vadd.f32 %v6996_v48, %v9343_v42  ;;  %v4319_v52 = vpop.f32.mrb[9].mxu1  ;;  %7146 = vmatmul.mubr.f32.gmra.mrb[88].mxu0 %v5049_v61  ;;  %v5051_v14 = vmax.f32 %v5019_v28, 0.0 }
 0x2e7   : > { %v4981_v22 = vmul.f32 %v7545_v41, %v9423_v12  ;;  %v7548_v30 = vadd.f32 %v4319_v52, %v9345_v53  ;;  %v5050_v54 = vmax.f32 %v5018_v13, 0.0 }
 0x2e8   : > { %v7547_v3 = vadd.f32 %v7546_v4, %v9391_v20  ;;  %v5021_v60 = vadd.f32 %v9429_v26, %v4982_v11 }
 0x2e9   : > { %v7549_v47 = vadd.f32 %v7548_v30, %v9393_v57  ;;  %v6999_v50 = vpop.f32.mrb[10].mxu1  ;;  %7148 = vmatprep.mubr.f32.mxu0 %v5050_v54  ;;  %v5020_v27 = vadd.f32 %v9429_v26, %v4981_v22 }
 0x2ea   : > { %v4984_v42 = vmul.f32 %v7547_v3, %v9423_v12  ;;  %v7550_v56 = vadd.f32 %v6999_v50, %v9347_v16  ;;  %v4329_v36 = vpop.f32.mrb[11].mxu1  ;;  %7149 = vmatmul.mubr.f32.gmra.mrb[90].mxu0 %v5051_v14  ;;  %v5053_v34 = vmax.f32 %v5021_v60, 0.0 }
 0x2eb   : > { %v4983_v53 = vmul.f32 %v7549_v47, %v9423_v12  ;;  %v7552_v1 = vadd.f32 %v4329_v36, %v9349_v38  ;;  %v5052_v20 = vmax.f32 %v5020_v27, 0.0 }
 0x2ec   : > { %v7551_v7 = vadd.f32 %v7550_v56, %v9395_v33  ;;  %v5023_v57 = vadd.f32 %v9429_v26, %v4984_v42 }
 0x2ed   : > { %v7553_v35 = vadd.f32 %v7552_v1, %v9397_v45  ;;  %v7002_v31 = vpop.f32.mrb[12].mxu1  ;;  %7151 = vmatprep.mubr.f32.mxu0 %v5052_v20  ;;  %v5022_v10 = vadd.f32 %v9429_v26, %v4983_v53 }
 0x2ee   : > { %v4986_v16 = vmul.f32 %v7551_v7, %v9423_v12  ;;  %v7554_v59 = vadd.f32 %v7002_v31, %v9351_v25  ;;  %v4339_v39 = vpop.f32.mrb[13].mxu1  ;;  %7152 = vmatmul.mubr.f32.gmra.mrb[92].mxu0 %v5053_v34  ;;  %v5055_v61 = vmax.f32 %v5023_v57, 0.0 }
 0x2ef   : > { %v4985_v38 = vmul.f32 %v7553_v35, %v9423_v12  ;;  %v7556_v51 = vadd.f32 %v4339_v39, %v9353_v63  ;;  %v5054_v33 = vmax.f32 %v5022_v10, 0.0 }
 0x2f0   : > { %v7555_v24 = vadd.f32 %v7554_v59, %v9399_v40  ;;  %v5025_v45 = vadd.f32 %v9429_v26, %v4986_v16 }
 0x2f1   : > { %v7557_v28 = vadd.f32 %v7556_v51, %v9401_v9  ;;  %v7005_v41 = vpop.f32.mrb[14].mxu1  ;;  %7154 = vmatprep.mubr.f32.mxu0 %v5054_v33  ;;  %v5024_v48 = vadd.f32 %v9429_v26, %v4985_v38 }
 0x2f2   : > { %v4988_v25 = vmul.f32 %v7555_v24, %v9423_v12  ;;  %v7558_v13 = vadd.f32 %v7005_v41, %v9355_v44  ;;  %v4349_v11 = vpop.f32.mrb[15].mxu1  ;;  %7155 = vmatmul.mubr.f32.gmra.mrb[94].mxu0 %v5055_v61  ;;  %v5057_v22 = vmax.f32 %v5025_v45, 0.0 }
 0x2f3   : > { %v4987_v63 = vmul.f32 %v7557_v28, %v9423_v12  ;;  %v7560_v4 = vadd.f32 %v4349_v11, %v9357_v18  ;;  %v5056_v40 = vmax.f32 %v5024_v48, 0.0 }
 0x2f4   : > { %v7559_v52 = vadd.f32 %v7558_v13, %v9403_v55  ;;  %v5027_v9 = vadd.f32 %v9429_v26, %v4988_v25 }
 0x2f5   : > { %v7561_v30 = vadd.f32 %v7560_v4, %v9405_v21  ;;  %v7008_v54 = vpop.f32.mrb[16].mxu1  ;;  %7157 = vmatprep.mubr.f32.mxu0 %v5056_v40  ;;  %v5026_v3 = vadd.f32 %v9429_v26, %v4987_v63 }
 0x2f6   : > { %v4990_v44 = vmul.f32 %v7559_v52, %v9423_v12  ;;  %v7562_v14 = vadd.f32 %v7008_v54, %v9359_v0  ;;  %v4359_v60 = vpop.f32.mrb[17].mxu1  ;;  %7158 = vmatmul.mubr.f32.gmra.mrb[96].mxu0 %v5057_v22  ;;  %v5059_v27 = vmax.f32 %v5027_v9, 0.0 }
 0x2f7   : > { %v4989_v18 = vmul.f32 %v7561_v30, %v9423_v12  ;;  %v7564_v47 = vadd.f32 %v4359_v60, %v9361_v23  ;;  %v5058_v55 = vmax.f32 %v5026_v3, 0.0 }
 0x2f8   : > { %v7563_v50 = vadd.f32 %v7562_v14, %v9407_v58  ;;  %v5029_v21 = vadd.f32 %v9429_v26, %v4990_v44 }
 0x2f9   : > { %v7565_v42 = vadd.f32 %v7564_v47, %v9409_v6  ;;  %v7011_v56 = vpop.f32.mrb[18].mxu1  ;;  %7160 = vmatprep.mubr.f32.mxu0 %v5058_v55  ;;  %v5028_v36 = vadd.f32 %v9429_v26, %v4989_v18 }
 0x2fa   : > { %v4992_v0 = vmul.f32 %v7563_v50, %v9423_v12  ;;  %v7566_v53 = vadd.f32 %v7011_v56, %v9363_v37  ;;  %v4369_v1 = vpop.f32.mrb[19].mxu1  ;;  %7161 = vmatmul.mubr.f32.gmra.mrb[98].mxu0 %v5059_v27  ;;  %v5061_v34 = vmax.f32 %v5029_v21, 0.0 }
 0x2fb   : > { %v4991_v23 = vmul.f32 %v7565_v42, %v9423_v12  ;;  %v7568_v20 = vadd.f32 %v4369_v1, %v9365_v5  ;;  %v5060_v58 = vmax.f32 %v5028_v36, 0.0  ;;  %v9933_v42 = vld [vmem:[#allocation35_spill] sm:$0xff] }
 0x2fc   : > { %v7567_v7 = vadd.f32 %v7566_v53, %v9411_v43  ;;  %v5031_v6 = vadd.f32 %v9429_v26, %v4992_v0  ;;  %v9934_v53 = vld [vmem:[#allocation36_spill] sm:$0xff] }
 0x2fd   : > { %v7569_v57 = vadd.f32 %v7568_v20, %v9413_v49  ;;  %v7014_v35 = vpop.f32.mrb[20].mxu1  ;;  %7163 = vmatprep.mubr.f32.mxu0 %v5060_v58  ;;  %v5030_v31 = vadd.f32 %v9429_v26, %v4991_v23 }
 0x2fe   : > { %v4994_v37 = vmul.f32 %v7567_v7, %v9423_v12  ;;  %v7570_v10 = vadd.f32 %v7014_v35, %v9367_v15  ;;  %v4379_v16 = vpop.f32.mrb[21].mxu1  ;;  %7164 = vmatmul.mubr.f32.gmra.mrb[100].mxu0 %v5061_v34  ;;  %v5063_v38 = vmax.f32 %v5031_v6, 0.0  ;;  %v9935_v6 = vld [vmem:[#allocation37_spill] sm:$0xff] }
 0x2ff   : > { %v4993_v5 = vmul.f32 %v7569_v57, %v9423_v12  ;;  %v7572_v59 = vadd.f32 %v4379_v16, %v9369_v29  ;;  %v5062_v43 = vmax.f32 %v5030_v31, 0.0 }
 0x300   : > { %v7571_v39 = vadd.f32 %v7570_v10, %v9415_v46  ;;  %v5033_v49 = vadd.f32 %v9429_v26, %v4994_v37  ;;  %v9936_v10 = vld [vmem:[#allocation38_spill] sm:$0xff] }
 0x301   : > { %v7573_v51 = vadd.f32 %v7572_v59, %v9417_v32  ;;  %7166 = vmatprep.mubr.f32.mxu0 %v5062_v43  ;;  %v5032_v33 = vadd.f32 %v9429_v26, %v4993_v5 }
 0x302   : > { %v4996_v24 = vmul.f32 %v7571_v39, %v9423_v12  ;;  %7167 = vmatmul.mubr.f32.gmra.mrb[102].mxu0 %v5063_v38  ;;  %v5065_v45 = vmax.f32 %v5033_v49, 0.0 }
 0x303   : > { %v4995_v15 = vmul.f32 %v7573_v51, %v9423_v12  ;;  %v5064_v61 = vmax.f32 %v5032_v33, 0.0 }
 0x304   : > { %v5035_v29 = vadd.f32 %v9429_v26, %v4996_v24 }
 0x305   : > { %7169 = vmatprep.mubr.f32.mxu0 %v5064_v61  ;;  %v5034_v46 = vadd.f32 %v9429_v26, %v4995_v15  ;;  %v9542_v15 = vld [vmem:[%s9720_s8] ss:$0 sm:$0xff] }
 0x306   : > { %7170 = vmatmul.mubr.f32.gmra.mrb[104].mxu0 %v5065_v45  ;;  %v5067_v41 = vmax.f32 %v5035_v29, 0.0  ;;  %v9547_v61 = vld [vmem:[%s9721_s9] ss:$0 sm:$0xff] }
 0x307   : > { %v5066_v28 = vmax.f32 %v5034_v46, 0.0 }
 0x309   : > { %7172 = vmatprep.mubr.f32.mxu0 %v5066_v28 }
 0x30a   : > { %7173 = vmatmul.mubr.f32.gmra.mrb[106].mxu0 %v5067_v41 }
 0x315   : > { %v7097_v32 = vpop.f32.mrb[22].mxu1 }
 0x316   : > { %v7574_v48 = vadd.f32 %v7097_v32, %v9371_v17  ;;  %v4791_v25 = vpop.f32.mrb[23].mxu1  ;;  %v7795_v32 = vld [vmem:[%s7872_s19 + $0x8] sm:$0xff] }
 0x317   : > { %v7575_v13 = vadd.f32 %v4791_v25, %v9373_v19 }
 0x318   : > { %v4998_v11 = vmul.f32 %v7574_v48, %v9423_v12 }
 0x319   : > { %v4997_v63 = vmul.f32 %v7575_v13, %v9423_v12  ;;  %v7100_v4 = vpop.f32.mrb[24].mxu1 }
 0x31a   : > { %v7576_v40 = vadd.f32 %v7100_v4, %v9375_v8  ;;  %v4801_v52 = vpop.f32.mrb[25].mxu1  ;;  %v5037_v22 = vadd.f32 %v9429_v26, %v4998_v11  ;;  %v9932_v8 = vld [vmem:[#allocation34_spill] sm:$0xff]  ;;  %v7796_v11 = vld [vmem:[%s7872_s19] sm:$0xff] }
 0x31b   : > { %v7577_v9 = vadd.f32 %v4801_v52, %v9377_v2  ;;  %v5036_v30 = vadd.f32 %v9429_v26, %v4997_v63 }
 0x31c   : > { %v5000_v54 = vmul.f32 %v7576_v40, %v9423_v12  ;;  %v5069_v60 = vmax.f32 %v5037_v22, 0.0 }
 0x31d   : > { %v4999_v17 = vmul.f32 %v7577_v9, %v9423_v12  ;;  %v7103_v3 = vpop.f32.mrb[26].mxu1  ;;  %v5068_v19 = vmax.f32 %v5036_v30, 0.0 }
 0x31e   : > { %v7578_v44 = vadd.f32 %v7103_v3, %v9379_v62  ;;  %v4811_v14 = vpop.f32.mrb[27].mxu1  ;;  %v5039_v18 = vadd.f32 %v9429_v26, %v5000_v54  ;;  %v9938_v54 = vld [vmem:[#allocation5_spill] sm:$0xff] }
 0x31f   : > { %v7579_v47 = vadd.f32 %v4811_v14, %v9932_v8  ;;  %7175 = vmatprep.mubr.f32.mxu0 %v5068_v19  ;;  %v5038_v55 = vadd.f32 %v9429_v26, %v4999_v17 }
 0x320   : > { %v5002_v2 = vmul.f32 %v7578_v44, %v9423_v12  ;;  %7176 = vmatmul.mubr.f32.gmra.mrb[108].mxu0 %v5069_v60  ;;  %v5071_v62 = vmax.f32 %v5039_v18, 0.0  ;;  %v9940_v44 = vld [vmem:[#allocation4_spill] sm:$0xff] }
 0x321   : > { %v5001_v50 = vmul.f32 %v7579_v47, %v9423_v12  ;;  %v7106_v27 = vpop.f32.mrb[28].mxu1  ;;  %v5070_v21 = vmax.f32 %v5038_v55, 0.0 }
 0x322   : > { %v7580_v56 = vadd.f32 %v7106_v27, %v9933_v42  ;;  %v4821_v36 = vpop.f32.mrb[29].mxu1  ;;  %v5041_v0 = vadd.f32 %v9429_v26, %v5002_v2 }
 0x323   : > { %v7581_v1 = vadd.f32 %v4821_v36, %v9934_v53  ;;  %7178 = vmatprep.mubr.f32.mxu0 %v5070_v21  ;;  %v5040_v23 = vadd.f32 %v9429_v26, %v5001_v50  ;;  %v9942_v50 = vld [vmem:[#allocation7_spill] sm:$0xff] }
 0x324   : > { %v5004_v20 = vmul.f32 %v7580_v56, %v9423_v12  ;;  %7179 = vmatmul.mubr.f32.gmra.mrb[110].mxu0 %v5071_v62  ;;  %v5073_v31 = vmax.f32 %v5041_v0, 0.0  ;;  %v9944_v56 = vld [vmem:[#allocation6_spill] sm:$0xff] }
 0x325   : > { %v5003_v58 = vmul.f32 %v7581_v1, %v9423_v12  ;;  %v7109_v7 = vpop.f32.mrb[30].mxu1  ;;  %v5072_v34 = vmax.f32 %v5040_v23, 0.0 }
 0x326   : > { %v7582_v57 = vadd.f32 %v7109_v7, %v9935_v6  ;;  %v4831_v35 = vpop.f32.mrb[31].mxu1  ;;  %v5043_v37 = vadd.f32 %v9429_v26, %v5004_v20 }
 0x327   : > { %v7583_v16 = vadd.f32 %v4831_v35, %v9936_v10  ;;  %7181 = vmatprep.mubr.f32.mxu0 %v5072_v34  ;;  %v5042_v5 = vadd.f32 %v9429_v26, %v5003_v58  ;;  %v9946_v58 = vld [vmem:[#allocation9_spill] sm:$0xff] }
 0x328   : > { %v5006_v59 = vmul.f32 %v7582_v57, %v9423_v12  ;;  %7182 = vmatmul.mubr.f32.gmra.mrb[112].mxu0 %v5073_v31  ;;  %v5075_v38 = vmax.f32 %v5043_v37, 0.0  ;;  %v9948_v57 = vld [vmem:[#allocation8_spill] sm:$0xff] }
 0x329   : > { %v5005_v43 = vmul.f32 %v7583_v16, %v9423_v12  ;;  %v5074_v39 = vmax.f32 %v5042_v5, 0.0 }
 0x32a   : > { %v5045_v49 = vadd.f32 %v9429_v26, %v5006_v59 }
 0x32b   : > { %7184 = vmatprep.mubr.f32.mxu0 %v5074_v39  ;;  %v5044_v51 = vadd.f32 %v9429_v26, %v5005_v43  ;;  %v9950_v43 = vld [vmem:[#allocation11_spill] sm:$0xff] }
 0x32c   : > { %7185 = vmatmul.mubr.f32.gmra.mrb[114].mxu0 %v5075_v38  ;;  %v5077_v24 = vmax.f32 %v5045_v49, 0.0 }
 0x32d   : > { %v5076_v33 = vmax.f32 %v5044_v51, 0.0  ;;  %v9952_v51 = vld [vmem:[#allocation10_spill] sm:$0xff] }
 0x32f   : > { %7187 = vmatprep.mubr.f32.mxu0 %v5076_v33 }
 0x330   : > { %7188 = vmatmul.mubr.f32.gmra.mrb[116].mxu0 %v5077_v24 }
 0x3b5   : > { %v7144_v12 = vpop.f32.mrb[86].mxu0 }
 0x3b6   : > { %v5327_v45 = vmul.f32 %v7144_v12, %v9542_v15  ;;  %v5160_v26 = vpop.f32.mrb[87].mxu0 }
 0x3b7   : > { %v5326_v29 = vmul.f32 %v9542_v15, %v5160_v26 }
 0x3b8   : > { %v5366_v46 = vadd.f32 %v9547_v61, %v5327_v45 }
 0x3b9   : > { %v5365_v28 = vadd.f32 %v9547_v61, %v5326_v29  ;;  %v7147_v41 = vpop.f32.mrb[88].mxu0 }
 0x3ba   : > { %v5398_v48 = vadd.f32 %v7795_v32, %v5366_v46  ;;  %v5329_v25 = vmul.f32 %v7147_v41, %v9542_v15  ;;  %v5170_v13 = vpop.f32.mrb[89].mxu0 }
 0x3bb   : > { %v5397_v63 = vadd.f32 %v7796_v11, %v5365_v28  ;;  %v5328_v4 = vmul.f32 %v9542_v15, %v5170_v13  ;;  %v9954_v28 = vld [vmem:[#allocation13_spill] sm:$0xff] }
 0x3bc   : > { %v5430_v40 = vmax.f32 %v5398_v48, 0.0  ;;  %v5368_v52 = vadd.f32 %v9547_v61, %v5329_v25  ;;  %v9956_v25 = vld [vmem:[#allocation12_spill] sm:$0xff] }
 0x3bd   : > { %v5429_v22 = vmax.f32 %v5397_v63, 0.0  ;;  %v5367_v9 = vadd.f32 %v9547_v61, %v5328_v4  ;;  %v7150_v30 = vpop.f32.mrb[90].mxu0 }
 0x3be   : > { %5462 = vst.msk [vmem:[%s7877_s22 + $0x8] sm:$0xff] %vm9937_vm7, %v5430_v40  ;;  %v5400_v17 = vadd.f32 %v5368_v52, %v9938_v54  ;;  %v5331_v3 = vmul.f32 %v7150_v30, %v9542_v15  ;;  %v5180_v19 = vpop.f32.mrb[91].mxu0  ;;  %vm9969_vm7 = vmmov %vm9963_vm0 }
 0x3bf   : > { %5461 = vst.msk [vmem:[%s7877_s22] sm:$0xff] %vm9939_vm8, %v5429_v22  ;;  %v5399_v14 = vadd.f32 %v5367_v9, %v9940_v44  ;;  %v5330_v60 = vmul.f32 %v9542_v15, %v5180_v19  ;;  %v9958_v9 = vld [vmem:[#allocation15_spill] sm:$0xff]  ;;  %vm9971_vm8 = vmmov %vm9963_vm0 }
 0x3c0   : > { %v5432_v18 = vmax.f32 %v5400_v17, 0.0  ;;  %v5370_v8 = vadd.f32 %v9547_v61, %v5331_v3  ;;  %v9960_v3 = vld [vmem:[#allocation14_spill] sm:$0xff] }
 0x3c1   : > { %v5431_v47 = vmax.f32 %v5399_v14, 0.0  ;;  %v5369_v55 = vadd.f32 %v9547_v61, %v5330_v60  ;;  %v7153_v2 = vpop.f32.mrb[92].mxu0 }
 0x3c2   : > { %5464 = vst.msk [vmem:[%s7877_s22 + $0x18] sm:$0xff] %vm9941_vm9, %v5432_v18  ;;  %v5402_v27 = vadd.f32 %v5370_v8, %v9942_v50  ;;  %v5333_v21 = vmul.f32 %v7153_v2, %v9542_v15  ;;  %v5190_v42 = vpop.f32.mrb[93].mxu0  ;;  %vm9973_vm9 = vmmov %vm9963_vm0 }
 0x3c3   : > { %5463 = vst.msk [vmem:[%s7877_s22 + $0x10] sm:$0xff] %vm9943_vm3, %v5431_v47  ;;  %v5401_v36 = vadd.f32 %v5369_v55, %v9944_v56  ;;  %v5332_v62 = vmul.f32 %v9542_v15, %v5190_v42  ;;  %v9962_v55 = vld [vmem:[#allocation17_spill] sm:$0xff]  ;;  %vm9975_vm3 = vmmov %vm9963_vm0 }
 0x3c4   : > { %v5434_v0 = vmax.f32 %v5402_v27, 0.0  ;;  %v5372_v53 = vadd.f32 %v9547_v61, %v5333_v21  ;;  %v9964_v21 = vld [vmem:[#allocation16_spill] sm:$0xff] }
 0x3c5   : > { %v5433_v1 = vmax.f32 %v5401_v36, 0.0  ;;  %v5371_v23 = vadd.f32 %v9547_v61, %v5332_v62  ;;  %v7156_v20 = vpop.f32.mrb[94].mxu0 }
 0x3c6   : > { %5466 = vst.msk [vmem:[%s7877_s22 + $0x28] sm:$0xff] %vm9945_vm4, %v5434_v0  ;;  %v5404_v7 = vadd.f32 %v5372_v53, %v9946_v58  ;;  %v5335_v34 = vmul.f32 %v7156_v20, %v9542_v15  ;;  %v5200_v6 = vpop.f32.mrb[95].mxu0  ;;  %vm9977_vm4 = vmmov %vm9963_vm0 }
 0x3c7   : > { %5465 = vst.msk [vmem:[%s7877_s22 + $0x20] sm:$0xff] %vm9947_vm5, %v5433_v1  ;;  %v5403_v35 = vadd.f32 %v5371_v23, %v9948_v57  ;;  %v5334_v31 = vmul.f32 %v9542_v15, %v5200_v6  ;;  %v9966_v23 = vld [vmem:[#allocation19_spill] sm:$0xff]  ;;  %vm9978_vm5 = vmmov %vm9963_vm0 }
 0x3c8   : > { %v5436_v37 = vmax.f32 %v5404_v7, 0.0  ;;  %v5374_v10 = vadd.f32 %v9547_v61, %v5335_v34  ;;  %v9968_v34 = vld [vmem:[#allocation18_spill] sm:$0xff] }
 0x3c9   : > { %v5435_v16 = vmax.f32 %v5403_v35, 0.0  ;;  %v5373_v5 = vadd.f32 %v9547_v61, %v5334_v31  ;;  %v7159_v59 = vpop.f32.mrb[96].mxu0 }
 0x3ca   : > { %5468 = vst.msk [vmem:[%s7877_s22 + $0x38] sm:$0xff] %vm9949_vm6, %v5436_v37  ;;  %v5406_v39 = vadd.f32 %v5374_v10, %v9950_v43  ;;  %v5337_v38 = vmul.f32 %v7159_v59, %v9542_v15  ;;  %v5210_v49 = vpop.f32.mrb[97].mxu0  ;;  %vm9981_vm6 = vmmov %vm9963_vm0 }
 0x3cb   : > { %5467 = vst.msk [vmem:[%s7877_s22 + $0x30] sm:$0xff] %vm9951_vm10, %v5435_v16  ;;  %v5405_v33 = vadd.f32 %v5373_v5, %v9952_v51  ;;  %v5336_v24 = vmul.f32 %v9542_v15, %v5210_v49  ;;  %v9970_v5 = vld [vmem:[#allocation21_spill] sm:$0xff]  ;;  %vm9983_vm10 = vmmov %vm9963_vm0 }
 0x3cc   : > { %v5438_v12 = vmax.f32 %v5406_v39, 0.0  ;;  %v5376_v45 = vadd.f32 %v9547_v61, %v5337_v38  ;;  %v9972_v38 = vld [vmem:[#allocation20_spill] sm:$0xff] }
 0x3cd   : > { %v5437_v26 = vmax.f32 %v5405_v33, 0.0  ;;  %v5375_v29 = vadd.f32 %v9547_v61, %v5336_v24  ;;  %v7162_v46 = vpop.f32.mrb[98].mxu0 }
 0x3ce   : > { %5470 = vst.msk [vmem:[%s7877_s22 + $0x48] sm:$0xff] %vm9953_vm11, %v5438_v12  ;;  %v5408_v41 = vadd.f32 %v5376_v45, %v9954_v28  ;;  %v5339_v32 = vmul.f32 %v7162_v46, %v9542_v15  ;;  %v5220_v48 = vpop.f32.mrb[99].mxu0  ;;  %v9976_v46 = vld [vmem:[#allocation22_spill] sm:$0xff]  ;;  %vm9985_vm11 = vmmov %vm9963_vm0 }
 0x3cf   : > { %5469 = vst.msk [vmem:[%s7877_s22 + $0x40] sm:$0xff] %vm9955_vm12, %v5437_v26  ;;  %v5407_v13 = vadd.f32 %v5375_v29, %v9956_v25  ;;  %v5338_v11 = vmul.f32 %v9542_v15, %v5220_v48  ;;  %v9974_v26 = vld [vmem:[#allocation23_spill] sm:$0xff]  ;;  %vm9987_vm12 = vmmov %vm9963_vm0 }
 0x3d0   : > { %v5440_v63 = vmax.f32 %v5408_v41, 0.0  ;;  %v5378_v4 = vadd.f32 %v9547_v61, %v5339_v32 }
 0x3d1   : > { %v5439_v40 = vmax.f32 %v5407_v13, 0.0  ;;  %v5377_v52 = vadd.f32 %v9547_v61, %v5338_v11  ;;  %v7165_v22 = vpop.f32.mrb[100].mxu0 }
 0x3d2   : > { %5472 = vst.msk [vmem:[%s7877_s22 + $0x58] sm:$0xff] %vm9957_vm13, %v5440_v63  ;;  %v5410_v30 = vadd.f32 %v5378_v4, %v9958_v9  ;;  %v5341_v54 = vmul.f32 %v7165_v22, %v9542_v15  ;;  %v5230_v17 = vpop.f32.mrb[101].mxu0  ;;  %vm9989_vm13 = vmmov %vm9963_vm0 }
 0x3d3   : > { %5471 = vst.msk [vmem:[%s7877_s22 + $0x50] sm:$0xff] %vm9959_vm14, %v5439_v40  ;;  %v5409_v19 = vadd.f32 %v5377_v52, %v9960_v3  ;;  %v5340_v44 = vmul.f32 %v9542_v15, %v5230_v17  ;;  %v9979_v52 = vld [vmem:[#allocation25_spill] sm:$0xff]  ;;  %vm9991_vm14 = vmmov %vm9963_vm0 }
 0x3d4   : > { %v5442_v14 = vmax.f32 %v5410_v30, 0.0  ;;  %v5380_v60 = vadd.f32 %v9547_v61, %v5341_v54  ;;  %v9980_v54 = vld [vmem:[#allocation24_spill] sm:$0xff] }
 0x3d5   : > { %v5441_v18 = vmax.f32 %v5409_v19, 0.0  ;;  %v5379_v8 = vadd.f32 %v9547_v61, %v5340_v44  ;;  %v7168_v47 = vpop.f32.mrb[102].mxu0 }
 0x3d6   : > { %5474 = vst.msk [vmem:[%s7877_s22 + $0x68] sm:$0xff] %vm9961_vm15, %v5442_v14  ;;  %v5412_v2 = vadd.f32 %v5380_v60, %v9962_v55  ;;  %v5343_v50 = vmul.f32 %v7168_v47, %v9542_v15  ;;  %v5240_v27 = vpop.f32.mrb[103].mxu0  ;;  %vm9993_vm15 = vmmov %vm9963_vm0 }
 0x3d7   : > { %5473 = vst.msk [vmem:[%s7877_s22 + $0x60] sm:$0xff] %vm9963_vm0, %v5441_v18  ;;  %v5411_v42 = vadd.f32 %v5379_v8, %v9964_v21  ;;  %v5342_v56 = vmul.f32 %v9542_v15, %v5240_v27  ;;  %v9982_v8 = vld [vmem:[#allocation27_spill] sm:$0xff] }
 0x3d8   : > { %v5444_v36 = vmax.f32 %v5412_v2, 0.0  ;;  %v5382_v62 = vadd.f32 %v9547_v61, %v5343_v50  ;;  %v9984_v50 = vld [vmem:[#allocation26_spill] sm:$0xff] }
 0x3d9   : > { %v5443_v0 = vmax.f32 %v5411_v42, 0.0  ;;  %v5381_v53 = vadd.f32 %v9547_v61, %v5342_v56  ;;  %v7171_v1 = vpop.f32.mrb[104].mxu0 }
 0x3da   : > { %5476 = vst.msk [vmem:[%s7877_s22 + $0x78] sm:$0xff] %vm9965_vm1, %v5444_v36  ;;  %v5414_v20 = vadd.f32 %v5382_v62, %v9966_v23  ;;  %v5345_v58 = vmul.f32 %v7171_v1, %v9542_v15  ;;  %v5250_v7 = vpop.f32.mrb[105].mxu0  ;;  %vm9996_vm1 = vmmov %vm9963_vm0 }
 0x3db   : > { %5475 = vst.msk [vmem:[%s7877_s22 + $0x70] sm:$0xff] %vm9967_vm2, %v5443_v0  ;;  %v5413_v6 = vadd.f32 %v5381_v53, %v9968_v34  ;;  %v5344_v57 = vmul.f32 %v9542_v15, %v5250_v7  ;;  %v9986_v53 = vld [vmem:[#allocation29_spill] sm:$0xff]  ;;  %vm9997_vm2 = vmmov %vm9963_vm0 }
 0x3dc   : > { %v5446_v35 = vmax.f32 %v5414_v20, 0.0  ;;  %v5384_v31 = vadd.f32 %v9547_v61, %v5345_v58  ;;  %v9988_v58 = vld [vmem:[#allocation28_spill] sm:$0xff] }
 0x3dd   : > { %v5445_v37 = vmax.f32 %v5413_v6, 0.0  ;;  %v5383_v10 = vadd.f32 %v9547_v61, %v5344_v57  ;;  %v7174_v16 = vpop.f32.mrb[106].mxu0 }
 0x3de   : > { %5478 = vst.msk [vmem:[%s7877_s22 + $0x88] sm:$0xff] %vm9969_vm7, %v5446_v35  ;;  %v5416_v59 = vadd.f32 %v5384_v31, %v9970_v5  ;;  %v5347_v43 = vmul.f32 %v7174_v16, %v9542_v15  ;;  %v5260_v39 = vpop.f32.mrb[107].mxu0 }
 0x3df   : > { %5477 = vst.msk [vmem:[%s7877_s22 + $0x80] sm:$0xff] %vm9971_vm8, %v5445_v37  ;;  %v5415_v49 = vadd.f32 %v5383_v10, %v9972_v38  ;;  %v5346_v51 = vmul.f32 %v9542_v15, %v5260_v39  ;;  %v9990_v10 = vld [vmem:[#allocation31_spill] sm:$0xff] }
 0x3e0   : > { %v5448_v33 = vmax.f32 %v5416_v59, 0.0  ;;  %v5386_v24 = vadd.f32 %v9547_v61, %v5347_v43  ;;  %v9992_v43 = vld [vmem:[#allocation30_spill] sm:$0xff] }
 0x3e1   : > { %v5447_v12 = vmax.f32 %v5415_v49, 0.0  ;;  %v5385_v45 = vadd.f32 %v9547_v61, %v5346_v51 }
 0x3e2   : > { %5480 = vst.msk [vmem:[%s7877_s22 + $0x98] sm:$0xff] %vm9973_vm9, %v5448_v33  ;;  %v5418_v29 = vadd.f32 %v5386_v24, %v9974_v26  ;;  %v9995_v26 = vld [vmem:[#allocation32_spill] sm:$0xff] }
 0x3e3   : > { %5479 = vst.msk [vmem:[%s7877_s22 + $0x90] sm:$0xff] %vm9975_vm3, %v5447_v12  ;;  %v5417_v28 = vadd.f32 %v5385_v45, %v9976_v46  ;;  %v9994_v12 = vld [vmem:[#allocation33_spill] sm:$0xff] }
 0x3e4   : > { %v5450_v41 = vmax.f32 %v5418_v29, 0.0 }
 0x3e5   : > { %v5449_v32 = vmax.f32 %v5417_v28, 0.0 }
 0x3e6   : > { %5482 = vst.msk [vmem:[%s7877_s22 + $0xa8] sm:$0xff] %vm9977_vm4, %v5450_v41 }
 0x3e7   : > { %5481 = vst.msk [vmem:[%s7877_s22 + $0xa0] sm:$0xff] %vm9978_vm5, %v5449_v32 }
 0x3f3   : > { %v7177_v48 = vpop.f32.mrb[108].mxu0 }
 0x3f4   : > { %v5349_v25 = vmul.f32 %v7177_v48, %v9542_v15  ;;  %v5270_v13 = vpop.f32.mrb[109].mxu0 }
 0x3f5   : > { %v5348_v11 = vmul.f32 %v9542_v15, %v5270_v13 }
 0x3f6   : > { %v5388_v63 = vadd.f32 %v9547_v61, %v5349_v25 }
 0x3f7   : > { %v5387_v4 = vadd.f32 %v9547_v61, %v5348_v11  ;;  %v7180_v40 = vpop.f32.mrb[110].mxu0 }
 0x3f8   : > { %v5420_v22 = vadd.f32 %v5388_v63, %v9979_v52  ;;  %v5351_v9 = vmul.f32 %v7180_v40, %v9542_v15  ;;  %v5280_v30 = vpop.f32.mrb[111].mxu0 }
 0x3f9   : > { %v5419_v17 = vadd.f32 %v5387_v4, %v9980_v54  ;;  %v5350_v3 = vmul.f32 %v9542_v15, %v5280_v30 }
 0x3fa   : > { %v5452_v19 = vmax.f32 %v5420_v22, 0.0  ;;  %v5390_v44 = vadd.f32 %v9547_v61, %v5351_v9 }
 0x3fb   : > { %v5451_v14 = vmax.f32 %v5419_v17, 0.0  ;;  %v5389_v60 = vadd.f32 %v9547_v61, %v5350_v3  ;;  %v7183_v18 = vpop.f32.mrb[112].mxu0 }
 0x3fc   : > { %5484 = vst.msk [vmem:[%s7877_s22 + $0xb8] sm:$0xff] %vm9981_vm6, %v5452_v19  ;;  %v5422_v47 = vadd.f32 %v5390_v44, %v9982_v8  ;;  %v5353_v55 = vmul.f32 %v7183_v18, %v9542_v15  ;;  %v5290_v2 = vpop.f32.mrb[113].mxu0 }
 0x3fd   : > { %5483 = vst.msk [vmem:[%s7877_s22 + $0xb0] sm:$0xff] %vm9983_vm10, %v5451_v14  ;;  %v5421_v27 = vadd.f32 %v5389_v60, %v9984_v50  ;;  %v5352_v21 = vmul.f32 %v9542_v15, %v5290_v2 }
 0x3fe   : > { %v5454_v42 = vmax.f32 %v5422_v47, 0.0  ;;  %v5392_v56 = vadd.f32 %v9547_v61, %v5353_v55 }
 0x3ff   : > { %v5453_v36 = vmax.f32 %v5421_v27, 0.0  ;;  %v5391_v62 = vadd.f32 %v9547_v61, %v5352_v21  ;;  %v7186_v0 = vpop.f32.mrb[114].mxu0 }
 0x400   : > { %5486 = vst.msk [vmem:[%s7877_s22 + $0xc8] sm:$0xff] %vm9985_vm11, %v5454_v42  ;;  %v5424_v1 = vadd.f32 %v5392_v56, %v9986_v53  ;;  %v5355_v23 = vmul.f32 %v7186_v0, %v9542_v15  ;;  %v5300_v20 = vpop.f32.mrb[115].mxu0 }
 0x401   : > { %5485 = vst.msk [vmem:[%s7877_s22 + $0xc0] sm:$0xff] %vm9987_vm12, %v5453_v36  ;;  %v5423_v7 = vadd.f32 %v5391_v62, %v9988_v58  ;;  %v5354_v34 = vmul.f32 %v9542_v15, %v5300_v20 }
 0x402   : > { %v5456_v6 = vmax.f32 %v5424_v1, 0.0  ;;  %v5394_v57 = vadd.f32 %v9547_v61, %v5355_v23 }
 0x403   : > { %v5455_v35 = vmax.f32 %v5423_v7, 0.0  ;;  %v5393_v31 = vadd.f32 %v9547_v61, %v5354_v34  ;;  %v7189_v37 = vpop.f32.mrb[116].mxu0 }
 0x404   : > { %5488 = vst.msk [vmem:[%s7877_s22 + $0xd8] sm:$0xff] %vm9989_vm13, %v5456_v6  ;;  %v5426_v16 = vadd.f32 %v5394_v57, %v9990_v10  ;;  %v5357_v5 = vmul.f32 %v7189_v37, %v9542_v15  ;;  %v5310_v59 = vpop.f32.mrb[117].mxu0 }
 0x405   : > { %5487 = vst.msk [vmem:[%s7877_s22 + $0xd0] sm:$0xff] %vm9991_vm14, %v5455_v35  ;;  %v5425_v39 = vadd.f32 %v5393_v31, %v9992_v43  ;;  %v5356_v38 = vmul.f32 %v9542_v15, %v5310_v59 }
 0x406   : > { %v5458_v49 = vmax.f32 %v5426_v16, 0.0  ;;  %v5396_v51 = vadd.f32 %v9547_v61, %v5357_v5 }
 0x407   : > { %v5457_v33 = vmax.f32 %v5425_v39, 0.0  ;;  %v5395_v24 = vadd.f32 %v9547_v61, %v5356_v38 }
 0x408   : > { %5490 = vst.msk [vmem:[%s7877_s22 + $0xe8] sm:$0xff] %vm9993_vm15, %v5458_v49  ;;  %v5428_v45 = vadd.f32 %v5396_v51, %v9994_v12 }
 0x409   : > { %5489 = vst.msk [vmem:[%s7877_s22 + $0xe0] sm:$0xff] %vm9963_vm0, %v5457_v33  ;;  %v5427_v29 = vadd.f32 %v5395_v24, %v9995_v26 }
 0x40a   : > { %v5460_v46 = vmax.f32 %v5428_v45, 0.0 }
 0x40b   : > { %v5459_v28 = vmax.f32 %v5427_v29, 0.0 }
 0x40c   : > { %5492 = vst.msk [vmem:[%s7877_s22 + $0xf8] sm:$0xff] %vm9996_vm1, %v5460_v46 }
 0x40d   : > { %5491 = vst.msk [vmem:[%s7877_s22 + $0xf0] sm:$0xff] %vm9997_vm2, %v5459_v28 }
 0x40e PF: > { %s20_s13 = sadd.s32 1, %s7803_s13  }
 0x40f   : > { %p17_p5 = scmp.ge.s32.totalorder %s20_s13, 4  }
 0x411   :  { %19 = sbr.rel (!%p17_p5) target bundleno = 1 (0x1), region = 102 }

</bundles_post_ra>
